<compile_context>
chip_gen: v5e
topology: v5e:2x2
jax: 0.10.0
libtpu: 0.0.40
codegen_flags: <defaults>
</compile_context>

<pallas_src>
import math
import jax
import jax.numpy as jnp
from jax import lax
from jax.experimental import pallas as pl

# ----------------------------- config ---------------------------------------
B, S, H = 2, 16, 32          # batch, nodes/seq, hidden_size
BS = B * S                   # folded batch*seq rows
NH = 2                       # num_attention_heads
DH = H // NH                 # head dim
I = 64                       # intermediate_size
ED = 24                      # entity embedding dim
V = 50                       # vocab_size (== entity vocab here)
MAXPOS = 32                  # max_position_embeddings
NTYPE = 2                    # type_vocab_size
NLAYERS = 2                  # num_graph_layers
E = 10                       # number of graph edges
T = V + MAXPOS + NTYPE + V   # fused embedding-table rows (word|pos|type|ent_proj)
VW = 3 * H                   # packed per-layer vector width (96)
EPS = 1e-12                  # layer_norm_eps
NEG = -1e9


def _layer_norm(x, g, b):
    mu = jnp.mean(x, axis=-1, keepdims=True)
    xc = x - mu
    var = jnp.mean(xc * xc, axis=-1, keepdims=True)
    return xc * lax.rsqrt(var + EPS) * g + b


# --------------------------- fused model kernel ------------------------------
def fused_kernel(meta_ref, edge_ref, table_ref, vecs_ref,
                 wqkv_ref, wo_ref, wi_ref, wo2_ref, out_ref):
    meta = meta_ref[...]                      # (BS, 8) int32
    widx = meta[:, 0:1]                       # word-table row
    pidx = meta[:, 1:2]                       # pos-table row  (-1 => skipped)
    tidx = meta[:, 2:3]                       # type-table row (-1 => skipped)
    eidx = meta[:, 3:4]                       # entity-proj-table row
    kb_i = meta[:, 4:5]
    kb_f = kb_i.astype(jnp.float32)
    not_kb_f = jnp.where(kb_i > 0, 0.0, 1.0)

    # ----- GatbertEmbeddings: one fused one-hot @ table matmul -----
    cols = lax.broadcasted_iota(jnp.int32, (BS, T), 1)
    tok_oh = ((cols == widx) | (cols == pidx) | (cols == tidx)
              ).astype(jnp.float32) * not_kb_f            # word+pos+type, token-masked
    ent_oh = (cols == eidx).astype(jnp.float32) * kb_f    # ent_emb@wproj, kb-masked
    oh = (tok_oh + ent_oh).astype(jnp.bfloat16)           # (BS, T), exact in bf16

    ev = vecs_ref[NLAYERS]                    # (8, VW) f32 — embedding vectors
    bproj = ev[0:1, 0:H]
    emb_g = ev[1:2, 0:H]
    emb_b = ev[2:3, 0:H]

    x = jnp.dot(oh, table_ref[...], preferred_element_type=jnp.float32)   # (BS, H)
    x = x + kb_f * bproj                      # entity_proj bias, kb-masked
    x = _layer_norm(x, emb_g, emb_b)

    # ----- edge_indices -> additive attention mask (global node indices) -----
    edges = edge_ref[...]                     # (2, E) int32: global src / dst
    src_g = edges[0:1, :]
    dst_g = edges[1:2, :]
    rows_e = lax.broadcasted_iota(jnp.int32, (BS, E), 0)
    src_oh = (rows_e == src_g).astype(jnp.bfloat16)
    dst_oh = (rows_e == dst_g).astype(jnp.bfloat16)
    adj = lax.dot_general(src_oh, dst_oh, (((1,), (1,)), ((), ())),
                          preferred_element_type=jnp.float32)             # (BS, BS)
    qi = lax.broadcasted_iota(jnp.int32, (BS, BS), 0)
    ki = lax.broadcasted_iota(jnp.int32, (BS, BS), 1)
    # edges never cross batches (global indices share the batch offset) and
    # self-loops are within-batch, so this mask is block-diagonal in the batch.
    mask = jnp.where((adj > 0.5) | (qi == ki), 0.0, NEG)

    # ----- GatbertEncoder: NLAYERS edge-masked BERT layers -----
    for l in range(NLAYERS):                  # static unrolled layer loop
        lv = vecs_ref[l]                      # (8, VW) f32
        bqkv = lv[0:1, :]                     # (1, 3H)  (scale already folded into bq)
        bo = lv[1:2, 0:H]
        g1 = lv[2:3, 0:H]
        b1 = lv[3:4, 0:H]
        bi = lv[4:5, 0:I]
        bo2 = lv[5:6, 0:H]
        g2 = lv[6:7, 0:H]
        b2 = lv[7:8, 0:H]

        xb = x.astype(jnp.bfloat16)
        qkv = jnp.dot(xb, wqkv_ref[l],
                      preferred_element_type=jnp.float32) + bqkv          # (BS, 3H)

        wo_l = wo_ref[l]                      # (H, H) bf16
        acc = None
        for h in range(NH):                   # static head loop
            q = qkv[:, h * DH:(h + 1) * DH].astype(jnp.bfloat16)
            k = qkv[:, H + h * DH:H + (h + 1) * DH].astype(jnp.bfloat16)
            v = qkv[:, 2 * H + h * DH:2 * H + (h + 1) * DH].astype(jnp.bfloat16)
            # q @ k^T without explicit transpose (contract both last dims)
            s = lax.dot_general(q, k, (((1,), (1,)), ((), ())),
                                preferred_element_type=jnp.float32) + mask
            s = s - jnp.max(s, axis=-1, keepdims=True)
            p = jnp.exp(s)
            p = p * pl.reciprocal(jnp.sum(p, axis=-1, keepdims=True), approx=False)
            ctx = jnp.dot(p.astype(jnp.bfloat16), v,
                          preferred_element_type=jnp.float32)             # (BS, DH)
            # fold the head-concat into the Wo matmul: sum_h ctx_h @ Wo[h-rows]
            part = jnp.dot(ctx.astype(jnp.bfloat16), wo_l[h * DH:(h + 1) * DH, :],
                           preferred_element_type=jnp.float32)            # (BS, H)
            acc = part if acc is None else acc + part

        # BertSelfOutput: dense + residual + LayerNorm
        attn = _layer_norm(acc + bo + x, g1, b1)
        # BertIntermediate: dense + GELU
        inter = jnp.dot(attn.astype(jnp.bfloat16), wi_ref[l],
                        preferred_element_type=jnp.float32) + bi
        # TODO(synk): HF BERT default act is exact erf-GELU; tanh approximation used here.
        inter = jax.nn.gelu(inter, approximate=True)
        # BertOutput: dense + residual + LayerNorm
        ffn = jnp.dot(inter.astype(jnp.bfloat16), wo2_ref[l],
                      preferred_element_type=jnp.float32) + bo2
        x = _layer_norm(ffn + attn, g2, b2)

    out_ref[...] = x


# --------------------------- parameter packing -------------------------------
def pack_params(p):
    """One-time weight preprocessing: constant folding + layout packing."""
    scale = 1.0 / math.sqrt(DH)

    # entity_proj folded into the table; all 4 tables fused along rows.
    ent_proj_tbl = p["ent_emb"] @ p["wproj"]                          # (V, H) f32
    table = jnp.concatenate(
        [p["word_emb"], p["pos_emb"], p["type_emb"], ent_proj_tbl],
        axis=0).astype(jnp.bfloat16)                                  # (T, H) bf16

    def vrow(v):
        v = v.reshape(-1)
        return jnp.pad(v, (0, VW - v.shape[0]))

    layer_rows = []
    for l in range(NLAYERS):
        bqkv = p["bqkv"][l].reshape(-1).at[:H].multiply(scale)        # fold 1/sqrt(dh)
        layer_rows.append(jnp.stack([
            bqkv, vrow(p["bo"][l]), vrow(p["g1"][l]), vrow(p["b1"][l]),
            vrow(p["bi"][l]), vrow(p["bo2"][l]), vrow(p["g2"][l]), vrow(p["b2"][l])]))
    emb_rows = jnp.stack([vrow(p["bproj"]), vrow(p["emb_g"]), vrow(p["emb_b"])]
                         + [jnp.zeros((VW,), jnp.float32)] * 5)
    vecs = jnp.stack(layer_rows + [emb_rows])                         # (L+1, 8, VW) f32

    wqkv = p["wqkv"].at[:, :, :H].multiply(scale).astype(jnp.bfloat16)  # scale into Wq
    return {
        "table": table, "vecs": vecs, "wqkv": wqkv,
        "wo": p["wo"].astype(jnp.bfloat16),
        "wi": p["wi"].astype(jnp.bfloat16),
        "wo2": p["wo2"].astype(jnp.bfloat16),
    }


# ------------------------------ full model -----------------------------------
def gatbert_forward(packed, input_ids, pooling_mask, edge_indices,
                    position_ids=None, token_type_ids=None, node_type_ids=None):
    # TODO(synk): node_type_ids feeds the unavailable EdgeAsAttendee / TranslatedKey
    # attention variants; it is unused in this edge-masked standard-MHA implementation.
    ids = input_ids.astype(jnp.int32).reshape(BS)
    kb = pooling_mask.astype(jnp.int32).reshape(BS)
    not_kb = jnp.where(kb > 0, 0, 1)

    word_row = ids * not_kb                                           # padding_idx=0 row
    if position_ids is not None:
        pos_row = V + position_ids.astype(jnp.int32).reshape(BS)
    else:
        pos_row = jnp.full((BS,), -1, jnp.int32)                      # -1 => no pos add
    if token_type_ids is not None:
        typ_row = V + MAXPOS + token_type_ids.astype(jnp.int32).reshape(BS)
    else:
        typ_row = jnp.full((BS,), -1, jnp.int32)                      # -1 => no type add
    ent_row = V + MAXPOS + NTYPE + ids * kb

    zeros = jnp.zeros((BS,), jnp.int32)
    tok_meta = jnp.stack([word_row, pos_row, typ_row, ent_row, kb,
                          zeros, zeros, zeros], axis=1)               # (BS, 8) int32

    eb = edge_indices[0].astype(jnp.int32)
    es = edge_indices[1].astype(jnp.int32)
    ed = edge_indices[2].astype(jnp.int32)
    edge_meta = jnp.stack([eb * S + es, eb * S + ed], axis=0)         # (2, E) global idx

    flat = pl.pallas_call(
        fused_kernel,
        out_shape=jax.ShapeDtypeStruct((BS, H), jnp.float32),
    )(tok_meta, edge_meta, packed["table"], packed["vecs"],
      packed["wqkv"], packed["wo"], packed["wi"], packed["wo2"])

    node_states = flat.reshape(B, S, H)
    relation_states = None   # rel_proj skipped: relation_states is None
    return node_states, relation_states


# ------------------------------ parameters -----------------------------------
def init_params(key):
    std = 0.02
    keys = iter(jax.random.split(key, 5 + 6 * NLAYERS))
    p = {}
    word = std * jax.random.normal(next(keys), (V, H), jnp.float32)
    p["word_emb"] = word.at[0].set(0.0)        # padding_idx = 0
    p["pos_emb"] = std * jax.random.normal(next(keys), (MAXPOS, H), jnp.float32)
    p["type_emb"] = std * jax.random.normal(next(keys), (NTYPE, H), jnp.float32)
    p["ent_emb"] = std * jax.random.normal(next(keys), (V, ED), jnp.float32)
    p["wproj"] = std * jax.random.normal(next(keys), (ED, H), jnp.float32)
    p["bproj"] = jnp.zeros((1, H), jnp.float32)
    p["emb_g"] = jnp.ones((1, H), jnp.float32)
    p["emb_b"] = jnp.zeros((1, H), jnp.float32)

    wqkv, wo, wi, wo2 = [], [], [], []
    for _ in range(NLAYERS):
        wq = std * jax.random.normal(next(keys), (H, H), jnp.float32)
        wk = std * jax.random.normal(next(keys), (H, H), jnp.float32)
        wv = std * jax.random.normal(next(keys), (H, H), jnp.float32)
        wqkv.append(jnp.concatenate([wq, wk, wv], axis=1))            # fused (H, 3H)
        wo.append(std * jax.random.normal(next(keys), (H, H), jnp.float32))
        wi.append(std * jax.random.normal(next(keys), (H, I), jnp.float32))
        wo2.append(std * jax.random.normal(next(keys), (I, H), jnp.float32))
    p["wqkv"] = jnp.stack(wqkv)                                       # (L, H, 3H)
    p["bqkv"] = jnp.zeros((NLAYERS, 1, 3 * H), jnp.float32)
    p["wo"] = jnp.stack(wo)
    p["bo"] = jnp.zeros((NLAYERS, 1, H), jnp.float32)
    p["g1"] = jnp.ones((NLAYERS, 1, H), jnp.float32)
    p["b1"] = jnp.zeros((NLAYERS, 1, H), jnp.float32)
    p["wi"] = jnp.stack(wi)
    p["bi"] = jnp.zeros((NLAYERS, 1, I), jnp.float32)
    p["wo2"] = jnp.stack(wo2)
    p["bo2"] = jnp.zeros((NLAYERS, 1, H), jnp.float32)
    p["g2"] = jnp.ones((NLAYERS, 1, H), jnp.float32)
    p["b2"] = jnp.zeros((NLAYERS, 1, H), jnp.float32)
    return p


# ---------------------------------- main --------------------------------------
if __name__ == "__main__":
    key = jax.random.PRNGKey(0)
    kp, k1, k2, k3, k4, k5 = jax.random.split(key, 6)
    params = init_params(kp)
    packed = pack_params(params)               # one-time weight packing / folding

    input_ids = jax.random.randint(k1, (B, S), 1, V, dtype=jnp.int32)
    pooling_mask = jax.random.bernoulli(k2, 0.3, (B, S)).astype(jnp.int32)   # kb_mask
    position_ids = jnp.broadcast_to(jnp.arange(S, dtype=jnp.int32), (B, S))
    token_type_ids = jax.random.randint(k3, (B, S), 0, NTYPE, dtype=jnp.int32)
    edge_b = jax.random.randint(k4, (E,), 0, B, dtype=jnp.int32)
    edge_st = jax.random.randint(k5, (2, E), 0, S, dtype=jnp.int32)
    edge_indices = jnp.concatenate([edge_b[None], edge_st], axis=0)          # (3, E)

    node_states, relation_states = gatbert_forward(
        packed, input_ids, pooling_mask, edge_indices,
        position_ids=position_ids, token_type_ids=token_type_ids)
    jax.block_until_ready(node_states)
    assert node_states.shape == (B, S, H)
    assert relation_states is None
    assert bool(jnp.all(jnp.isfinite(node_states)))
    print("KERNEL_OK")
</pallas_src>

<mosaic_0001>
module attributes {stable_mosaic.version = 11 : i64} {
  func.func @fused_kernel(%arg0: memref<32x8xi32, #tpu.memory_space<vmem>>, %arg1: memref<2x10xi32, #tpu.memory_space<vmem>>, %arg2: memref<134x32xbf16, #tpu.memory_space<vmem>>, %arg3: memref<3x8x96xf32, #tpu.memory_space<vmem>>, %arg4: memref<2x32x96xbf16, #tpu.memory_space<vmem>>, %arg5: memref<2x32x32xbf16, #tpu.memory_space<vmem>>, %arg6: memref<2x32x64xbf16, #tpu.memory_space<vmem>>, %arg7: memref<2x64x32xbf16, #tpu.memory_space<vmem>>, %arg8: memref<32x32xf32, #tpu.memory_space<vmem>>) attributes {dimension_semantics = [], scalar_prefetch = 0 : i64, scratch_operands = 0 : i64, tpu.core_type = #tpu.core_type<tc>} {
    %c0 = arith.constant 0 : index
    %c0_0 = arith.constant 0 : index
    %0 = vector.load %arg0[%c0, %c0_0] : memref<32x8xi32, #tpu.memory_space<vmem>>, vector<32x8xi32>
    %1 = vector.extract_strided_slice %0 {offsets = [0, 0], sizes = [32, 1], strides = [1, 1]} : vector<32x8xi32> to vector<32x1xi32>
    %2 = vector.extract_strided_slice %0 {offsets = [0, 1], sizes = [32, 1], strides = [1, 1]} : vector<32x8xi32> to vector<32x1xi32>
    %3 = vector.extract_strided_slice %0 {offsets = [0, 2], sizes = [32, 1], strides = [1, 1]} : vector<32x8xi32> to vector<32x1xi32>
    %4 = vector.extract_strided_slice %0 {offsets = [0, 3], sizes = [32, 1], strides = [1, 1]} : vector<32x8xi32> to vector<32x1xi32>
    %5 = vector.extract_strided_slice %0 {offsets = [0, 4], sizes = [32, 1], strides = [1, 1]} : vector<32x8xi32> to vector<32x1xi32>
    %6 = arith.sitofp %5 : vector<32x1xi32> to vector<32x1xf32>
    %c0_i32 = arith.constant 0 : i32
    %7 = vector.broadcast %c0_i32 : i32 to vector<32x1xi32>
    %8 = arith.cmpi sgt, %5, %7 : vector<32x1xi32>
    %cst = arith.constant 0.000000e+00 : f32
    %cst_1 = arith.constant 1.000000e+00 : f32
    %9 = vector.broadcast %cst : f32 to vector<32x1xf32>
    %10 = vector.broadcast %cst_1 : f32 to vector<32x1xf32>
    %11 = arith.select %8, %9, %10 : vector<32x1xi1>, vector<32x1xf32>
    %12 = tpu.iota {dimensions = array<i32: 1>} : vector<32x134xi32>
    %13 = vector.broadcast %1 : vector<32x1xi32> to vector<32x134xi32>
    %14 = arith.cmpi eq, %12, %13 : vector<32x134xi32>
    %15 = vector.broadcast %2 : vector<32x1xi32> to vector<32x134xi32>
    %16 = arith.cmpi eq, %12, %15 : vector<32x134xi32>
    %17 = arith.ori %14, %16 : vector<32x134xi1>
    %18 = vector.broadcast %3 : vector<32x1xi32> to vector<32x134xi32>
    %19 = arith.cmpi eq, %12, %18 : vector<32x134xi32>
    %20 = arith.ori %17, %19 : vector<32x134xi1>
    %21 = arith.extui %20 : vector<32x134xi1> to vector<32x134xi32>
    %22 = arith.sitofp %21 : vector<32x134xi32> to vector<32x134xf32>
    %23 = vector.broadcast %11 : vector<32x1xf32> to vector<32x134xf32>
    %24 = arith.mulf %22, %23 : vector<32x134xf32>
    %25 = vector.broadcast %4 : vector<32x1xi32> to vector<32x134xi32>
    %26 = arith.cmpi eq, %12, %25 : vector<32x134xi32>
    %27 = arith.extui %26 : vector<32x134xi1> to vector<32x134xi32>
    %28 = arith.sitofp %27 : vector<32x134xi32> to vector<32x134xf32>
    %29 = vector.broadcast %6 : vector<32x1xf32> to vector<32x134xf32>
    %30 = arith.mulf %28, %29 : vector<32x134xf32>
    %31 = arith.addf %24, %30 : vector<32x134xf32>
    %32 = arith.truncf %31 : vector<32x134xf32> to vector<32x134xbf16>
    %c2 = arith.constant 2 : index
    %c0_2 = arith.constant 0 : index
    %c0_3 = arith.constant 0 : index
    %33 = vector.load %arg3[%c2, %c0_2, %c0_3] : memref<3x8x96xf32, #tpu.memory_space<vmem>>, vector<1x8x96xf32>
    %34 = vector.shape_cast %33 : vector<1x8x96xf32> to vector<8x96xf32>
    %35 = vector.extract_strided_slice %34 {offsets = [0, 0], sizes = [1, 32], strides = [1, 1]} : vector<8x96xf32> to vector<1x32xf32>
    %36 = vector.extract_strided_slice %34 {offsets = [1, 0], sizes = [1, 32], strides = [1, 1]} : vector<8x96xf32> to vector<1x32xf32>
    %37 = vector.extract_strided_slice %34 {offsets = [2, 0], sizes = [1, 32], strides = [1, 1]} : vector<8x96xf32> to vector<1x32xf32>
    %c0_4 = arith.constant 0 : index
    %c0_5 = arith.constant 0 : index
    %38 = vector.load %arg2[%c0_4, %c0_5] : memref<134x32xbf16, #tpu.memory_space<vmem>>, vector<134x32xbf16>
    %cst_6 = arith.constant dense<0.000000e+00> : vector<32x32xf32>
    %39 = tpu.matmul %32, %38, %cst_6 {dimension_numbers = #tpu.dot_dimension_numbers<[1], [0], [0], [1], [0, 0, 1, 1], [], []>} : vector<32x134xbf16>, vector<134x32xbf16>, vector<32x32xf32> -> vector<32x32xf32>
    %40 = vector.broadcast %6 : vector<32x1xf32> to vector<32x32xf32>
    %41 = vector.broadcast %35 : vector<1x32xf32> to vector<32x32xf32>
    %42 = arith.mulf %40, %41 : vector<32x32xf32>
    %43 = arith.addf %39, %42 : vector<32x32xf32>
    %cst_7 = arith.constant dense<0.000000e+00> : vector<32xf32>
    %44 = vector.multi_reduction <add>, %43, %cst_7 [1] : vector<32x32xf32> to vector<32xf32>
    %45 = vector.shape_cast %44 : vector<32xf32> to vector<32x1xf32>
    %cst_8 = arith.constant 3.200000e+01 : f32
    %46 = vector.broadcast %cst_8 : f32 to vector<32x1xf32>
    %47 = arith.divf %45, %46 : vector<32x1xf32>
    %48 = vector.broadcast %47 : vector<32x1xf32> to vector<32x32xf32>
    %49 = arith.subf %43, %48 : vector<32x32xf32>
    %50 = arith.mulf %49, %49 : vector<32x32xf32>
    %cst_9 = arith.constant dense<0.000000e+00> : vector<32xf32>
    %51 = vector.multi_reduction <add>, %50, %cst_9 [1] : vector<32x32xf32> to vector<32xf32>
    %52 = vector.shape_cast %51 : vector<32xf32> to vector<32x1xf32>
    %cst_10 = arith.constant 3.200000e+01 : f32
    %53 = vector.broadcast %cst_10 : f32 to vector<32x1xf32>
    %54 = arith.divf %52, %53 : vector<32x1xf32>
    %cst_11 = arith.constant 9.99999996E-13 : f32
    %55 = vector.broadcast %cst_11 : f32 to vector<32x1xf32>
    %56 = arith.addf %54, %55 : vector<32x1xf32>
    %57 = math.rsqrt %56 : vector<32x1xf32>
    %58 = vector.broadcast %57 : vector<32x1xf32> to vector<32x32xf32>
    %59 = arith.mulf %49, %58 : vector<32x32xf32>
    %60 = vector.broadcast %36 : vector<1x32xf32> to vector<32x32xf32>
    %61 = arith.mulf %59, %60 : vector<32x32xf32>
    %62 = vector.broadcast %37 : vector<1x32xf32> to vector<32x32xf32>
    %63 = arith.addf %61, %62 : vector<32x32xf32>
    %c0_12 = arith.constant 0 : index
    %c0_13 = arith.constant 0 : index
    %64 = vector.load %arg1[%c0_12, %c0_13] : memref<2x10xi32, #tpu.memory_space<vmem>>, vector<2x10xi32>
    %65 = vector.extract_strided_slice %64 {offsets = [0, 0], sizes = [1, 10], strides = [1, 1]} : vector<2x10xi32> to vector<1x10xi32>
    %66 = vector.extract_strided_slice %64 {offsets = [1, 0], sizes = [1, 10], strides = [1, 1]} : vector<2x10xi32> to vector<1x10xi32>
    %67 = tpu.iota {dimensions = array<i32: 0>} : vector<32x10xi32>
    %68 = vector.broadcast %65 : vector<1x10xi32> to vector<32x10xi32>
    %69 = arith.cmpi eq, %67, %68 : vector<32x10xi32>
    %70 = arith.extui %69 : vector<32x10xi1> to vector<32x10xi32>
    %71 = arith.sitofp %70 : vector<32x10xi32> to vector<32x10xf32>
    %72 = arith.truncf %71 : vector<32x10xf32> to vector<32x10xbf16>
    %73 = vector.broadcast %66 : vector<1x10xi32> to vector<32x10xi32>
    %74 = arith.cmpi eq, %67, %73 : vector<32x10xi32>
    %75 = arith.extui %74 : vector<32x10xi1> to vector<32x10xi32>
    %76 = arith.sitofp %75 : vector<32x10xi32> to vector<32x10xf32>
    %77 = arith.truncf %76 : vector<32x10xf32> to vector<32x10xbf16>
    %cst_14 = arith.constant dense<0.000000e+00> : vector<32x32xf32>
    %78 = tpu.matmul %72, %77, %cst_14 {dimension_numbers = #tpu.dot_dimension_numbers<[1], [1], [0], [0], [0, 0, 1, 0], [], []>} : vector<32x10xbf16>, vector<32x10xbf16>, vector<32x32xf32> -> vector<32x32xf32>
    %79 = tpu.iota {dimensions = array<i32: 0>} : vector<32x32xi32>
    %80 = tpu.iota {dimensions = array<i32: 1>} : vector<32x32xi32>
    %cst_15 = arith.constant 5.000000e-01 : f32
    %81 = vector.broadcast %cst_15 : f32 to vector<32x32xf32>
    %82 = arith.cmpf ogt, %78, %81 : vector<32x32xf32>
    %83 = arith.cmpi eq, %79, %80 : vector<32x32xi32>
    %84 = arith.ori %82, %83 : vector<32x32xi1>
    %cst_16 = arith.constant 0.000000e+00 : f32
    %cst_17 = arith.constant -1.000000e+09 : f32
    %85 = vector.broadcast %cst_16 : f32 to vector<32x32xf32>
    %86 = vector.broadcast %cst_17 : f32 to vector<32x32xf32>
    %87 = arith.select %84, %85, %86 : vector<32x32xi1>, vector<32x32xf32>
    %c0_18 = arith.constant 0 : index
    %c0_19 = arith.constant 0 : index
    %c0_20 = arith.constant 0 : index
    %88 = vector.load %arg3[%c0_18, %c0_19, %c0_20] : memref<3x8x96xf32, #tpu.memory_space<vmem>>, vector<1x8x96xf32>
    %89 = vector.shape_cast %88 : vector<1x8x96xf32> to vector<8x96xf32>
    %90 = vector.extract_strided_slice %89 {offsets = [0, 0], sizes = [1, 96], strides = [1, 1]} : vector<8x96xf32> to vector<1x96xf32>
    %91 = vector.extract_strided_slice %89 {offsets = [1, 0], sizes = [1, 32], strides = [1, 1]} : vector<8x96xf32> to vector<1x32xf32>
    %92 = vector.extract_strided_slice %89 {offsets = [2, 0], sizes = [1, 32], strides = [1, 1]} : vector<8x96xf32> to vector<1x32xf32>
    %93 = vector.extract_strided_slice %89 {offsets = [3, 0], sizes = [1, 32], strides = [1, 1]} : vector<8x96xf32> to vector<1x32xf32>
    %94 = vector.extract_strided_slice %89 {offsets = [4, 0], sizes = [1, 64], strides = [1, 1]} : vector<8x96xf32> to vector<1x64xf32>
    %95 = vector.extract_strided_slice %89 {offsets = [5, 0], sizes = [1, 32], strides = [1, 1]} : vector<8x96xf32> to vector<1x32xf32>
    %96 = vector.extract_strided_slice %89 {offsets = [6, 0], sizes = [1, 32], strides = [1, 1]} : vector<8x96xf32> to vector<1x32xf32>
    %97 = vector.extract_strided_slice %89 {offsets = [7, 0], sizes = [1, 32], strides = [1, 1]} : vector<8x96xf32> to vector<1x32xf32>
    %98 = arith.truncf %63 : vector<32x32xf32> to vector<32x32xbf16>
    %c0_21 = arith.constant 0 : index
    %c0_22 = arith.constant 0 : index
    %c0_23 = arith.constant 0 : index
    %99 = vector.load %arg4[%c0_21, %c0_22, %c0_23] : memref<2x32x96xbf16, #tpu.memory_space<vmem>>, vector<1x32x96xbf16>
    %100 = vector.shape_cast %99 : vector<1x32x96xbf16> to vector<32x96xbf16>
    %cst_24 = arith.constant dense<0.000000e+00> : vector<32x96xf32>
    %101 = tpu.matmul %98, %100, %cst_24 {dimension_numbers = #tpu.dot_dimension_numbers<[1], [0], [0], [1], [0, 0, 1, 1], [], []>} : vector<32x32xbf16>, vector<32x96xbf16>, vector<32x96xf32> -> vector<32x96xf32>
    %102 = vector.broadcast %90 : vector<1x96xf32> to vector<32x96xf32>
    %103 = arith.addf %101, %102 : vector<32x96xf32>
    %c0_25 = arith.constant 0 : index
    %c0_26 = arith.constant 0 : index
    %c0_27 = arith.constant 0 : index
    %104 = vector.load %arg5[%c0_25, %c0_26, %c0_27] : memref<2x32x32xbf16, #tpu.memory_space<vmem>>, vector<1x32x32xbf16>
    %105 = vector.shape_cast %104 : vector<1x32x32xbf16> to vector<32x32xbf16>
    %106 = vector.extract_strided_slice %103 {offsets = [0, 0], sizes = [32, 16], strides = [1, 1]} : vector<32x96xf32> to vector<32x16xf32>
    %107 = arith.truncf %106 : vector<32x16xf32> to vector<32x16xbf16>
    %108 = vector.extract_strided_slice %103 {offsets = [0, 32], sizes = [32, 16], strides = [1, 1]} : vector<32x96xf32> to vector<32x16xf32>
    %109 = arith.truncf %108 : vector<32x16xf32> to vector<32x16xbf16>
    %110 = vector.extract_strided_slice %103 {offsets = [0, 64], sizes = [32, 16], strides = [1, 1]} : vector<32x96xf32> to vector<32x16xf32>
    %111 = arith.truncf %110 : vector<32x16xf32> to vector<32x16xbf16>
    %cst_28 = arith.constant dense<0.000000e+00> : vector<32x32xf32>
    %112 = tpu.matmul %107, %109, %cst_28 {dimension_numbers = #tpu.dot_dimension_numbers<[1], [1], [0], [0], [0, 0, 1, 0], [], []>} : vector<32x16xbf16>, vector<32x16xbf16>, vector<32x32xf32> -> vector<32x32xf32>
    %113 = arith.addf %112, %87 : vector<32x32xf32>
    %cst_29 = arith.constant dense<0xFF800000> : vector<32xf32>
    %114 = vector.multi_reduction <maximumf>, %113, %cst_29 [1] : vector<32x32xf32> to vector<32xf32>
    %115 = vector.shape_cast %114 : vector<32xf32> to vector<32x1xf32>
    %116 = vector.broadcast %115 : vector<32x1xf32> to vector<32x32xf32>
    %117 = arith.subf %113, %116 : vector<32x32xf32>
    %118 = math.exp %117 : vector<32x32xf32>
    %cst_30 = arith.constant dense<0.000000e+00> : vector<32xf32>
    %119 = vector.multi_reduction <add>, %118, %cst_30 [1] : vector<32x32xf32> to vector<32xf32>
    %120 = vector.shape_cast %119 : vector<32xf32> to vector<32x1xf32>
    %121 = tpu.reciprocal %120 : vector<32x1xf32> -> vector<32x1xf32>
    %122 = vector.broadcast %121 : vector<32x1xf32> to vector<32x32xf32>
    %123 = arith.mulf %118, %122 : vector<32x32xf32>
    %124 = arith.truncf %123 : vector<32x32xf32> to vector<32x32xbf16>
    %cst_31 = arith.constant dense<0.000000e+00> : vector<32x16xf32>
    %125 = tpu.matmul %124, %111, %cst_31 {dimension_numbers = #tpu.dot_dimension_numbers<[1], [0], [0], [1], [0, 0, 1, 1], [], []>} : vector<32x32xbf16>, vector<32x16xbf16>, vector<32x16xf32> -> vector<32x16xf32>
    %126 = arith.truncf %125 : vector<32x16xf32> to vector<32x16xbf16>
    %127 = vector.extract_strided_slice %105 {offsets = [0, 0], sizes = [16, 32], strides = [1, 1]} : vector<32x32xbf16> to vector<16x32xbf16>
    %cst_32 = arith.constant dense<0.000000e+00> : vector<32x32xf32>
    %128 = tpu.matmul %126, %127, %cst_32 {dimension_numbers = #tpu.dot_dimension_numbers<[1], [0], [0], [1], [0, 0, 1, 1], [], []>} : vector<32x16xbf16>, vector<16x32xbf16>, vector<32x32xf32> -> vector<32x32xf32>
    %129 = vector.extract_strided_slice %103 {offsets = [0, 16], sizes = [32, 16], strides = [1, 1]} : vector<32x96xf32> to vector<32x16xf32>
    %130 = arith.truncf %129 : vector<32x16xf32> to vector<32x16xbf16>
    %131 = vector.extract_strided_slice %103 {offsets = [0, 48], sizes = [32, 16], strides = [1, 1]} : vector<32x96xf32> to vector<32x16xf32>
    %132 = arith.truncf %131 : vector<32x16xf32> to vector<32x16xbf16>
    %133 = vector.extract_strided_slice %103 {offsets = [0, 80], sizes = [32, 16], strides = [1, 1]} : vector<32x96xf32> to vector<32x16xf32>
    %134 = arith.truncf %133 : vector<32x16xf32> to vector<32x16xbf16>
    %cst_33 = arith.constant dense<0.000000e+00> : vector<32x32xf32>
    %135 = tpu.matmul %130, %132, %cst_33 {dimension_numbers = #tpu.dot_dimension_numbers<[1], [1], [0], [0], [0, 0, 1, 0], [], []>} : vector<32x16xbf16>, vector<32x16xbf16>, vector<32x32xf32> -> vector<32x32xf32>
    %136 = arith.addf %135, %87 : vector<32x32xf32>
    %cst_34 = arith.constant dense<0xFF800000> : vector<32xf32>
    %137 = vector.multi_reduction <maximumf>, %136, %cst_34 [1] : vector<32x32xf32> to vector<32xf32>
    %138 = vector.shape_cast %137 : vector<32xf32> to vector<32x1xf32>
    %139 = vector.broadcast %138 : vector<32x1xf32> to vector<32x32xf32>
    %140 = arith.subf %136, %139 : vector<32x32xf32>
    %141 = math.exp %140 : vector<32x32xf32>
    %cst_35 = arith.constant dense<0.000000e+00> : vector<32xf32>
    %142 = vector.multi_reduction <add>, %141, %cst_35 [1] : vector<32x32xf32> to vector<32xf32>
    %143 = vector.shape_cast %142 : vector<32xf32> to vector<32x1xf32>
    %144 = tpu.reciprocal %143 : vector<32x1xf32> -> vector<32x1xf32>
    %145 = vector.broadcast %144 : vector<32x1xf32> to vector<32x32xf32>
    %146 = arith.mulf %141, %145 : vector<32x32xf32>
    %147 = arith.truncf %146 : vector<32x32xf32> to vector<32x32xbf16>
    %cst_36 = arith.constant dense<0.000000e+00> : vector<32x16xf32>
    %148 = tpu.matmul %147, %134, %cst_36 {dimension_numbers = #tpu.dot_dimension_numbers<[1], [0], [0], [1], [0, 0, 1, 1], [], []>} : vector<32x32xbf16>, vector<32x16xbf16>, vector<32x16xf32> -> vector<32x16xf32>
    %149 = arith.truncf %148 : vector<32x16xf32> to vector<32x16xbf16>
    %150 = vector.extract_strided_slice %105 {offsets = [16, 0], sizes = [16, 32], strides = [1, 1]} : vector<32x32xbf16> to vector<16x32xbf16>
    %cst_37 = arith.constant dense<0.000000e+00> : vector<32x32xf32>
    %151 = tpu.matmul %149, %150, %cst_37 {dimension_numbers = #tpu.dot_dimension_numbers<[1], [0], [0], [1], [0, 0, 1, 1], [], []>} : vector<32x16xbf16>, vector<16x32xbf16>, vector<32x32xf32> -> vector<32x32xf32>
    %152 = arith.addf %128, %151 : vector<32x32xf32>
    %153 = vector.broadcast %91 : vector<1x32xf32> to vector<32x32xf32>
    %154 = arith.addf %152, %153 : vector<32x32xf32>
    %155 = arith.addf %154, %63 : vector<32x32xf32>
    %cst_38 = arith.constant dense<0.000000e+00> : vector<32xf32>
    %156 = vector.multi_reduction <add>, %155, %cst_38 [1] : vector<32x32xf32> to vector<32xf32>
    %157 = vector.shape_cast %156 : vector<32xf32> to vector<32x1xf32>
    %cst_39 = arith.constant 3.200000e+01 : f32
    %158 = vector.broadcast %cst_39 : f32 to vector<32x1xf32>
    %159 = arith.divf %157, %158 : vector<32x1xf32>
    %160 = vector.broadcast %159 : vector<32x1xf32> to vector<32x32xf32>
    %161 = arith.subf %155, %160 : vector<32x32xf32>
    %162 = arith.mulf %161, %161 : vector<32x32xf32>
    %cst_40 = arith.constant dense<0.000000e+00> : vector<32xf32>
    %163 = vector.multi_reduction <add>, %162, %cst_40 [1] : vector<32x32xf32> to vector<32xf32>
    %164 = vector.shape_cast %163 : vector<32xf32> to vector<32x1xf32>
    %cst_41 = arith.constant 3.200000e+01 : f32
    %165 = vector.broadcast %cst_41 : f32 to vector<32x1xf32>
    %166 = arith.divf %164, %165 : vector<32x1xf32>
    %cst_42 = arith.constant 9.99999996E-13 : f32
    %167 = vector.broadcast %cst_42 : f32 to vector<32x1xf32>
    %168 = arith.addf %166, %167 : vector<32x1xf32>
    %169 = math.rsqrt %168 : vector<32x1xf32>
    %170 = vector.broadcast %169 : vector<32x1xf32> to vector<32x32xf32>
    %171 = arith.mulf %161, %170 : vector<32x32xf32>
    %172 = vector.broadcast %92 : vector<1x32xf32> to vector<32x32xf32>
    %173 = arith.mulf %171, %172 : vector<32x32xf32>
    %174 = vector.broadcast %93 : vector<1x32xf32> to vector<32x32xf32>
    %175 = arith.addf %173, %174 : vector<32x32xf32>
    %176 = arith.truncf %175 : vector<32x32xf32> to vector<32x32xbf16>
    %c0_43 = arith.constant 0 : index
    %c0_44 = arith.constant 0 : index
    %c0_45 = arith.constant 0 : index
    %177 = vector.load %arg6[%c0_43, %c0_44, %c0_45] : memref<2x32x64xbf16, #tpu.memory_space<vmem>>, vector<1x32x64xbf16>
    %178 = vector.shape_cast %177 : vector<1x32x64xbf16> to vector<32x64xbf16>
    %cst_46 = arith.constant dense<0.000000e+00> : vector<32x64xf32>
    %179 = tpu.matmul %176, %178, %cst_46 {dimension_numbers = #tpu.dot_dimension_numbers<[1], [0], [0], [1], [0, 0, 1, 1], [], []>} : vector<32x32xbf16>, vector<32x64xbf16>, vector<32x64xf32> -> vector<32x64xf32>
    %180 = vector.broadcast %94 : vector<1x64xf32> to vector<32x64xf32>
    %181 = arith.addf %179, %180 : vector<32x64xf32>
    %182 = arith.mulf %181, %181 : vector<32x64xf32>
    %183 = arith.mulf %181, %182 : vector<32x64xf32>
    %cst_47 = arith.constant 4.471500e-02 : f32
    %184 = vector.broadcast %cst_47 : f32 to vector<32x64xf32>
    %185 = arith.mulf %184, %183 : vector<32x64xf32>
    %186 = arith.addf %181, %185 : vector<32x64xf32>
    %cst_48 = arith.constant 0.797884583 : f32
    %187 = vector.broadcast %cst_48 : f32 to vector<32x64xf32>
    %188 = arith.mulf %187, %186 : vector<32x64xf32>
    %189 = math.tanh %188 : vector<32x64xf32>
    %cst_49 = arith.constant 1.000000e+00 : f32
    %190 = vector.broadcast %cst_49 : f32 to vector<32x64xf32>
    %191 = arith.addf %190, %189 : vector<32x64xf32>
    %cst_50 = arith.constant 5.000000e-01 : f32
    %192 = vector.broadcast %cst_50 : f32 to vector<32x64xf32>
    %193 = arith.mulf %192, %191 : vector<32x64xf32>
    %194 = arith.mulf %181, %193 : vector<32x64xf32>
    %195 = arith.truncf %194 : vector<32x64xf32> to vector<32x64xbf16>
    %c0_51 = arith.constant 0 : index
    %c0_52 = arith.constant 0 : index
    %c0_53 = arith.constant 0 : index
    %196 = vector.load %arg7[%c0_51, %c0_52, %c0_53] : memref<2x64x32xbf16, #tpu.memory_space<vmem>>, vector<1x64x32xbf16>
    %197 = vector.shape_cast %196 : vector<1x64x32xbf16> to vector<64x32xbf16>
    %cst_54 = arith.constant dense<0.000000e+00> : vector<32x32xf32>
    %198 = tpu.matmul %195, %197, %cst_54 {dimension_numbers = #tpu.dot_dimension_numbers<[1], [0], [0], [1], [0, 0, 1, 1], [], []>} : vector<32x64xbf16>, vector<64x32xbf16>, vector<32x32xf32> -> vector<32x32xf32>
    %199 = vector.broadcast %95 : vector<1x32xf32> to vector<32x32xf32>
    %200 = arith.addf %198, %199 : vector<32x32xf32>
    %201 = arith.addf %200, %175 : vector<32x32xf32>
    %cst_55 = arith.constant dense<0.000000e+00> : vector<32xf32>
    %202 = vector.multi_reduction <add>, %201, %cst_55 [1] : vector<32x32xf32> to vector<32xf32>
    %203 = vector.shape_cast %202 : vector<32xf32> to vector<32x1xf32>
    %cst_56 = arith.constant 3.200000e+01 : f32
    %204 = vector.broadcast %cst_56 : f32 to vector<32x1xf32>
    %205 = arith.divf %203, %204 : vector<32x1xf32>
    %206 = vector.broadcast %205 : vector<32x1xf32> to vector<32x32xf32>
    %207 = arith.subf %201, %206 : vector<32x32xf32>
    %208 = arith.mulf %207, %207 : vector<32x32xf32>
    %cst_57 = arith.constant dense<0.000000e+00> : vector<32xf32>
    %209 = vector.multi_reduction <add>, %208, %cst_57 [1] : vector<32x32xf32> to vector<32xf32>
    %210 = vector.shape_cast %209 : vector<32xf32> to vector<32x1xf32>
    %cst_58 = arith.constant 3.200000e+01 : f32
    %211 = vector.broadcast %cst_58 : f32 to vector<32x1xf32>
    %212 = arith.divf %210, %211 : vector<32x1xf32>
    %cst_59 = arith.constant 9.99999996E-13 : f32
    %213 = vector.broadcast %cst_59 : f32 to vector<32x1xf32>
    %214 = arith.addf %212, %213 : vector<32x1xf32>
    %215 = math.rsqrt %214 : vector<32x1xf32>
    %216 = vector.broadcast %215 : vector<32x1xf32> to vector<32x32xf32>
    %217 = arith.mulf %207, %216 : vector<32x32xf32>
    %218 = vector.broadcast %96 : vector<1x32xf32> to vector<32x32xf32>
    %219 = arith.mulf %217, %218 : vector<32x32xf32>
    %220 = vector.broadcast %97 : vector<1x32xf32> to vector<32x32xf32>
    %221 = arith.addf %219, %220 : vector<32x32xf32>
    %c1 = arith.constant 1 : index
    %c0_60 = arith.constant 0 : index
    %c0_61 = arith.constant 0 : index
    %222 = vector.load %arg3[%c1, %c0_60, %c0_61] : memref<3x8x96xf32, #tpu.memory_space<vmem>>, vector<1x8x96xf32>
    %223 = vector.shape_cast %222 : vector<1x8x96xf32> to vector<8x96xf32>
    %224 = vector.extract_strided_slice %223 {offsets = [0, 0], sizes = [1, 96], strides = [1, 1]} : vector<8x96xf32> to vector<1x96xf32>
    %225 = vector.extract_strided_slice %223 {offsets = [1, 0], sizes = [1, 32], strides = [1, 1]} : vector<8x96xf32> to vector<1x32xf32>
    %226 = vector.extract_strided_slice %223 {offsets = [2, 0], sizes = [1, 32], strides = [1, 1]} : vector<8x96xf32> to vector<1x32xf32>
    %227 = vector.extract_strided_slice %223 {offsets = [3, 0], sizes = [1, 32], strides = [1, 1]} : vector<8x96xf32> to vector<1x32xf32>
    %228 = vector.extract_strided_slice %223 {offsets = [4, 0], sizes = [1, 64], strides = [1, 1]} : vector<8x96xf32> to vector<1x64xf32>
    %229 = vector.extract_strided_slice %223 {offsets = [5, 0], sizes = [1, 32], strides = [1, 1]} : vector<8x96xf32> to vector<1x32xf32>
    %230 = vector.extract_strided_slice %223 {offsets = [6, 0], sizes = [1, 32], strides = [1, 1]} : vector<8x96xf32> to vector<1x32xf32>
    %231 = vector.extract_strided_slice %223 {offsets = [7, 0], sizes = [1, 32], strides = [1, 1]} : vector<8x96xf32> to vector<1x32xf32>
    %232 = arith.truncf %221 : vector<32x32xf32> to vector<32x32xbf16>
    %c1_62 = arith.constant 1 : index
    %c0_63 = arith.constant 0 : index
    %c0_64 = arith.constant 0 : index
    %233 = vector.load %arg4[%c1_62, %c0_63, %c0_64] : memref<2x32x96xbf16, #tpu.memory_space<vmem>>, vector<1x32x96xbf16>
    %234 = vector.shape_cast %233 : vector<1x32x96xbf16> to vector<32x96xbf16>
    %cst_65 = arith.constant dense<0.000000e+00> : vector<32x96xf32>
    %235 = tpu.matmul %232, %234, %cst_65 {dimension_numbers = #tpu.dot_dimension_numbers<[1], [0], [0], [1], [0, 0, 1, 1], [], []>} : vector<32x32xbf16>, vector<32x96xbf16>, vector<32x96xf32> -> vector<32x96xf32>
    %236 = vector.broadcast %224 : vector<1x96xf32> to vector<32x96xf32>
    %237 = arith.addf %235, %236 : vector<32x96xf32>
    %c1_66 = arith.constant 1 : index
    %c0_67 = arith.constant 0 : index
    %c0_68 = arith.constant 0 : index
    %238 = vector.load %arg5[%c1_66, %c0_67, %c0_68] : memref<2x32x32xbf16, #tpu.memory_space<vmem>>, vector<1x32x32xbf16>
    %239 = vector.shape_cast %238 : vector<1x32x32xbf16> to vector<32x32xbf16>
    %240 = vector.extract_strided_slice %237 {offsets = [0, 0], sizes = [32, 16], strides = [1, 1]} : vector<32x96xf32> to vector<32x16xf32>
    %241 = arith.truncf %240 : vector<32x16xf32> to vector<32x16xbf16>
    %242 = vector.extract_strided_slice %237 {offsets = [0, 32], sizes = [32, 16], strides = [1, 1]} : vector<32x96xf32> to vector<32x16xf32>
    %243 = arith.truncf %242 : vector<32x16xf32> to vector<32x16xbf16>
    %244 = vector.extract_strided_slice %237 {offsets = [0, 64], sizes = [32, 16], strides = [1, 1]} : vector<32x96xf32> to vector<32x16xf32>
    %245 = arith.truncf %244 : vector<32x16xf32> to vector<32x16xbf16>
    %cst_69 = arith.constant dense<0.000000e+00> : vector<32x32xf32>
    %246 = tpu.matmul %241, %243, %cst_69 {dimension_numbers = #tpu.dot_dimension_numbers<[1], [1], [0], [0], [0, 0, 1, 0], [], []>} : vector<32x16xbf16>, vector<32x16xbf16>, vector<32x32xf32> -> vector<32x32xf32>
    %247 = arith.addf %246, %87 : vector<32x32xf32>
    %cst_70 = arith.constant dense<0xFF800000> : vector<32xf32>
    %248 = vector.multi_reduction <maximumf>, %247, %cst_70 [1] : vector<32x32xf32> to vector<32xf32>
    %249 = vector.shape_cast %248 : vector<32xf32> to vector<32x1xf32>
    %250 = vector.broadcast %249 : vector<32x1xf32> to vector<32x32xf32>
    %251 = arith.subf %247, %250 : vector<32x32xf32>
    %252 = math.exp %251 : vector<32x32xf32>
    %cst_71 = arith.constant dense<0.000000e+00> : vector<32xf32>
    %253 = vector.multi_reduction <add>, %252, %cst_71 [1] : vector<32x32xf32> to vector<32xf32>
    %254 = vector.shape_cast %253 : vector<32xf32> to vector<32x1xf32>
    %255 = tpu.reciprocal %254 : vector<32x1xf32> -> vector<32x1xf32>
    %256 = vector.broadcast %255 : vector<32x1xf32> to vector<32x32xf32>
    %257 = arith.mulf %252, %256 : vector<32x32xf32>
    %258 = arith.truncf %257 : vector<32x32xf32> to vector<32x32xbf16>
    %cst_72 = arith.constant dense<0.000000e+00> : vector<32x16xf32>
    %259 = tpu.matmul %258, %245, %cst_72 {dimension_numbers = #tpu.dot_dimension_numbers<[1], [0], [0], [1], [0, 0, 1, 1], [], []>} : vector<32x32xbf16>, vector<32x16xbf16>, vector<32x16xf32> -> vector<32x16xf32>
    %260 = arith.truncf %259 : vector<32x16xf32> to vector<32x16xbf16>
    %261 = vector.extract_strided_slice %239 {offsets = [0, 0], sizes = [16, 32], strides = [1, 1]} : vector<32x32xbf16> to vector<16x32xbf16>
    %cst_73 = arith.constant dense<0.000000e+00> : vector<32x32xf32>
    %262 = tpu.matmul %260, %261, %cst_73 {dimension_numbers = #tpu.dot_dimension_numbers<[1], [0], [0], [1], [0, 0, 1, 1], [], []>} : vector<32x16xbf16>, vector<16x32xbf16>, vector<32x32xf32> -> vector<32x32xf32>
    %263 = vector.extract_strided_slice %237 {offsets = [0, 16], sizes = [32, 16], strides = [1, 1]} : vector<32x96xf32> to vector<32x16xf32>
    %264 = arith.truncf %263 : vector<32x16xf32> to vector<32x16xbf16>
    %265 = vector.extract_strided_slice %237 {offsets = [0, 48], sizes = [32, 16], strides = [1, 1]} : vector<32x96xf32> to vector<32x16xf32>
    %266 = arith.truncf %265 : vector<32x16xf32> to vector<32x16xbf16>
    %267 = vector.extract_strided_slice %237 {offsets = [0, 80], sizes = [32, 16], strides = [1, 1]} : vector<32x96xf32> to vector<32x16xf32>
    %268 = arith.truncf %267 : vector<32x16xf32> to vector<32x16xbf16>
    %cst_74 = arith.constant dense<0.000000e+00> : vector<32x32xf32>
    %269 = tpu.matmul %264, %266, %cst_74 {dimension_numbers = #tpu.dot_dimension_numbers<[1], [1], [0], [0], [0, 0, 1, 0], [], []>} : vector<32x16xbf16>, vector<32x16xbf16>, vector<32x32xf32> -> vector<32x32xf32>
    %270 = arith.addf %269, %87 : vector<32x32xf32>
    %cst_75 = arith.constant dense<0xFF800000> : vector<32xf32>
    %271 = vector.multi_reduction <maximumf>, %270, %cst_75 [1] : vector<32x32xf32> to vector<32xf32>
    %272 = vector.shape_cast %271 : vector<32xf32> to vector<32x1xf32>
    %273 = vector.broadcast %272 : vector<32x1xf32> to vector<32x32xf32>
    %274 = arith.subf %270, %273 : vector<32x32xf32>
    %275 = math.exp %274 : vector<32x32xf32>
    %cst_76 = arith.constant dense<0.000000e+00> : vector<32xf32>
    %276 = vector.multi_reduction <add>, %275, %cst_76 [1] : vector<32x32xf32> to vector<32xf32>
    %277 = vector.shape_cast %276 : vector<32xf32> to vector<32x1xf32>
    %278 = tpu.reciprocal %277 : vector<32x1xf32> -> vector<32x1xf32>
    %279 = vector.broadcast %278 : vector<32x1xf32> to vector<32x32xf32>
    %280 = arith.mulf %275, %279 : vector<32x32xf32>
    %281 = arith.truncf %280 : vector<32x32xf32> to vector<32x32xbf16>
    %cst_77 = arith.constant dense<0.000000e+00> : vector<32x16xf32>
    %282 = tpu.matmul %281, %268, %cst_77 {dimension_numbers = #tpu.dot_dimension_numbers<[1], [0], [0], [1], [0, 0, 1, 1], [], []>} : vector<32x32xbf16>, vector<32x16xbf16>, vector<32x16xf32> -> vector<32x16xf32>
    %283 = arith.truncf %282 : vector<32x16xf32> to vector<32x16xbf16>
    %284 = vector.extract_strided_slice %239 {offsets = [16, 0], sizes = [16, 32], strides = [1, 1]} : vector<32x32xbf16> to vector<16x32xbf16>
    %cst_78 = arith.constant dense<0.000000e+00> : vector<32x32xf32>
    %285 = tpu.matmul %283, %284, %cst_78 {dimension_numbers = #tpu.dot_dimension_numbers<[1], [0], [0], [1], [0, 0, 1, 1], [], []>} : vector<32x16xbf16>, vector<16x32xbf16>, vector<32x32xf32> -> vector<32x32xf32>
    %286 = arith.addf %262, %285 : vector<32x32xf32>
    %287 = vector.broadcast %225 : vector<1x32xf32> to vector<32x32xf32>
    %288 = arith.addf %286, %287 : vector<32x32xf32>
    %289 = arith.addf %288, %221 : vector<32x32xf32>
    %cst_79 = arith.constant dense<0.000000e+00> : vector<32xf32>
    %290 = vector.multi_reduction <add>, %289, %cst_79 [1] : vector<32x32xf32> to vector<32xf32>
    %291 = vector.shape_cast %290 : vector<32xf32> to vector<32x1xf32>
    %cst_80 = arith.constant 3.200000e+01 : f32
    %292 = vector.broadcast %cst_80 : f32 to vector<32x1xf32>
    %293 = arith.divf %291, %292 : vector<32x1xf32>
    %294 = vector.broadcast %293 : vector<32x1xf32> to vector<32x32xf32>
    %295 = arith.subf %289, %294 : vector<32x32xf32>
    %296 = arith.mulf %295, %295 : vector<32x32xf32>
    %cst_81 = arith.constant dense<0.000000e+00> : vector<32xf32>
    %297 = vector.multi_reduction <add>, %296, %cst_81 [1] : vector<32x32xf32> to vector<32xf32>
    %298 = vector.shape_cast %297 : vector<32xf32> to vector<32x1xf32>
    %cst_82 = arith.constant 3.200000e+01 : f32
    %299 = vector.broadcast %cst_82 : f32 to vector<32x1xf32>
    %300 = arith.divf %298, %299 : vector<32x1xf32>
    %cst_83 = arith.constant 9.99999996E-13 : f32
    %301 = vector.broadcast %cst_83 : f32 to vector<32x1xf32>
    %302 = arith.addf %300, %301 : vector<32x1xf32>
    %303 = math.rsqrt %302 : vector<32x1xf32>
    %304 = vector.broadcast %303 : vector<32x1xf32> to vector<32x32xf32>
    %305 = arith.mulf %295, %304 : vector<32x32xf32>
    %306 = vector.broadcast %226 : vector<1x32xf32> to vector<32x32xf32>
    %307 = arith.mulf %305, %306 : vector<32x32xf32>
    %308 = vector.broadcast %227 : vector<1x32xf32> to vector<32x32xf32>
    %309 = arith.addf %307, %308 : vector<32x32xf32>
    %310 = arith.truncf %309 : vector<32x32xf32> to vector<32x32xbf16>
    %c1_84 = arith.constant 1 : index
    %c0_85 = arith.constant 0 : index
    %c0_86 = arith.constant 0 : index
    %311 = vector.load %arg6[%c1_84, %c0_85, %c0_86] : memref<2x32x64xbf16, #tpu.memory_space<vmem>>, vector<1x32x64xbf16>
    %312 = vector.shape_cast %311 : vector<1x32x64xbf16> to vector<32x64xbf16>
    %cst_87 = arith.constant dense<0.000000e+00> : vector<32x64xf32>
    %313 = tpu.matmul %310, %312, %cst_87 {dimension_numbers = #tpu.dot_dimension_numbers<[1], [0], [0], [1], [0, 0, 1, 1], [], []>} : vector<32x32xbf16>, vector<32x64xbf16>, vector<32x64xf32> -> vector<32x64xf32>
    %314 = vector.broadcast %228 : vector<1x64xf32> to vector<32x64xf32>
    %315 = arith.addf %313, %314 : vector<32x64xf32>
    %316 = arith.mulf %315, %315 : vector<32x64xf32>
    %317 = arith.mulf %315, %316 : vector<32x64xf32>
    %cst_88 = arith.constant 4.471500e-02 : f32
    %318 = vector.broadcast %cst_88 : f32 to vector<32x64xf32>
    %319 = arith.mulf %318, %317 : vector<32x64xf32>
    %320 = arith.addf %315, %319 : vector<32x64xf32>
    %cst_89 = arith.constant 0.797884583 : f32
    %321 = vector.broadcast %cst_89 : f32 to vector<32x64xf32>
    %322 = arith.mulf %321, %320 : vector<32x64xf32>
    %323 = math.tanh %322 : vector<32x64xf32>
    %cst_90 = arith.constant 1.000000e+00 : f32
    %324 = vector.broadcast %cst_90 : f32 to vector<32x64xf32>
    %325 = arith.addf %324, %323 : vector<32x64xf32>
    %cst_91 = arith.constant 5.000000e-01 : f32
    %326 = vector.broadcast %cst_91 : f32 to vector<32x64xf32>
    %327 = arith.mulf %326, %325 : vector<32x64xf32>
    %328 = arith.mulf %315, %327 : vector<32x64xf32>
    %329 = arith.truncf %328 : vector<32x64xf32> to vector<32x64xbf16>
    %c1_92 = arith.constant 1 : index
    %c0_93 = arith.constant 0 : index
    %c0_94 = arith.constant 0 : index
    %330 = vector.load %arg7[%c1_92, %c0_93, %c0_94] : memref<2x64x32xbf16, #tpu.memory_space<vmem>>, vector<1x64x32xbf16>
    %331 = vector.shape_cast %330 : vector<1x64x32xbf16> to vector<64x32xbf16>
    %cst_95 = arith.constant dense<0.000000e+00> : vector<32x32xf32>
    %332 = tpu.matmul %329, %331, %cst_95 {dimension_numbers = #tpu.dot_dimension_numbers<[1], [0], [0], [1], [0, 0, 1, 1], [], []>} : vector<32x64xbf16>, vector<64x32xbf16>, vector<32x32xf32> -> vector<32x32xf32>
    %333 = vector.broadcast %229 : vector<1x32xf32> to vector<32x32xf32>
    %334 = arith.addf %332, %333 : vector<32x32xf32>
    %335 = arith.addf %334, %309 : vector<32x32xf32>
    %cst_96 = arith.constant dense<0.000000e+00> : vector<32xf32>
    %336 = vector.multi_reduction <add>, %335, %cst_96 [1] : vector<32x32xf32> to vector<32xf32>
    %337 = vector.shape_cast %336 : vector<32xf32> to vector<32x1xf32>
    %cst_97 = arith.constant 3.200000e+01 : f32
    %338 = vector.broadcast %cst_97 : f32 to vector<32x1xf32>
    %339 = arith.divf %337, %338 : vector<32x1xf32>
    %340 = vector.broadcast %339 : vector<32x1xf32> to vector<32x32xf32>
    %341 = arith.subf %335, %340 : vector<32x32xf32>
    %342 = arith.mulf %341, %341 : vector<32x32xf32>
    %cst_98 = arith.constant dense<0.000000e+00> : vector<32xf32>
    %343 = vector.multi_reduction <add>, %342, %cst_98 [1] : vector<32x32xf32> to vector<32xf32>
    %344 = vector.shape_cast %343 : vector<32xf32> to vector<32x1xf32>
    %cst_99 = arith.constant 3.200000e+01 : f32
    %345 = vector.broadcast %cst_99 : f32 to vector<32x1xf32>
    %346 = arith.divf %344, %345 : vector<32x1xf32>
    %cst_100 = arith.constant 9.99999996E-13 : f32
    %347 = vector.broadcast %cst_100 : f32 to vector<32x1xf32>
    %348 = arith.addf %346, %347 : vector<32x1xf32>
    %349 = math.rsqrt %348 : vector<32x1xf32>
    %350 = vector.broadcast %349 : vector<32x1xf32> to vector<32x32xf32>
    %351 = arith.mulf %341, %350 : vector<32x32xf32>
    %352 = vector.broadcast %230 : vector<1x32xf32> to vector<32x32xf32>
    %353 = arith.mulf %351, %352 : vector<32x32xf32>
    %354 = vector.broadcast %231 : vector<1x32xf32> to vector<32x32xf32>
    %355 = arith.addf %353, %354 : vector<32x32xf32>
    %c0_101 = arith.constant 0 : index
    %c0_102 = arith.constant 0 : index
    %356 = vector.load %arg8[%c0_101, %c0_102] : memref<32x32xf32, #tpu.memory_space<vmem>>, vector<32x32xf32>
    tpu.vector_store %arg8[%c0_101, %c0_102], %355 {strides = array<i32>} : memref<32x32xf32, #tpu.memory_space<vmem>>, vector<32x32xf32>,
    return
  }
}

</mosaic_0001>

<bundles_post_ra>
// kernel: tpu_custom_call.1
= control target key start
LH: loop header
LB: loop body
LE: loop exit
PB: predicated region body
PF: predicated region fallthrough
CT: control target
= control target key end

     0   :  { %v2610_v1 = vmov 3   ;;  %v2611_v2 = vmov 1   ;;  %s3391_s0 = inlined_call_operand.vmem [shape: s32[32,8], index: 0, kind: input, shape index: {}]   ;;  %s3392_s1 = inlined_call_operand.vmem [shape: s32[2,10], index: 1, kind: input, shape index: {}]   ;;  %s3393_s2 = inlined_call_operand.vmem [shape: bf16[134,32], index: 2, kind: input, shape index: {}]   ;;  %s3394_s3 = inlined_call_operand.vmem [shape: f32[3,8,96], index: 3, kind: input, shape index: {}]   ;;  %s3395_s4 = inlined_call_operand.vmem [shape: bf16[2,32,96], index: 4, kind: input, shape index: {}]   ;;  %s3396_s5 = inlined_call_operand.vmem [shape: bf16[2,32,32], index: 5, kind: input, shape index: {}]   ;;  %s3397_s6 = inlined_call_operand.vmem [shape: bf16[2,32,64], index: 6, kind: input, shape index: {}]   ;;  %s3398_s7 = inlined_call_operand.vmem [shape: bf16[2,64,32], index: 7, kind: input, shape index: {}]   ;;  %s3399_s8 = inlined_call_operand.hbm [shape: f32[32,32], index: 8, kind: output, shape index: {}]  }
   0x1   :  { %v31_v0 = vld [vmem:[%s3391_s0] sm:$0xff]  ;;  %2435 = vset.pattern.permute.xlu0 %v2610_v1  ;;  %2433 = vset.pattern.permute.xlu1 %v2611_v2 }
   0x2   :  { %13 = vsyncpa [#allocation3], 0  ;;  %171 = vperm.xlu0 %2435, %v31_v0   ;;  %71 = vperm.xlu1 %2433, %v31_v0   ;;  %v2612_v3 = vmov 2   ;;  %v32_v4 = vld [vmem:[%s3391_s0 + $0x8] sm:$0xff]  ;;  %v2613_v5 = vmov 0   ;;  %vm39_vm0 = vcmp.gt.s32.totalorder %v31_v0, 0  ;;  %v35_v11 = vcvt.s32.f32 %v31_v0 }
   0x3   :  { %2434 = vset.pattern.permute.xlu2 %v2612_v3  ;;  %vm40_vm1 = vcmp.gt.s32.totalorder %v32_v4, 0  ;;  %v2614_v6 = vmov 1.0   ;;  %v2615_v10 = vmov 4   ;;  %v33_v12 = vld [vmem:[%s3391_s0 + $0x10] sm:$0xff]  ;;  %v36_v13 = vcvt.s32.f32 %v32_v4  ;;  %v34_v14 = vld [vmem:[%s3391_s0 + $0x18] sm:$0xff]  ;;  %v2392_v22 = vld [vmem:[%s3393_s2 + $0x28] sm:$0xff] }
   0x4   :  { %99 = vperm.xlu2 %2434, %v31_v0   ;;  %v43_v7 = vsel %vm39_vm0, 0.0, %v2614_v6  ;;  %v44_v8 = vsel %vm40_vm1, 0.0, %v2614_v6  ;;  %v38_v15 = vcvt.s32.f32 %v34_v14  ;;  %vm41_vm2 = vcmp.gt.s32.totalorder %v33_v12, 0  ;;  %v2394_v20 = vld [vmem:[%s3393_s2 + $0x38] sm:$0xff]  ;;  %v2393_v21 = vld [vmem:[%s3393_s2 + $0x30] sm:$0xff]  ;;  %v2391_v23 = vld [vmem:[%s3393_s2 + $0x20] sm:$0xff] }
   0x5   :  { %v2439_v9 = vpack.i.bf16 %v44_v8, %v43_v7  ;;  %vm42_vm3 = vcmp.gt.s32.totalorder %v34_v14, 0  ;;  %v45_v16 = vsel %vm41_vm2, 0.0, %v2614_v6  ;;  %v37_v19 = vcvt.s32.f32 %v33_v12  ;;  %332 = vmatpush.bf16.msra.mxu0 %v2394_v20  ;;  %v2390_v24 = vld [vmem:[%s3393_s2 + $0x18] sm:$0xff]  ;;  %v2389_v25 = vld [vmem:[%s3393_s2 + $0x10] sm:$0xff]  ;;  %v2388_v27 = vld [vmem:[%s3393_s2 + $0x8] sm:$0xff]  ;;  %s2618_s14 = smov 96  }
   0x6   :  { %v46_v17 = vsel %vm42_vm3, 0.0, %v2614_v6  ;;  %v264_v28 = vld [vmem:[%s3393_s2 + $0x40] sm:$0x7]  ;;  %vm328_vm4 = vcmask 1042432   ;;  %v47_v35 = vlaneseq  ;;  %v2616_v48 = vmov 0.0   ;;  %s2619_s15 = smov 80  }
   0x7   :  { %v2453_v18 = vpack.i.bf16 %v46_v17, %v45_v16  ;;  %v303_v29 = vunpack.c.l.b16 %v264_v28  ;;  %v2387_v30 = vld [vmem:[%s3393_s2] sm:$0xff]  ;;  %v3405_v17 = vmov 0  ;;  %s2620_s16 = smov 112   ;;  %s2623_s19 = smov 48  }
   0x8   :  { %v2712_v37 = vand.u32 127, %v47_v35  ;;  %s2177_s0 = sshll.u32 %s3399_s8, 4  ;;  %s2625_s13 = smov 128   ;;  %s2178_s0 = int_to_ptr.hbm [resolvable:$true] %s2177_s0 }
   0x9   :  { %333 = vmatpush.bf16.msra.mxu0 %v2393_v21  ;;  %v312_v31 = vpack.c.b16 %v303_v29, %v303_v29  ;;  %s2626_s17 = smov 8  }
   0xa   :  { %2436 = vset.pattern.permute.xlu0 %v2613_v5  ;;  %74 = vperm.xlu1 %2433, %v32_v4   ;;  %v2715_v40 = vadd.s32 128, %v2712_v37 }
   0xb   :  { %51 = vperm.xlu0 %2436, %v31_v0   ;;  %v330_v32 = vsel %vm328_vm4, %v312_v31, 0 }
   0xc   :  { %102 = vperm.xlu2 %2434, %v32_v4   ;;  %358 = vmatpush.bf16.msra.mxu1 %v330_v32 }
   0xd   :  { %334 = vmatpush.bf16.msra.mxu0 %v2392_v22  ;;  %2415 = vmatpush.bf16.msra.mxu3 %v330_v32 }
  0x11   :  { %335 = vmatpush.bf16.msra.mxu0 %v2391_v23 }
  0x12   :  { %2437 = vset.pattern.permute.xlu1 %v2610_v1 }
  0x13   :  { %54 = vperm.xlu0 %2436, %v32_v4   ;;  %174 = vperm.xlu1 %2437, %v32_v4  }
  0x14   :  { %2438 = vset.pattern.permute.xlu2 %v2615_v10 }
  0x15   :  { %2440 = vperm.xlu2 %2438, %v2439_v9   ;;  %336 = vmatpush.bf16.msra.mxu0 %v2390_v24 }
  0x19   :  { %337 = vmatpush.bf16.msra.mxu0 %v2389_v25 }
  0x1b   :  { %2444 = vset.pattern.permute.xlu1 %v2615_v10  ;;  %57 = vperm.xlu0 %2436, %v33_v12  }
  0x1c   :  { %208 = vperm.xlu1 %2444, %v35_v11  }
  0x1d   :  { %213 = vperm.xlu2 %2438, %v36_v13   ;;  %338 = vmatpush.bf16.msra.mxu0 %v2388_v27 }
  0x21   :  { %339 = vmatpush.bf16.msra.mxu0 %v2387_v30 }
  0x23   :  { %2449 = vset.pattern.permute.xlu0 %v2612_v3 }
  0x24   :  { %2445 = vset.pattern.permute.xlu1 %v2613_v5  ;;  %108 = vperm.xlu0 %2449, %v34_v14  }
  0x25   :  { %60 = vperm.xlu1 %2445, %v34_v14   ;;  %2446 = vset.pattern.permute.xlu2 %v2611_v2 }
  0x26   :  { %77 = vperm.xlu2 %2446, %v33_v12  }
  0x2c   :  { %2459 = vset.pattern.permute.xlu0 %v2615_v10 }
  0x2d   :  { %2447 = vset.pattern.permute.xlu1 %v2611_v2  ;;  %223 = vperm.xlu0 %2459, %v38_v15  }
  0x2e   :  { %80 = vperm.xlu1 %2447, %v34_v14   ;;  %2448 = vset.pattern.permute.xlu2 %v2612_v3 }
  0x2f   :  { %105 = vperm.xlu2 %2448, %v33_v12  }
  0x36   :  { %2450 = vset.pattern.permute.xlu1 %v2610_v1 }
  0x37   :  { %177 = vperm.xlu1 %2450, %v33_v12   ;;  %2451 = vset.pattern.permute.xlu2 %v2610_v1 }
  0x38   :  { %180 = vperm.xlu2 %2451, %v34_v14  }
  0x3f   :  { %2452 = vset.pattern.permute.xlu1 %v2615_v10 }
  0x40   :  { %2454 = vperm.xlu1 %2452, %v2453_v18   ;;  %2458 = vset.pattern.permute.xlu2 %v2615_v10 }
  0x41   :  { %218 = vperm.xlu2 %2458, %v37_v19  }
  0x5e   :  { %v100_v26 = vpop.permute.xlu2 %99 }
  0x5f   :  { %vm110_vm11 = vcmp.eq.s32.totalorder %v2712_v37, %v100_v26  ;;  %vm111_vm12 = vcmp.eq.s32.totalorder %v2715_v40, %v100_v26 }
  0x66   :  { %v103_v36 = vpop.permute.xlu2 %102 }
  0x67   :  { %vm112_vm4 = vcmp.eq.s32.totalorder %v2712_v37, %v103_v36 }
  0x6f   :  { %v2441_v41 = vpop.permute.xlu2 %2440 }
  0x70   :  { %v2443_v46 = vunpack.i.h.bf16 %v2441_v41  ;;  %v2442_v47 = vunpack.i.l.bf16 %v2441_v41 }
  0x74   :  { %v72_v33 = vpop.permute.xlu1 %71  ;;  %v172_v34 = vpop.permute.xlu0 %171 }
  0x75   :  { %vm82_vm7 = vcmp.eq.s32.totalorder %v2712_v37, %v72_v33  ;;  %vm83_vm8 = vcmp.eq.s32.totalorder %v2715_v40, %v72_v33 }
  0x77   :  { %v2748_v52 = vpop.permute.xlu2 %213 }
  0x7c   :  { %v75_v38 = vpop.permute.xlu1 %74 }
  0x7d   :  { %v52_v39 = vpop.permute.xlu0 %51  ;;  %vm84_vm14 = vcmp.eq.s32.totalorder %v2712_v37, %v75_v38  ;;  %vm85_vm2 = vcmp.eq.s32.totalorder %v2715_v40, %v75_v38 }
  0x7e   :  { %vm62_vm5 = vcmp.eq.s32.totalorder %v2712_v37, %v52_v39  ;;  %vm63_vm6 = vcmp.eq.s32.totalorder %v2715_v40, %v52_v39 }
  0x7f   :  { %vm90_vm9 = vmor %vm62_vm5, %vm82_vm7 }
  0x80   :  { %vm91_vm10 = vmor %vm63_vm6, %vm83_vm8  ;;  %vm113_vm6 = vcmp.eq.s32.totalorder %v2715_v40, %v103_v36  ;;  %v78_v9 = vpop.permute.xlu2 %77 }
  0x81   :  { %vm2723_vm13 = vmor %vm90_vm9, %vm110_vm11 }
  0x82   :  { %vm2728_vm15 = vmor %vm91_vm10, %vm111_vm12  ;;  %vm182_vm10 = vcmp.eq.s32.totalorder %v2712_v37, %v172_v34  ;;  %vm183_vm12 = vcmp.eq.s32.totalorder %v2715_v40, %v172_v34  ;;  %v2189_v50 = vsel %vm2723_vm13, 1.0, %v2616_v48  ;;  %vm3400_vm13 = vcmask 48128  }
  0x83   :  { %v2190_v51 = vsel %vm2728_vm15, 1.0, %v2616_v48  ;;  %v2197_v58 = vsel %vm182_vm10, 1.0, %v2616_v48  ;;  %v2198_v59 = vsel %vm183_vm12, 1.0, %v2616_v48  ;;  %v162_v62 = vmul.f32 %v2442_v47, %v2189_v50 }
  0x84   :  { %v163_v60 = vmul.f32 %v2442_v47, %v2190_v51  ;;  %v2796_v47 = vld [vmem:[%s3394_s3 + $0x10] sm:$0xff] }
  0x85   :  { %v55_v43 = vpop.permute.xlu0 %54  ;;  %v175_v44 = vpop.permute.xlu1 %174 }
  0x86   :  { %vm64_vm0 = vcmp.eq.s32.totalorder %v2712_v37, %v55_v43  ;;  %vm65_vm1 = vcmp.eq.s32.totalorder %v2715_v40, %v55_v43  ;;  %vm184_vm8 = vcmp.eq.s32.totalorder %v2712_v37, %v175_v44  ;;  %vm185_vm9 = vcmp.eq.s32.totalorder %v2715_v40, %v175_v44 }
  0x87   :  { %vm92_vm3 = vmor %vm64_vm0, %vm84_vm14  ;;  %v2199_v54 = vsel %vm184_vm8, 1.0, %v2616_v48  ;;  %v2200_v55 = vsel %vm185_vm9, 1.0, %v2616_v48  ;;  %vm86_vm14 = vcmp.eq.s32.totalorder %v2712_v37, %v78_v9  ;;  %vm87_vm0 = vcmp.eq.s32.totalorder %v2715_v40, %v78_v9 }
  0x88   :  { %vm93_vm5 = vmor %vm65_vm1, %vm85_vm2  ;;  %v228_v63 = vmul.f32 %v2199_v54, %v2748_v52  ;;  %v229_v0 = vmul.f32 %v2200_v55, %v2748_v52 }
  0x89   :  { %vm120_vm7 = vmor %vm92_vm3, %vm112_vm4  ;;  %v106_v11 = vpop.permute.xlu2 %105 }
  0x8a   :  { %vm121_vm11 = vmor %vm93_vm5, %vm113_vm6  ;;  %v2191_v49 = vsel %vm120_vm7, 1.0, %v2616_v48  ;;  %vm114_vm3 = vcmp.eq.s32.totalorder %v2712_v37, %v106_v11  ;;  %vm115_vm7 = vcmp.eq.s32.totalorder %v2715_v40, %v106_v11 }
  0x8b   :  { %v2192_v53 = vsel %vm121_vm11, 1.0, %v2616_v48  ;;  %v164_v57 = vmul.f32 %v2443_v46, %v2191_v49  ;;  %v265_v49 = vperm.slane %v2796_v47, 0 }
  0x8c   :  { %v165_v56 = vmul.f32 %v2443_v46, %v2192_v53 }
  0x8d   :  { %v236_v6 = vadd.f32 %v228_v63, %v164_v57  ;;  %v58_v12 = vpop.permute.xlu0 %57  ;;  %v267_v57 = vmul.f32 %v265_v49, %v2748_v52 }
  0x8e   :  { %v2755_v61 = vpop.permute.xlu1 %208  ;;  %v237_v3 = vadd.f32 %v229_v0, %v165_v56  ;;  %vm66_vm15 = vcmp.eq.s32.totalorder %v2712_v37, %v58_v12  ;;  %vm67_vm1 = vcmp.eq.s32.totalorder %v2715_v40, %v58_v12 }
  0x8f   :  { %v226_v1 = vmul.f32 %v2197_v58, %v2755_v61  ;;  %v227_v2 = vmul.f32 %v2198_v59, %v2755_v61  ;;  %vm94_vm2 = vmor %vm66_vm15, %vm86_vm14  ;;  %v266_v50 = vmul.f32 %v265_v49, %v2755_v61 }
  0x90   :  { %vm95_vm5 = vmor %vm67_vm1, %vm87_vm0 }
  0x91   :  { %v235_v4 = vadd.f32 %v227_v2, %v163_v60  ;;  %v234_v5 = vadd.f32 %v226_v1, %v162_v62  ;;  %vm2770_vm8 = vmor %vm94_vm2, %vm114_vm3 }
  0x92   :  { %v181_v14 = vpop.permute.xlu2 %180  ;;  %v3406_v17 = vsel %vm2770_vm8, 4294967295, %v3405_v17  ;;  %vm123_vm3 = vmor %vm95_vm5, %vm115_vm7  ;;  %vm370_vm5 = vcmask 261120  }
  0x93   :  { %v242_v7 = vpack.c.bf16 %v236_v6, %v234_v5  ;;  %v243_v8 = vpack.c.bf16 %v237_v3, %v235_v4  ;;  %vm188_vm14 = vcmp.eq.s32.totalorder %v2712_v37, %v181_v14  ;;  %vm189_vm15 = vcmp.eq.s32.totalorder %v2715_v40, %v181_v14 }
  0x94   :  { %v2203_v18 = vsel %vm188_vm14, 1.0, %v2616_v48  ;;  %v2204_v19 = vsel %vm189_vm15, 1.0, %v2616_v48  ;;  %v2194_v25 = vsel %vm123_vm3, 1.0, %v2616_v48 }
  0x95   :  { %340 = vmatmul.bf16.vlgmr.msra.gmra.mxu0 %v242_v7  ;;  %2238 = vmatmul.msk.bf16.vlgmr.msra.gmra.mxu1 %vm3400_vm13, %v243_v8 }
  0x96   :  { %v109_v15 = vpop.permute.xlu0 %108 }
  0x97   :  { %v61_v10 = vpop.permute.xlu1 %60  ;;  %vm116_vm12 = vcmp.eq.s32.totalorder %v2712_v37, %v109_v15  ;;  %vm117_vm1 = vcmp.eq.s32.totalorder %v2715_v40, %v109_v15 }
  0x98   :  { %vm68_vm9 = vcmp.eq.s32.totalorder %v2712_v37, %v61_v10  ;;  %vm69_vm10 = vcmp.eq.s32.totalorder %v2715_v40, %v61_v10  ;;  %v2617_v10 = vmov 32.0  }
  0x99   :  { %2460 = vrcp.f32 %v2617_v10 }
  0x9b   :  { %v219_v23 = vpop.permute.xlu2 %218 }
  0x9c   :  { %v268_v1 = vmul.f32 %v265_v49, %v219_v23 }
  0x9f   :  { %v224_v20 = vpop.permute.xlu0 %223  ;;  %v2461_v11 = vpop.eup %2460 }
  0xa0   :  { %v81_v13 = vpop.permute.xlu1 %80  ;;  %v232_v27 = vmul.f32 %v2203_v18, %v224_v20  ;;  %v233_v28 = vmul.f32 %v2204_v19, %v224_v20  ;;  %v269_v6 = vmul.f32 %v265_v49, %v224_v20  ;;  %v384_v12 = vmul.f32 32.0, %v2461_v11 }
  0xa1   :  { %vm88_vm4 = vcmp.eq.s32.totalorder %v2712_v37, %v81_v13  ;;  %vm89_vm6 = vcmp.eq.s32.totalorder %v2715_v40, %v81_v13  ;;  %vm388_vm7 = vweird.f32 %v2461_v11 }
  0xa2   :  { %vm96_vm11 = vmor %vm68_vm9, %vm88_vm4  ;;  %v385_v13 = vsub.f32 1.0, %v384_v12 }
  0xa3   :  { %vm97_vm0 = vmor %vm69_vm10, %vm89_vm6  ;;  %vm3407_vm6 = vnez %v3406_v17 }
  0xa4   :  { %vm124_vm8 = vmor %vm96_vm11, %vm116_vm12  ;;  %v2193_v24 = vsel %vm3407_vm6, 1.0, %v2616_v48  ;;  %v386_v14 = vmul.f32 %v2461_v11, %v385_v13 }
  0xa5   :  { %vm125_vm4 = vmor %vm97_vm0, %vm117_vm1  ;;  %v2195_v31 = vsel %vm124_vm8, 1.0, %v2616_v48 }
  0xa6   :  { %v2196_v32 = vsel %vm125_vm4, 1.0, %v2616_v48  ;;  %v387_v15 = vadd.f32 %v2461_v11, %v386_v14 }
  0xa9   :  { %v178_v16 = vpop.permute.xlu1 %177 }
  0xaa   :  { %vm186_vm13 = vcmp.eq.s32.totalorder %v2712_v37, %v178_v16  ;;  %vm187_vm2 = vcmp.eq.s32.totalorder %v2715_v40, %v178_v16  ;;  %v2805_v16 = vsel %vm388_vm7, %v2461_v11, %v387_v15 }
  0xab   :  { %v2201_v21 = vsel %vm186_vm13, 1.0, %v2616_v48  ;;  %v2202_v22 = vsel %vm187_vm2, 1.0, %v2616_v48  ;;  %vm3408_vm13 = vcmask 48128  }
  0xac   :  { %v230_v33 = vmul.f32 %v2201_v21, %v219_v23  ;;  %v231_v34 = vmul.f32 %v2202_v22, %v219_v23 }
  0xb2   :  { %v2455_v26 = vpop.permute.xlu1 %2454 }
  0xb3   :  { %v2457_v29 = vunpack.i.h.bf16 %v2455_v26  ;;  %v2456_v30 = vunpack.i.l.bf16 %v2455_v26 }
  0xb5   :  { %v168_v36 = vmul.f32 %v2457_v29, %v2195_v31  ;;  %v169_v38 = vmul.f32 %v2457_v29, %v2196_v32  ;;  %v166_v39 = vmul.f32 %v2456_v30, %v2193_v24  ;;  %v167_v40 = vmul.f32 %v2456_v30, %v2194_v25 }
  0xb7   :  { %v241_v41 = vadd.f32 %v233_v28, %v169_v38  ;;  %v239_v42 = vadd.f32 %v231_v34, %v167_v40  ;;  %v238_v43 = vadd.f32 %v230_v33, %v166_v39  ;;  %v240_v44 = vadd.f32 %v232_v27, %v168_v36  ;;  %v2396_v39 = vld [vmem:[%s3395_s4 + $0x8] sm:$0xff] }
  0xb8   :  { %592 = vmatpush.bf16.msrb.mxu3 %v2396_v39 }
  0xb9   :  { %v244_v45 = vpack.c.bf16 %v240_v44, %v238_v43  ;;  %v245_v46 = vpack.c.bf16 %v241_v41, %v239_v42  ;;  %v2395_v42 = vld [vmem:[%s3395_s4] sm:$0xff] }
  0xbb   :  { %345 = vmatmul.bf16.gmra.mxu0 %v244_v45  ;;  %2239 = vmatmul.msk.bf16.vlgmr.msra.gmra.mxu3 %vm3408_vm13, %v245_v46 }
  0xbc   :  { %593 = vmatpush.bf16.msrb.mxu3 %v2395_v42 }
 0x112   :  { %v341_v51 = vpop.f32.mrf.mxu0  ;;  %v360_v53 = vpop.f32.mrf.mxu1 }
 0x113   :  { %v342_v54 = vadd.f32 %v341_v51, %v266_v50 }
 0x115   :  { %v361_v55 = vadd.f32 %v360_v53, %v342_v54 }
 0x117   :  { %v371_v56 = vsel %vm370_vm5, %v361_v55, 0.0 }
 0x118   :  { %372 = vadd.xlane.f32.xlu1 %v371_v56 }
 0x11a   :  { %v343_v58 = vpop.f32.mrf.mxu0  ;;  %v362_v60 = vpop.f32.mrf.mxu1 }
 0x11b   :  { %v344_v59 = vadd.f32 %v343_v58, %v267_v57 }
 0x11d   :  { %v363_v62 = vadd.f32 %v362_v60, %v344_v59 }
 0x11f   :  { %v374_v63 = vsel %vm370_vm5, %v363_v62, 0.0 }
 0x120   :  { %375 = vadd.xlane.f32.xlu2 %v374_v63  ;;  %v466_v63 = vperm.slane %v2796_v47, 1 }
 0x138   :  { %v346_v0 = vpop.f32.mrf.mxu0 }
 0x139   :  { %v347_v61 = vadd.f32 %v346_v0, %v268_v1 }
 0x13e   :  { %v365_v2 = vpop.f32.mrf.mxu3 }
 0x13f   :  { %v366_v3 = vadd.f32 %v365_v2, %v347_v61  ;;  %v471_v2 = vperm.slane %v2796_v47, 2 }
 0x140   :  { %v348_v5 = vpop.f32.mrf.mxu0 }
 0x141   :  { %v377_v4 = vsel %vm370_vm5, %v366_v3, 0.0  ;;  %v349_v7 = vadd.f32 %v348_v5, %v269_v6 }
 0x142   :  { %378 = vadd.xlane.f32.xlu0 %v377_v4 }
 0x146   :  { %v367_v8 = vpop.f32.mrf.mxu3 }
 0x147   :  { %v368_v52 = vadd.f32 %v367_v8, %v349_v7 }
 0x149   :  { %v380_v9 = vsel %vm370_vm5, %v368_v52, 0.0 }
 0x14a   :  { %381 = vadd.xlane.f32.xlu2 %v380_v9 }
 0x18b   :  { %v373_v17 = vpop.xlane.xlu1 %372 }
 0x18c   :  { %v390_v18 = vmul.f32 %v2805_v16, %v373_v17 }
 0x18e   :  { %v394_v19 = vsub.f32 %v361_v55, %v390_v18 }
 0x190   :  { %v398_v20 = vmul.f32 %v394_v19, %v394_v19 }
 0x192   :  { %v402_v21 = vsel %vm370_vm5, %v398_v20, 0.0 }
 0x193   :  { %v376_v22 = vpop.xlane.xlu2 %375  ;;  %403 = vadd.xlane.f32.xlu1 %v402_v21 }
 0x194   :  { %v391_v23 = vmul.f32 %v2805_v16, %v376_v22 }
 0x196   :  { %v395_v24 = vsub.f32 %v363_v62, %v391_v23 }
 0x198   :  { %v399_v25 = vmul.f32 %v395_v24, %v395_v24 }
 0x19a   :  { %v405_v26 = vsel %vm370_vm5, %v399_v25, 0.0 }
 0x19b   :  { %406 = vadd.xlane.f32.xlu2 %v405_v26 }
 0x1b5   :  { %v379_v27 = vpop.xlane.xlu0 %378 }
 0x1b6   :  { %v392_v28 = vmul.f32 %v2805_v16, %v379_v27 }
 0x1b8   :  { %v2812_v29 = vsub.f32 %v366_v3, %v392_v28 }
 0x1ba   :  { %v400_v30 = vmul.f32 %v2812_v29, %v2812_v29 }
 0x1bc   :  { %v408_v31 = vsel %vm370_vm5, %v400_v30, 0.0 }
 0x1bd   :  { %v382_v32 = vpop.xlane.xlu2 %381  ;;  %409 = vadd.xlane.f32.xlu1 %v408_v31 }
 0x1be   :  { %v393_v33 = vmul.f32 %v2805_v16, %v382_v32 }
 0x1c0   :  { %v2818_v34 = vsub.f32 %v368_v52, %v393_v33 }
 0x1c2   :  { %v401_v36 = vmul.f32 %v2818_v34, %v2818_v34 }
 0x1c4   :  { %v411_v38 = vsel %vm370_vm5, %v401_v36, 0.0 }
 0x1c5   :  { %412 = vadd.xlane.f32.xlu2 %v411_v38 }
 0x206   :  { %v404_v40 = vpop.xlane.xlu1 %403 }
 0x207   :  { %v414_v41 = vmul.f32 %v404_v40, %v2805_v16 }
 0x209   :  { %v418_v43 = vadd.f32 1e-12, %v414_v41 }
 0x20b   :  { %2462 = vrsqrt.f32 %v418_v43  ;;  %vm428_vm9 = vweird.f32 %v418_v43 }
 0x20e   :  { %v407_v44 = vpop.xlane.xlu2 %406 }
 0x20f   :  { %v415_v45 = vmul.f32 %v407_v44, %v2805_v16 }
 0x211   :  { %v2463_v46 = vpop.eup %2462  ;;  %v419_v49 = vadd.f32 1e-12, %v415_v45 }
 0x212   :  { %v423_v50 = vmul.f32 %v2463_v46, %v418_v43  ;;  %vm429_vm8 = vweird.f32 %v2463_v46 }
 0x213   :  { %2464 = vrsqrt.f32 %v419_v49  ;;  %vm430_vm10 = vmor %vm428_vm9, %vm429_vm8  ;;  %vm438_vm12 = vweird.f32 %v419_v49  ;;  %vm512_vm9 = vcmask 80896  }
 0x214   :  { %v424_v51 = vmul.f32 %v2463_v46, %v423_v50 }
 0x216   :  { %v425_v53 = vmul.f32 0.5, %v424_v51  ;;  %v476_v51 = vld [vmem:[%s3392_s1] sm:$0x3]  ;;  %s2622_s1 = smov 64  }
 0x218   :  { %v426_v54 = vsub.f32 1.5, %v425_v53  ;;  %v478_v53 = vshrl.u32 %v47_v35, 7 }
 0x219   :  { %v2465_v55 = vpop.eup %2464 }
 0x21a   :  { %v427_v56 = vmul.f32 %v2463_v46, %v426_v54  ;;  %v433_v57 = vmul.f32 %v2465_v55, %v419_v49  ;;  %vm439_vm11 = vweird.f32 %v2465_v55  ;;  %v497_v54 = vperm.slane %v476_v51, 1 }
 0x21b   :  { %vm440_vm14 = vmor %vm438_vm12, %vm439_vm11 }
 0x21c   :  { %v434_v58 = vmul.f32 %v2465_v55, %v433_v57  ;;  %v431_v59 = vsel %vm430_vm10, %v2463_v46, %v427_v56  ;;  %v2879_v56 = vadd.s32 24, %v478_v53  ;;  %v2881_v57 = vadd.s32 8, %v478_v53 }
 0x21d   :  { %v462_v0 = vmul.f32 %v431_v59, %v394_v19  ;;  %vm498_vm7 = vcmp.eq.s32.totalorder %v478_v53, %v497_v54 }
 0x21e   :  { %v435_v60 = vmul.f32 0.5, %v434_v58  ;;  %vm501_vm13 = vcmp.eq.s32.totalorder %v2879_v56, %v497_v54  ;;  %vm499_vm8 = vcmp.eq.s32.totalorder %v2881_v57, %v497_v54 }
 0x21f   :  { %v467_v4 = vmul.f32 %v466_v63, %v462_v0  ;;  %v2247_v59 = vsel %vm501_vm13, 1.0, %v2616_v48  ;;  %v482_v0 = vperm.slane %v476_v51, 0 }
 0x220   :  { %v436_v62 = vsub.f32 1.5, %v435_v60  ;;  %v2244_v60 = vsel %vm498_vm7, 1.0, %v2616_v48 }
 0x221   :  { %v2833_v6 = vadd.f32 %v471_v2, %v467_v4  ;;  %vm483_vm10 = vcmp.eq.s32.totalorder %v478_v53, %v482_v0  ;;  %vm484_vm11 = vcmp.eq.s32.totalorder %v2881_v57, %v482_v0 }
 0x222   :  { %v437_v1 = vmul.f32 %v2465_v55, %v436_v62  ;;  %v2245_v62 = vsel %vm499_vm8, 1.0, %v2616_v48 }
 0x224   :  { %v441_v61 = vsel %vm440_vm14, %v2465_v55, %v437_v1  ;;  %v2877_v55 = vadd.s32 16, %v478_v53  ;;  %v510_v1 = vpack.c.bf16 %v2245_v62, %v2244_v60  ;;  %vm486_vm14 = vcmp.eq.s32.totalorder %v2879_v56, %v482_v0 }
 0x225   :  { %v463_v3 = vmul.f32 %v441_v61, %v395_v24 }
 0x226   :  { %vm500_vm6 = vcmp.eq.s32.totalorder %v2877_v55, %v497_v54  ;;  %v520_v61 = vsel %vm512_vm9, %v510_v1, 0  ;;  %vm485_vm12 = vcmp.eq.s32.totalorder %v2877_v55, %v482_v0  ;;  %vm550_vm7 = vcmp.eq.s32.totalorder %v2877_v55, %v2712_v37 }
 0x227   :  { %v468_v5 = vmul.f32 %v466_v63, %v463_v3  ;;  %v2246_v58 = vsel %vm500_vm6, 1.0, %v2616_v48  ;;  %v2241_v3 = vsel %vm484_vm11, 1.0, %v2616_v48 }
 0x228   :  { %v511_v35 = vpack.c.bf16 %v2247_v59, %v2246_v58 }
 0x229   :  { %v2835_v7 = vadd.f32 %v471_v2, %v468_v5  ;;  %v2242_v5 = vsel %vm485_vm12, 1.0, %v2616_v48 }
 0x22b   :  { %v561_v8 = vpack.c.bf16 %v2835_v7, %v2833_v6 }
 0x22d   :  { %2258 = vmatmul.msk.bf16.vlgmr.msrb.gmra.mxu3 %vm370_vm5, %v561_v8  ;;  %v2243_v8 = vsel %vm486_vm14, 1.0, %v2616_v48 }
 0x230   :  { %v410_v52 = vpop.xlane.xlu1 %409 }
 0x231   :  { %v416_v9 = vmul.f32 %v410_v52, %v2805_v16  ;;  %v496_v52 = vpack.c.bf16 %v2243_v8, %v2242_v5 }
 0x233   :  { %v420_v10 = vadd.f32 1e-12, %v416_v9 }
 0x235   :  { %2466 = vrsqrt.f32 %v420_v10  ;;  %vm448_vm0 = vweird.f32 %v420_v10 }
 0x238   :  { %v413_v11 = vpop.xlane.xlu2 %412 }
 0x239   :  { %v417_v47 = vmul.f32 %v413_v11, %v2805_v16 }
 0x23b   :  { %v2467_v12 = vpop.eup %2466  ;;  %v421_v13 = vadd.f32 1e-12, %v417_v47 }
 0x23c   :  { %v443_v14 = vmul.f32 %v2467_v12, %v420_v10  ;;  %vm449_vm15 = vweird.f32 %v2467_v12 }
 0x23d   :  { %2468 = vrsqrt.f32 %v421_v13  ;;  %vm450_vm1 = vmor %vm448_vm0, %vm449_vm15  ;;  %vm458_vm3 = vweird.f32 %v421_v13  ;;  %vm617_vm15 = vcmask 130048  }
 0x23e   :  { %v444_v15 = vmul.f32 %v2467_v12, %v443_v14 }
 0x240   :  { %v445_v17 = vmul.f32 0.5, %v444_v15 }
 0x242   :  { %v446_v18 = vsub.f32 1.5, %v445_v17 }
 0x243   :  { %v2469_v19 = vpop.eup %2468 }
 0x244   :  { %v447_v20 = vmul.f32 %v2467_v12, %v446_v18  ;;  %v453_v21 = vmul.f32 %v2469_v19, %v421_v13  ;;  %vm459_vm2 = vweird.f32 %v2469_v19 }
 0x245   :  { %vm460_vm4 = vmor %vm458_vm3, %vm459_vm2 }
 0x246   :  { %v454_v22 = vmul.f32 %v2469_v19, %v453_v21  ;;  %v451_v23 = vsel %vm450_vm1, %v2467_v12, %v447_v20  ;;  %vm548_vm1 = vcmp.eq.s32.totalorder %v478_v53, %v2712_v37 }
 0x247   :  { %v464_v26 = vmul.f32 %v451_v23, %v2812_v29  ;;  %v2854_v29 = vld [vmem:[%s3394_s3] sm:$0xff] }
 0x248   :  { %v455_v24 = vmul.f32 0.5, %v454_v22  ;;  %v567_v40 = vperm.slane %v2854_v29, 0  ;;  %v2621_v22 = vmov -1e+09  }
 0x249   :  { %v469_v31 = vmul.f32 %v466_v63, %v464_v26 }
 0x24a   :  { %v456_v25 = vsub.f32 1.5, %v455_v24 }
 0x24b   :  { %v2844_v33 = vadd.f32 %v471_v2, %v469_v31 }
 0x24c   :  { %v457_v27 = vmul.f32 %v2469_v19, %v456_v25 }
 0x24e   :  { %v461_v28 = vsel %vm460_vm4, %v2469_v19, %v457_v27  ;;  %vm549_vm4 = vcmp.eq.s32.totalorder %v2881_v57, %v2712_v37 }
 0x24f   :  { %v465_v30 = vmul.f32 %v461_v28, %v2818_v34 }
 0x251   :  { %v470_v32 = vmul.f32 %v466_v63, %v465_v30  ;;  %v523_v63 = vsel %vm512_vm9, %v511_v35, 0 }
 0x252   :  { %531 = vmatpush.bf16.xpose.msra.mxu2 %v523_v63 }
 0x253   :  { %v2846_v36 = vadd.f32 %v471_v2, %v470_v32  ;;  %v2240_v2 = vsel %vm483_vm10, 1.0, %v2616_v48  ;;  %vm551_vm10 = vcmp.eq.s32.totalorder %v2879_v56, %v2712_v37 }
 0x254   :  { %v495_v4 = vpack.c.bf16 %v2241_v3, %v2240_v2 }
 0x255   :  { %v562_v38 = vpack.c.bf16 %v2846_v36, %v2844_v33 }
 0x257   :  { %2259 = vmatmul.msk.bf16.gmra.mxu3 %vm370_vm5, %v562_v38 }
 0x25a   :  { %532 = vmatpush.bf16.xpose.msra.mxu2 %v520_v61 }
 0x261   :  { %2248 = vmatmul.msk.bf16.vlgmr.msra.gmra.mxu2 %vm512_vm9, %v495_v4 }
 0x271   :  { %2249 = vmatmul.msk.bf16.gmra.mxu2 %vm512_vm9, %v496_v52 }
 0x2b0   :  { %v595_v39 = vpop.f32.mrf.mxu3 }
 0x2b1   :  { %v596_v41 = vadd.f32 %v595_v39, %v567_v40 }
 0x2b8   :  { %v597_v34 = vpop.f32.mrf.mxu3 }
 0x2b9   :  { %v598_v42 = vadd.f32 %v597_v34, %v567_v40 }
 0x2bb   :  { %v2857_v43 = vpack.c.bf16 %v598_v42, %v596_v41 }
 0x2bd   :  { %613 = vrot.lane.b32.xlu2 %v2857_v43, %s2618_s14 }
 0x2da   :  { %v600_v44 = vpop.f32.mrf.mxu3 }
 0x2db   :  { %v601_v46 = vadd.f32 %v600_v44, %v567_v40 }
 0x2e2   :  { %v602_v45 = vpop.f32.mrf.mxu3 }
 0x2e3   :  { %v603_v49 = vadd.f32 %v602_v45, %v567_v40 }
 0x2e4   :  { %v534_v18 = vpop.f32.mrf.mxu2 }
 0x2e5   :  { %v2861_v50 = vpack.c.bf16 %v603_v49, %v601_v46  ;;  %vm544_vm0 = vcmp.gt.f32.partialorder %v534_v18, 0.5 }
 0x2e6   :  { %vm552_vm2 = vmor %vm544_vm0, %vm548_vm1 }
 0x2e7   :  { %786 = vrot.lane.b32.xlu1 %v2861_v50, %s2619_s15  ;;  %615 = vrot.lane.b32.xlu0 %v2861_v50, %s2618_s14  ;;  %v2912_v23 = vsel %vm552_vm2, 0.0, %v2621_v22 }
 0x2ec   :  { %v536_v19 = vpop.f32.mrf.mxu2 }
 0x2ed   :  { %vm545_vm3 = vcmp.gt.f32.partialorder %v536_v19, 0.5 }
 0x2ee   :  { %vm553_vm6 = vmor %vm545_vm3, %vm549_vm4 }
 0x2ef   :  { %780 = vrot.lane.b32.xlu1 %v2857_v43, %s2620_s16  ;;  %784 = vrot.lane.b32.xlu0 %v2857_v43, %s2619_s15  ;;  %v2919_v30 = vsel %vm553_vm6, 0.0, %v2621_v22 }
 0x2f4   :  { %v539_v20 = vpop.f32.mrf.mxu2 }
 0x2f5   :  { %vm546_vm13 = vcmp.gt.f32.partialorder %v539_v20, 0.5 }
 0x2f6   :  { %vm554_vm8 = vmor %vm546_vm13, %vm550_vm7 }
 0x2f7   :  { %782 = vrot.lane.b32.xlu0 %v2861_v50, %s2620_s16  ;;  %v2927_v41 = vsel %vm554_vm8, 0.0, %v2621_v22 }
 0x2fc   :  { %v541_v21 = vpop.f32.mrf.mxu2 }
 0x2fd   :  { %vm547_vm9 = vcmp.gt.f32.partialorder %v541_v21, 0.5 }
 0x2fe   :  { %vm555_vm11 = vmor %vm547_vm9, %vm551_vm10 }
 0x2ff   :  { %v2938_v53 = vsel %vm555_vm11, 0.0, %v2621_v22 }
 0x317   :  { %v614_v12 = vpop.permute.xlu2 %613 }
 0x318   :  { %v625_v14 = vsel %vm617_vm15, %v614_v12, 0 }
 0x359   :  { %v787_v9 = vpop.permute.xlu1 %786  ;;  %v616_v10 = vpop.permute.xlu0 %615 }
 0x35a   :  { %v628_v11 = vsel %vm617_vm15, %v616_v10, 0  ;;  %v798_v47 = vsel %vm617_vm15, %v787_v9, 0 }
 0x35b   :  { %636 = vmatpush.bf16.xpose.msrb.mxu1 %v628_v11  ;;  %806 = vmatpush.bf16.xpose.msrb.mxu2 %v798_v47 }
 0x361   :  { %v785_v13 = vpop.permute.xlu0 %784  ;;  %v781_v48 = vpop.permute.xlu1 %780 }
 0x362   :  { %v795_v15 = vsel %vm617_vm15, %v785_v13, 0 }
 0x363   :  { %637 = vmatpush.bf16.xpose.msrb.mxu1 %v625_v14  ;;  %807 = vmatpush.bf16.xpose.msrb.mxu2 %v795_v15 }
 0x369   :  { %v783_v17 = vpop.permute.xlu0 %782 }
 0x36a   :  { %2260 = vmatmul.msk.bf16.vlgmr.msrb.gmra.mxu1 %vm617_vm15, %v2857_v43  ;;  %2264 = vmatmul.msk.bf16.vlgmr.msrb.gmra.mxu2 %vm617_vm15, %v781_v48 }
 0x37a   :  { %2261 = vmatmul.msk.bf16.gmra.mxu1 %vm617_vm15, %v2861_v50  ;;  %2265 = vmatmul.msk.bf16.gmra.mxu2 %vm617_vm15, %v783_v17 }
 0x3e7   :  { %v639_v24 = vpop.f32.mrf.mxu1 }
 0x3e8   :  { %v640_v25 = vadd.f32 %v639_v24, %v2912_v23 }
 0x3ea   :  { %v649_v26 = vsel %vm370_vm5, %v640_v25, -inf }
 0x3eb   :  { %650 = vmax.xlane.f32.xlu2 %v649_v26 }
 0x3ed   :  { %v809_v27 = vpop.f32.mrf.mxu2 }
 0x3ee   :  { %v810_v28 = vadd.f32 %v809_v27, %v2912_v23 }
 0x3ef   :  { %v641_v31 = vpop.f32.mrf.mxu1 }
 0x3f0   :  { %v642_v32 = vadd.f32 %v641_v31, %v2919_v30  ;;  %v819_v38 = vsel %vm370_vm5, %v810_v28, -inf }
 0x3f1   :  { %820 = vmax.xlane.f32.xlu0 %v819_v38 }
 0x3f2   :  { %v652_v39 = vsel %vm370_vm5, %v642_v32, -inf }
 0x3f3   :  { %653 = vmax.xlane.f32.xlu1 %v652_v39 }
 0x3f5   :  { %v811_v40 = vpop.f32.mrf.mxu2 }
 0x3f6   :  { %v812_v34 = vadd.f32 %v811_v40, %v2919_v30 }
 0x3f7   :  { %v644_v42 = vpop.f32.mrf.mxu1 }
 0x3f8   :  { %v2930_v44 = vadd.f32 %v644_v42, %v2927_v41  ;;  %v822_v45 = vsel %vm370_vm5, %v812_v34, -inf }
 0x3f9   :  { %823 = vmax.xlane.f32.xlu2 %v822_v45 }
 0x3fa   :  { %v655_v46 = vsel %vm370_vm5, %v2930_v44, -inf }
 0x3fb   :  { %656 = vmax.xlane.f32.xlu1 %v655_v46 }
 0x3fd   :  { %v814_v49 = vpop.f32.mrf.mxu2 }
 0x3fe   :  { %v815_v51 = vadd.f32 %v814_v49, %v2927_v41 }
 0x3ff   :  { %v646_v54 = vpop.f32.mrf.mxu1 }
 0x400   :  { %v647_v55 = vadd.f32 %v646_v54, %v2938_v53  ;;  %v825_v57 = vsel %vm370_vm5, %v815_v51, -inf }
 0x401   :  { %826 = vmax.xlane.f32.xlu2 %v825_v57 }
 0x402   :  { %v658_v58 = vsel %vm370_vm5, %v647_v55, -inf }
 0x403   :  { %659 = vmax.xlane.f32.xlu0 %v658_v58 }
 0x405   :  { %v816_v37 = vpop.f32.mrf.mxu2 }
 0x406   :  { %v817_v56 = vadd.f32 %v816_v37, %v2938_v53 }
 0x408   :  { %v828_v59 = vsel %vm370_vm5, %v817_v56, -inf }
 0x409   :  { %829 = vmax.xlane.f32.xlu1 %v828_v59 }
 0x45e   :  { %v651_v35 = vpop.xlane.xlu2 %650 }
 0x45f   :  { %v661_v60 = vsub.f32 %v640_v25, %v651_v35 }
 0x461   :  { %v665_v62 = vmul.f32 1.442695, %v661_v60 }
 0x463   :  { %2470 = vpow2.f32 %v665_v62 }
 0x464   :  { %v821_v63 = vpop.xlane.xlu0 %820 }
 0x465   :  { %v831_v0 = vsub.f32 %v810_v28, %v821_v63 }
 0x466   :  { %v654_v1 = vpop.xlane.xlu1 %653 }
 0x467   :  { %v835_v61 = vmul.f32 1.442695, %v831_v0  ;;  %v662_v2 = vsub.f32 %v642_v32, %v654_v1 }
 0x469   :  { %v2945_v3 = vpop.eup %2470  ;;  %2472 = vpow2.f32 %v835_v61  ;;  %v667_v4 = vmul.f32 1.442695, %v662_v2 }
 0x46a   :  { %v673_v5 = vsel %vm370_vm5, %v2945_v3, 0.0 }
 0x46b   :  { %2474 = vpow2.f32 %v667_v4  ;;  %674 = vadd.xlane.f32.xlu0 %v673_v5 }
 0x46c   :  { %v824_v8 = vpop.xlane.xlu2 %823 }
 0x46d   :  { %v832_v52 = vsub.f32 %v812_v34, %v824_v8 }
 0x46e   :  { %v657_v20 = vpop.xlane.xlu1 %656 }
 0x46f   :  { %v2949_v9 = vpop.eup %2472  ;;  %v837_v10 = vmul.f32 1.442695, %v832_v52  ;;  %v663_v22 = vsub.f32 %v2930_v44, %v657_v20 }
 0x470   :  { %v843_v11 = vsel %vm370_vm5, %v2949_v9, 0.0 }
 0x471   :  { %v2953_v47 = vpop.eup %2474  ;;  %2476 = vpow2.f32 %v837_v10  ;;  %844 = vadd.xlane.f32.xlu1 %v843_v11  ;;  %v669_v25 = vmul.f32 1.442695, %v663_v22 }
 0x472   :  { %v676_v12 = vsel %vm370_vm5, %v2953_v47, 0.0 }
 0x473   :  { %677 = vadd.xlane.f32.xlu2 %v676_v12 }
 0x474   :  { %v827_v21 = vpop.xlane.xlu2 %826 }
 0x475   :  { %v833_v24 = vsub.f32 %v815_v51, %v827_v21 }
 0x476   :  { %v660_v13 = vpop.xlane.xlu0 %659 }
 0x477   :  { %v2957_v14 = vpop.eup %2476  ;;  %v664_v15 = vsub.f32 %v647_v55, %v660_v13  ;;  %v839_v26 = vmul.f32 1.442695, %v833_v24 }
 0x478   :  { %v846_v48 = vsel %vm370_vm5, %v2957_v14, 0.0 }
 0x479   :  { %v671_v17 = vmul.f32 1.442695, %v664_v15  ;;  %847 = vadd.xlane.f32.xlu0 %v846_v48 }
 0x47b   :  { %2478 = vpow2.f32 %v671_v17 }
 0x47c   :  { %2480 = vpow2.f32 %v669_v25  ;;  %v830_v27 = vpop.xlane.xlu1 %829 }
 0x47d   :  { %2482 = vpow2.f32 %v839_v26  ;;  %v834_v31 = vsub.f32 %v817_v56, %v830_v27 }
 0x47f   :  { %v841_v38 = vmul.f32 1.442695, %v834_v31 }
 0x481   :  { %v2961_v18 = vpop.eup %2478  ;;  %2484 = vpow2.f32 %v841_v38 }
 0x482   :  { %v682_v19 = vsel %vm370_vm5, %v2961_v18, 0.0  ;;  %v2972_v28 = vpop.eup %2480 }
 0x483   :  { %683 = vadd.xlane.f32.xlu0 %v682_v19  ;;  %v2974_v32 = vpop.eup %2482 }
 0x484   :  { %v849_v39 = vsel %vm370_vm5, %v2974_v32, 0.0 }
 0x487   :  { %v2980_v40 = vpop.eup %2484 }
 0x488   :  { %v852_v34 = vsel %vm370_vm5, %v2980_v40, 0.0 }
 0x48a   :  { %747 = vrot.lane.b32.xlu1 %v2857_v43, %s2622_s1 }
 0x48b   :  { %749 = vrot.lane.b32.xlu2 %v2861_v50, %s2622_s1 }
 0x497   :  { %919 = vrot.lane.b32.xlu0 %v2861_v50, %s2623_s19  ;;  %v679_v50 = vsel %vm370_vm5, %v2972_v28, 0.0 }
 0x4b4   :  { %850 = vadd.xlane.f32.xlu2 %v849_v39  ;;  %680 = vadd.xlane.f32.xlu1 %v679_v50 }
 0x4c1   :  { %853 = vadd.xlane.f32.xlu0 %v852_v34 }
 0x4cd   :  { %917 = vrot.lane.b32.xlu1 %v2857_v43, %s2623_s19 }
 0x4de   :  { %v675_v42 = vpop.xlane.xlu0 %674 }
 0x4df   :  { %2486 = vrcp.f32 %v675_v42  ;;  %vm690_vm0 = vweird.f32 %v675_v42  ;;  %v694_v2 = vand.u32 2147483647, %v675_v42  ;;  %v696_v4 = vand.u32 2147483648, %v675_v42 }
 0x4e1   :  { %vm695_vm7 = vcmp.eq.f32.partialorder %v694_v2, 8.507059e+37  ;;  %v697_v19 = vor.u32 1.1754944e-38, %v696_v4 }
 0x4e4   :  { %v845_v44 = vpop.xlane.xlu1 %844 }
 0x4e5   :  { %v2487_v45 = vpop.eup %2486  ;;  %2488 = vrcp.f32 %v845_v44  ;;  %vm860_vm4 = vweird.f32 %v845_v44  ;;  %v864_v11 = vand.u32 2147483647, %v845_v44  ;;  %v866_v12 = vand.u32 2147483648, %v845_v44 }
 0x4e6   :  { %v686_v46 = vmul.f32 %v2487_v45, %v675_v42  ;;  %v678_v49 = vpop.xlane.xlu2 %677  ;;  %vm691_vm12 = vweird.f32 %v2487_v45 }
 0x4e7   :  { %2490 = vrcp.f32 %v678_v49  ;;  %v710_v62 = vand.u32 2147483648, %v678_v49  ;;  %v708_v1 = vand.u32 2147483647, %v678_v49  ;;  %vm704_vm1 = vweird.f32 %v678_v49  ;;  %vm2986_vm2 = vmor %vm690_vm0, %vm691_vm12 }
 0x4e8   :  { %v687_v51 = vsub.f32 1.0, %v686_v46  ;;  %v867_v31 = vor.u32 1.1754944e-38, %v866_v12  ;;  %vm865_vm10 = vcmp.eq.f32.partialorder %v864_v11, 8.507059e+37 }
 0x4e9   :  { %v711_v13 = vor.u32 1.1754944e-38, %v710_v62  ;;  %vm709_vm13 = vcmp.eq.f32.partialorder %v708_v1, 8.507059e+37 }
 0x4ea   :  { %v688_v37 = vmul.f32 %v2487_v45, %v687_v51 }
 0x4eb   :  { %v2489_v54 = vpop.eup %2488 }
 0x4ec   :  { %v856_v55 = vmul.f32 %v2489_v54, %v845_v44  ;;  %v848_v57 = vpop.xlane.xlu0 %847  ;;  %v689_v63 = vadd.f32 %v2487_v45, %v688_v37  ;;  %vm861_vm3 = vweird.f32 %v2489_v54 }
 0x4ed   :  { %v2491_v58 = vpop.eup %2490  ;;  %2492 = vrcp.f32 %v848_v57  ;;  %vm2993_vm8 = vmor %vm860_vm4, %vm861_vm3  ;;  %v880_v22 = vand.u32 2147483648, %v848_v57  ;;  %v878_v26 = vand.u32 2147483647, %v848_v57  ;;  %vm874_vm11 = vweird.f32 %v848_v57 }
 0x4ee   :  { %v857_v56 = vsub.f32 1.0, %v856_v55  ;;  %v700_v59 = vmul.f32 %v2491_v58, %v678_v49  ;;  %v750_v35 = vpop.permute.xlu2 %749  ;;  %vm705_vm14 = vweird.f32 %v2491_v58  ;;  %v693_v15 = vsel %vm2986_vm2, %v2487_v45, %v689_v63 }
 0x4ef   :  { %765 = vmatpush.bf16.msra.mxu3 %v750_v35  ;;  %vm706_vm6 = vmor %vm704_vm1, %vm705_vm14  ;;  %v698_v27 = vsel %vm695_vm7, %v697_v19, %v693_v15  ;;  %v881_v50 = vor.u32 1.1754944e-38, %v880_v22  ;;  %vm879_vm14 = vcmp.eq.f32.partialorder %v878_v26, 8.507059e+37 }
 0x4f0   :  { %v858_v43 = vmul.f32 %v2489_v54, %v857_v56  ;;  %v701_v60 = vsub.f32 1.0, %v700_v59  ;;  %v741_v42 = vmul.f32 %v2945_v3, %v698_v27 }
 0x4f2   :  { %v702_v0 = vmul.f32 %v2491_v58, %v701_v60  ;;  %v859_v8 = vadd.f32 %v2489_v54, %v858_v43 }
 0x4f3   :  { %v2493_v61 = vpop.eup %2492 }
 0x4f4   :  { %v703_v52 = vadd.f32 %v2491_v58, %v702_v0  ;;  %v870_v10 = vmul.f32 %v2493_v61, %v848_v57  ;;  %v863_v24 = vsel %vm2993_vm8, %v2489_v54, %v859_v8  ;;  %vm875_vm9 = vweird.f32 %v2493_v61 }
 0x4f5   :  { %vm876_vm12 = vmor %vm874_vm11, %vm875_vm9  ;;  %v868_v34 = vsel %vm865_vm10, %v867_v31, %v863_v24  ;;  %v1012_v0 = vperm.slane %v2854_v29, 1 }
 0x4f6   :  { %v707_v48 = vsel %vm706_vm6, %v2491_v58, %v703_v52  ;;  %v871_v17 = vsub.f32 1.0, %v870_v10  ;;  %v911_v51 = vmul.f32 %v2949_v9, %v868_v34  ;;  %v684_v55 = vpop.xlane.xlu0 %683 }
 0x4f7   :  { %v712_v21 = vsel %vm709_vm13, %v711_v13, %v707_v48  ;;  %2494 = vrcp.f32 %v684_v55  ;;  %vm732_vm1 = vweird.f32 %v684_v55  ;;  %v736_v62 = vand.u32 2147483647, %v684_v55 }
 0x4f8   :  { %v872_v25 = vmul.f32 %v2493_v61, %v871_v17  ;;  %v742_v38 = vmul.f32 %v2953_v47, %v712_v21 }
 0x4f9   :  { %vm737_vm4 = vcmp.eq.f32.partialorder %v736_v62, 8.507059e+37 }
 0x4fa   :  { %v873_v39 = vadd.f32 %v2493_v61, %v872_v25  ;;  %v745_v49 = vpack.c.bf16 %v742_v38, %v741_v42 }
 0x4fc   :  { %v877_v44 = vsel %vm876_vm12, %v2493_v61, %v873_v39  ;;  %v748_v45 = vpop.permute.xlu1 %747 }
 0x4fd   :  { %766 = vmatpush.bf16.msra.mxu3 %v748_v45  ;;  %v882_v46 = vsel %vm879_vm14, %v881_v50, %v877_v44  ;;  %v2495_v58 = vpop.eup %2494 }
 0x4fe   :  { %v912_v54 = vmul.f32 %v2957_v14, %v882_v46  ;;  %v728_v37 = vmul.f32 %v2495_v58, %v684_v55  ;;  %vm733_vm0 = vweird.f32 %v2495_v58  ;;  %v738_v14 = vand.u32 2147483648, %v684_v55 }
 0x4ff   :  { %vm3004_vm2 = vmor %vm732_vm1, %vm733_vm0 }
 0x500   :  { %2262 = vmatmul.msk.bf16.vlgmr.msra.gmra.mxu3 %vm370_vm5, %v745_v49  ;;  %v915_v47 = vpack.c.bf16 %v912_v54, %v911_v51  ;;  %v729_v56 = vsub.f32 1.0, %v728_v37  ;;  %v739_v8 = vor.u32 1.1754944e-38, %v738_v14 }
 0x502   :  { %v730_v59 = vmul.f32 %v2495_v58, %v729_v56 }
 0x504   :  { %v731_v60 = vadd.f32 %v2495_v58, %v730_v59 }
 0x506   :  { %v735_v5 = vsel %vm3004_vm2, %v2495_v58, %v731_v60  ;;  %v2398_v58 = vld [vmem:[%s3396_s5 + $0x8] sm:$0xff] }
 0x507   :  { %v740_v12 = vsel %vm737_vm4, %v739_v8, %v735_v5  ;;  %969 = vmatpush.bf16.msra.mxu1 %v2398_v58 }
 0x508   :  { %v744_v19 = vmul.f32 %v2961_v18, %v740_v12 }
 0x509   :  { %v920_v57 = vpop.permute.xlu0 %919 }
 0x50a   :  { %935 = vmatpush.bf16.msrb.mxu0 %v920_v57  ;;  %v2397_v57 = vld [vmem:[%s3396_s5] sm:$0xff] }
 0x50b   :  { %1000 = vmatpush.bf16.msrb.mxu3 %v2397_v57 }
 0x527   :  { %v681_v3 = vpop.xlane.xlu1 %680  ;;  %v851_v35 = vpop.xlane.xlu2 %850 }
 0x528   :  { %2496 = vrcp.f32 %v681_v3  ;;  %v724_v1 = vand.u32 2147483648, %v681_v3  ;;  %v722_v2 = vand.u32 2147483647, %v681_v3  ;;  %vm718_vm6 = vweird.f32 %v681_v3 }
 0x529   :  { %2498 = vrcp.f32 %v851_v35  ;;  %vm888_vm12 = vweird.f32 %v851_v35  ;;  %v892_v34 = vand.u32 2147483647, %v851_v35 }
 0x52a   :  { %v725_v11 = vor.u32 1.1754944e-38, %v724_v1  ;;  %vm723_vm7 = vcmp.eq.f32.partialorder %v722_v2, 8.507059e+37 }
 0x52b   :  { %vm893_vm1 = vcmp.eq.f32.partialorder %v892_v34, 8.507059e+37 }
 0x52e   :  { %v2497_v43 = vpop.eup %2496 }
 0x52f   :  { %v714_v9 = vmul.f32 %v2497_v43, %v681_v3  ;;  %vm719_vm3 = vweird.f32 %v2497_v43  ;;  %v2499_v52 = vpop.eup %2498 }
 0x530   :  { %vm720_vm13 = vmor %vm718_vm6, %vm719_vm3  ;;  %v884_v15 = vmul.f32 %v2499_v52, %v851_v35  ;;  %vm889_vm9 = vweird.f32 %v2499_v52 }
 0x531   :  { %v715_v63 = vsub.f32 1.0, %v714_v9  ;;  %vm890_vm14 = vmor %vm888_vm12, %vm889_vm9 }
 0x532   :  { %v885_v24 = vsub.f32 1.0, %v884_v15 }
 0x533   :  { %v716_v61 = vmul.f32 %v2497_v43, %v715_v63 }
 0x534   :  { %v854_v4 = vpop.xlane.xlu0 %853  ;;  %v886_v31 = vmul.f32 %v2499_v52, %v885_v24 }
 0x535   :  { %2500 = vrcp.f32 %v854_v4  ;;  %v717_v10 = vadd.f32 %v2497_v43, %v716_v61  ;;  %v908_v39 = vand.u32 2147483648, %v854_v4  ;;  %vm902_vm10 = vweird.f32 %v854_v4 }
 0x536   :  { %v887_v50 = vadd.f32 %v2499_v52, %v886_v31  ;;  %v906_v18 = vand.u32 2147483647, %v854_v4 }
 0x537   :  { %v721_v13 = vsel %vm720_vm13, %v2497_v43, %v717_v10  ;;  %v909_v44 = vor.u32 1.1754944e-38, %v908_v39 }
 0x538   :  { %v726_v48 = vsel %vm723_vm7, %v725_v11, %v721_v13  ;;  %vm907_vm0 = vcmp.eq.f32.partialorder %v906_v18, 8.507059e+37  ;;  %v891_v45 = vsel %vm890_vm14, %v2499_v52, %v887_v50 }
 0x539   :  { %v743_v17 = vmul.f32 %v2972_v28, %v726_v48  ;;  %v894_v28 = vand.u32 2147483648, %v851_v35 }
 0x53b   :  { %v2501_v20 = vpop.eup %2500  ;;  %v746_v22 = vpack.c.bf16 %v744_v19, %v743_v17  ;;  %v895_v46 = vor.u32 1.1754944e-38, %v894_v28 }
 0x53c   :  { %v898_v21 = vmul.f32 %v2501_v20, %v854_v4  ;;  %vm903_vm8 = vweird.f32 %v2501_v20 }
 0x53d   :  { %2263 = vmatmul.msk.bf16.gmra.mxu3 %vm370_vm5, %v746_v22  ;;  %vm904_vm11 = vmor %vm902_vm10, %vm903_vm8  ;;  %v896_v51 = vsel %vm893_vm1, %v895_v46, %v891_v45 }
 0x53e   :  { %v899_v25 = vsub.f32 1.0, %v898_v21 }
 0x53f   :  { %v918_v26 = vpop.permute.xlu1 %917 }
 0x540   :  { %v900_v27 = vmul.f32 %v2501_v20, %v899_v25  ;;  %936 = vmatpush.bf16.msrb.mxu0 %v918_v26 }
 0x542   :  { %v901_v38 = vadd.f32 %v2501_v20, %v900_v27 }
 0x543   :  { %2266 = vmatmul.msk.bf16.vlgmr.msrb.gmra.mxu0 %vm370_vm5, %v915_v47  ;;  %v913_v47 = vmul.f32 %v2974_v32, %v896_v51 }
 0x544   :  { %v905_v42 = vsel %vm904_vm11, %v2501_v20, %v901_v38 }
 0x545   :  { %v910_v49 = vsel %vm907_vm0, %v909_v44, %v905_v42  ;;  %vm1234_vm0 = vcmask 523264  }
 0x546   :  { %v914_v54 = vmul.f32 %v2980_v40, %v910_v49 }
 0x548   :  { %v916_v55 = vpack.c.bf16 %v914_v54, %v913_v47 }
 0x553   :  { %2267 = vmatmul.msk.bf16.gmra.mxu0 %vm370_vm5, %v916_v55 }
 0x583   :  { %v768_v37 = vpop.f32.mrf.mxu3 }
 0x58b   :  { %v770_v3 = vpop.f32.mrf.mxu3 }
 0x58c   :  { %v778_v56 = vpack.c.bf16 %v770_v3, %v768_v37  ;;  %v2400_v37 = vld [vmem:[%s3397_s6 + $0x8] sm:$0xff] }
 0x58d   :  { %1150 = vmatpush.bf16.msra.mxu2 %v2400_v37 }
 0x58e   :  { %2278 = vmatmul.msk.bf16.vlgmr.msrb.gmra.mxu3 %vm617_vm15, %v778_v56 }
 0x5c0   :  { %v938_v40 = vpop.f32.mrf.mxu0  ;;  %v773_v32 = vpop.f32.mrf.mxu3 }
 0x5c8   :  { %v940_v59 = vpop.f32.mrf.mxu0  ;;  %v775_v35 = vpop.f32.mrf.mxu3 }
 0x5c9   :  { %v948_v43 = vpack.c.bf16 %v940_v59, %v938_v40  ;;  %v779_v60 = vpack.c.bf16 %v775_v35, %v773_v32  ;;  %v2399_v40 = vld [vmem:[%s3397_s6] sm:$0xff] }
 0x5ca   :  { %1151 = vmatpush.bf16.msra.mxu2 %v2399_v40 }
 0x5cb   :  { %2272 = vmatmul.msk.bf16.vlgmr.msra.gmra.mxu1 %vm617_vm15, %v948_v43  ;;  %2279 = vmatmul.msk.bf16.gmra.mxu3 %vm617_vm15, %v779_v60 }
 0x5d0   :  { %v943_v9 = vpop.f32.mrf.mxu0 }
 0x5d8   :  { %v945_v14 = vpop.f32.mrf.mxu0 }
 0x5d9   :  { %v949_v62 = vpack.c.bf16 %v945_v14, %v943_v9 }
 0x5db   :  { %2273 = vmatmul.msk.bf16.gmra.mxu1 %vm617_vm15, %v949_v62 }
 0x611   :  { %v1002_v63 = vpop.f32.mrf.mxu3 }
 0x619   :  { %v1004_v5 = vpop.f32.mrf.mxu3 }
 0x648   :  { %v971_v1 = vpop.f32.mrf.mxu1 }
 0x649   :  { %v1003_v61 = vadd.f32 %v1002_v63, %v971_v1 }
 0x64b   :  { %v1013_v2 = vadd.f32 %v1012_v0, %v1003_v61 }
 0x64d   :  { %v1017_v4 = vadd.f32 %v1013_v2, %v2833_v6 }
 0x64e   :  { %v1007_v13 = vpop.f32.mrf.mxu3 }
 0x64f   :  { %v1021_v8 = vsel %vm370_vm5, %v1017_v4, 0.0 }
 0x650   :  { %1022 = vadd.xlane.f32.xlu1 %v1021_v8  ;;  %v973_v52 = vpop.f32.mrf.mxu1 }
 0x651   :  { %v1005_v10 = vadd.f32 %v1004_v5, %v973_v52 }
 0x653   :  { %v1014_v11 = vadd.f32 %v1012_v0, %v1005_v10 }
 0x655   :  { %v1018_v12 = vadd.f32 %v1014_v11, %v2835_v7 }
 0x656   :  { %v1009_v21 = vpop.f32.mrf.mxu3 }
 0x657   :  { %v1024_v15 = vsel %vm370_vm5, %v1018_v12, 0.0 }
 0x658   :  { %1025 = vadd.xlane.f32.xlu2 %v1024_v15  ;;  %v976_v48 = vpop.f32.mrf.mxu1  ;;  %v1109_v15 = vperm.slane %v2854_v29, 2 }
 0x659   :  { %v1008_v17 = vadd.f32 %v1007_v13, %v976_v48 }
 0x65b   :  { %v1015_v19 = vadd.f32 %v1012_v0, %v1008_v17 }
 0x65d   :  { %v1019_v20 = vadd.f32 %v1015_v19, %v2844_v33 }
 0x65f   :  { %v1027_v6 = vsel %vm370_vm5, %v1019_v20, 0.0 }
 0x660   :  { %1028 = vadd.xlane.f32.xlu2 %v1027_v6  ;;  %v978_v22 = vpop.f32.mrf.mxu1 }
 0x661   :  { %v1010_v24 = vadd.f32 %v1009_v21, %v978_v22  ;;  %v1114_v22 = vperm.slane %v2854_v29, 3 }
 0x663   :  { %v1016_v25 = vadd.f32 %v1012_v0, %v1010_v24 }
 0x665   :  { %v1020_v26 = vadd.f32 %v1016_v25, %v2846_v36 }
 0x667   :  { %v1030_v7 = vsel %vm370_vm5, %v1020_v26, 0.0 }
 0x668   :  { %1031 = vadd.xlane.f32.xlu0 %v1030_v7 }
 0x6c3   :  { %v1023_v27 = vpop.xlane.xlu1 %1022 }
 0x6c4   :  { %v1033_v31 = vmul.f32 %v1023_v27, %v2805_v16 }
 0x6c6   :  { %v1037_v38 = vsub.f32 %v1017_v4, %v1033_v31 }
 0x6c8   :  { %v1041_v39 = vmul.f32 %v1037_v38, %v1037_v38 }
 0x6ca   :  { %v1045_v50 = vsel %vm370_vm5, %v1041_v39, 0.0 }
 0x6cb   :  { %v1026_v33 = vpop.xlane.xlu2 %1025  ;;  %1046 = vadd.xlane.f32.xlu2 %v1045_v50 }
 0x6cc   :  { %v1034_v18 = vmul.f32 %v1026_v33, %v2805_v16 }
 0x6ce   :  { %v3039_v28 = vsub.f32 %v1018_v12, %v1034_v18 }
 0x6d0   :  { %v1042_v34 = vmul.f32 %v3039_v28, %v3039_v28 }
 0x6d2   :  { %v1048_v36 = vsel %vm370_vm5, %v1042_v34, 0.0 }
 0x6d3   :  { %v1029_v42 = vpop.xlane.xlu2 %1028  ;;  %1049 = vadd.xlane.f32.xlu0 %v1048_v36 }
 0x6d4   :  { %v1035_v44 = vmul.f32 %v1029_v42, %v2805_v16 }
 0x6d6   :  { %v3045_v45 = vsub.f32 %v1019_v20, %v1035_v44 }
 0x6d8   :  { %v1043_v46 = vmul.f32 %v3045_v45, %v3045_v45 }
 0x6da   :  { %v1051_v49 = vsel %vm370_vm5, %v1043_v46, 0.0 }
 0x6db   :  { %1052 = vadd.xlane.f32.xlu1 %v1051_v49  ;;  %v1032_v51 = vpop.xlane.xlu0 %1031 }
 0x6dc   :  { %v1036_v54 = vmul.f32 %v1032_v51, %v2805_v16 }
 0x6de   :  { %v3051_v47 = vsub.f32 %v1020_v26, %v1036_v54 }
 0x6e0   :  { %v1044_v55 = vmul.f32 %v3051_v47, %v3051_v47 }
 0x6e2   :  { %v1054_v57 = vsel %vm370_vm5, %v1044_v55, 0.0 }
 0x6e3   :  { %1055 = vadd.xlane.f32.xlu2 %v1054_v57 }
 0x73e   :  { %v1047_v58 = vpop.xlane.xlu2 %1046 }
 0x73f   :  { %v1057_v3 = vmul.f32 %v1047_v58, %v2805_v16 }
 0x741   :  { %v1061_v56 = vadd.f32 1e-12, %v1057_v3  ;;  %v1125_v3 = vperm.slane %v2854_v29, 4 }
 0x743   :  { %2502 = vrsqrt.f32 %v1061_v56  ;;  %vm1071_vm3 = vweird.f32 %v1061_v56 }
 0x746   :  { %v1050_v32 = vpop.xlane.xlu0 %1049 }
 0x747   :  { %v1058_v59 = vmul.f32 %v1050_v32, %v2805_v16 }
 0x749   :  { %v2503_v35 = vpop.eup %2502  ;;  %v1062_v43 = vadd.f32 1e-12, %v1058_v59  ;;  %v2401_v59 = vld [vmem:[%s3398_s7] sm:$0xff] }
 0x74a   :  { %v1066_v60 = vmul.f32 %v2503_v35, %v1061_v56  ;;  %vm1072_vm2 = vweird.f32 %v2503_v35  ;;  %v2402_v56 = vld [vmem:[%s3398_s7 + $0x8] sm:$0xff] }
 0x74b   :  { %2504 = vrsqrt.f32 %v1062_v43  ;;  %vm1073_vm4 = vmor %vm1071_vm3, %vm1072_vm2  ;;  %vm1081_vm13 = vweird.f32 %v1062_v43 }
 0x74c   :  { %v1067_v9 = vmul.f32 %v2503_v35, %v1066_v60 }
 0x74e   :  { %v1068_v14 = vmul.f32 0.5, %v1067_v9  ;;  %v1053_v62 = vpop.xlane.xlu1 %1052 }
 0x74f   :  { %v1059_v63 = vmul.f32 %v1053_v62, %v2805_v16 }
 0x750   :  { %v1069_v0 = vsub.f32 1.5, %v1068_v14 }
 0x751   :  { %v2505_v1 = vpop.eup %2504  ;;  %v1063_v61 = vadd.f32 1e-12, %v1059_v63 }
 0x752   :  { %v1070_v2 = vmul.f32 %v2503_v35, %v1069_v0  ;;  %v1076_v4 = vmul.f32 %v2505_v1, %v1062_v43  ;;  %vm1082_vm6 = vweird.f32 %v2505_v1 }
 0x753   :  { %2506 = vrsqrt.f32 %v1063_v61  ;;  %vm1083_vm7 = vmor %vm1081_vm13, %vm1082_vm6  ;;  %vm1091_vm9 = vweird.f32 %v1063_v61 }
 0x754   :  { %v1077_v5 = vmul.f32 %v2505_v1, %v1076_v4  ;;  %v1074_v8 = vsel %vm1073_vm4, %v2503_v35, %v1070_v2 }
 0x755   :  { %v1105_v48 = vmul.f32 %v1074_v8, %v1037_v38 }
 0x756   :  { %v1078_v52 = vmul.f32 0.5, %v1077_v5  ;;  %v1056_v10 = vpop.xlane.xlu2 %1055 }
 0x757   :  { %v1060_v11 = vmul.f32 %v1056_v10, %v2805_v16  ;;  %v1110_v24 = vmul.f32 %v1109_v15, %v1105_v48 }
 0x758   :  { %v1079_v12 = vsub.f32 1.5, %v1078_v52 }
 0x759   :  { %v2507_v13 = vpop.eup %2506  ;;  %v1064_v17 = vadd.f32 1e-12, %v1060_v11  ;;  %v3069_v39 = vadd.f32 %v1114_v22, %v1110_v24 }
 0x75a   :  { %v1080_v19 = vmul.f32 %v2505_v1, %v1079_v12  ;;  %v1086_v20 = vmul.f32 %v2507_v13, %v1063_v61  ;;  %vm1092_vm8 = vweird.f32 %v2507_v13 }
 0x75b   :  { %2508 = vrsqrt.f32 %v1064_v17  ;;  %vm1093_vm10 = vmor %vm1091_vm9, %vm1092_vm8  ;;  %vm1101_vm12 = vweird.f32 %v1064_v17 }
 0x75c   :  { %v1084_v6 = vsel %vm1083_vm7, %v2505_v1, %v1080_v19  ;;  %v1087_v21 = vmul.f32 %v2507_v13, %v1086_v20 }
 0x75d   :  { %v1106_v25 = vmul.f32 %v1084_v6, %v3039_v28 }
 0x75e   :  { %v1088_v26 = vmul.f32 0.5, %v1087_v21 }
 0x75f   :  { %v1111_v7 = vmul.f32 %v1109_v15, %v1106_v25 }
 0x760   :  { %v1089_v27 = vsub.f32 1.5, %v1088_v26 }
 0x761   :  { %v2509_v31 = vpop.eup %2508  ;;  %v3071_v38 = vadd.f32 %v1114_v22, %v1111_v7 }
 0x762   :  { %v1090_v50 = vmul.f32 %v2507_v13, %v1089_v27  ;;  %v1096_v33 = vmul.f32 %v2509_v31, %v1064_v17  ;;  %vm1102_vm11 = vweird.f32 %v2509_v31 }
 0x763   :  { %v1119_v18 = vpack.c.bf16 %v3071_v38, %v3069_v39  ;;  %vm1103_vm14 = vmor %vm1101_vm12, %vm1102_vm11 }
 0x764   :  { %v1097_v34 = vmul.f32 %v2509_v31, %v1096_v33  ;;  %v1094_v28 = vsel %vm1093_vm10, %v2507_v13, %v1090_v50 }
 0x765   :  { %2288 = vmatmul.msk.bf16.vlgmr.msra.gmra.mxu2 %vm370_vm5, %v1119_v18  ;;  %v1107_v44 = vmul.f32 %v1094_v28, %v3045_v45  ;;  %v2404_v45 = vld [vmem:[%s3398_s7 + $0x18] sm:$0xff] }
 0x766   :  { %v1098_v36 = vmul.f32 0.5, %v1097_v34  ;;  %1245 = vmatpush.bf16.msra.mxu0 %v2404_v45 }
 0x767   :  { %v1112_v54 = vmul.f32 %v1109_v15, %v1107_v44 }
 0x768   :  { %v1099_v42 = vsub.f32 1.5, %v1098_v36 }
 0x769   :  { %v3078_v57 = vadd.f32 %v1114_v22, %v1112_v54 }
 0x76a   :  { %v1100_v46 = vmul.f32 %v2509_v31, %v1099_v42 }
 0x76c   :  { %v1104_v49 = vsel %vm1103_vm14, %v2509_v31, %v1100_v46 }
 0x76d   :  { %v1108_v51 = vmul.f32 %v1104_v49, %v3051_v47  ;;  %v2403_v47 = vld [vmem:[%s3398_s7 + $0x10] sm:$0xff] }
 0x76e   :  { %1246 = vmatpush.bf16.msra.mxu0 %v2403_v47 }
 0x76f   :  { %v1113_v55 = vmul.f32 %v1109_v15, %v1108_v51  ;;  %v3103_v51 = vld [vmem:[%s3394_s3] sm:$0xff] }
 0x770   :  { %v1209_v54 = vperm.slane %v3103_v51, 5 }
 0x771   :  { %v3080_v58 = vadd.f32 %v1114_v22, %v1113_v55 }
 0x772   :  { %1247 = vmatpush.bf16.msra.mxu0 %v2402_v56 }
 0x773   :  { %v1120_v37 = vpack.c.bf16 %v3080_v58, %v3078_v57 }
 0x775   :  { %2289 = vmatmul.msk.bf16.gmra.mxu2 %vm370_vm5, %v1120_v37 }
 0x776   :  { %1248 = vmatpush.bf16.msra.mxu0 %v2401_v59 }
 0x7e8   :  { %v1153_v40 = vpop.f32.mrf.mxu2 }
 0x7e9   :  { %v1154_v32 = vadd.f32 %v1153_v40, %v1125_v3 }
 0x7eb   :  { %v1163_v35 = vmul.f32 %v1154_v32, %v1154_v32 }
 0x7ed   :  { %v1167_v43 = vmul.f32 %v1163_v35, %v1154_v32 }
 0x7ef   :  { %v1171_v60 = vmul.f32 0.044715, %v1167_v43 }
 0x7f0   :  { %v1155_v9 = vpop.f32.mrf.mxu2 }
 0x7f1   :  { %v1175_v14 = vadd.f32 %v1171_v60, %v1154_v32  ;;  %v1156_v62 = vadd.f32 %v1155_v9, %v1125_v3 }
 0x7f3   :  { %v1179_v63 = vmul.f32 0.7978846, %v1175_v14  ;;  %v1164_v29 = vmul.f32 %v1156_v62, %v1156_v62 }
 0x7f5   :  { %v1168_v0 = vmul.f32 %v1164_v29, %v1156_v62  ;;  %2510 = vtanh.f32 %v1179_v63 }
 0x7f7   :  { %v1172_v1 = vmul.f32 0.044715, %v1168_v0 }
 0x7f8   :  { %v1158_v61 = vpop.f32.mrf.mxu2 }
 0x7f9   :  { %v1176_v2 = vadd.f32 %v1172_v1, %v1156_v62  ;;  %v1159_v4 = vadd.f32 %v1158_v61, %v1125_v3 }
 0x7fb   :  { %v1180_v5 = vmul.f32 0.7978846, %v1176_v2  ;;  %v1165_v8 = vmul.f32 %v1159_v4, %v1159_v4  ;;  %v2511_v52 = vpop.eup %2510 }
 0x7fc   :  { %v1187_v12 = vadd.f32 1.0, %v2511_v52 }
 0x7fd   :  { %2512 = vtanh.f32 %v1180_v5  ;;  %v1169_v10 = vmul.f32 %v1165_v8, %v1159_v4 }
 0x7fe   :  { %v1191_v6 = vmul.f32 0.5, %v1187_v12 }
 0x7ff   :  { %v1173_v11 = vmul.f32 0.044715, %v1169_v10 }
 0x800   :  { %v1160_v13 = vpop.f32.mrf.mxu2  ;;  %v1195_v26 = vmul.f32 %v1191_v6, %v1154_v32 }
 0x801   :  { %v1177_v15 = vadd.f32 %v1173_v11, %v1159_v4  ;;  %v1161_v48 = vadd.f32 %v1160_v13, %v1125_v3 }
 0x803   :  { %v2513_v17 = vpop.eup %2512  ;;  %v1181_v19 = vmul.f32 0.7978846, %v1177_v15  ;;  %v1166_v20 = vmul.f32 %v1161_v48, %v1161_v48 }
 0x804   :  { %v1188_v21 = vadd.f32 1.0, %v2513_v17 }
 0x805   :  { %v1170_v22 = vmul.f32 %v1166_v20, %v1161_v48  ;;  %2514 = vtanh.f32 %v1181_v19  ;;  %v2406_v20 = vld [vmem:[%s3395_s4 + $0x18] sm:$0xff] }
 0x806   :  { %v1192_v24 = vmul.f32 0.5, %v1188_v21  ;;  %1396 = vmatpush.bf16.msrb.mxu1 %v2406_v20 }
 0x807   :  { %v1174_v25 = vmul.f32 0.044715, %v1170_v22  ;;  %v2405_v22 = vld [vmem:[%s3395_s4 + $0x10] sm:$0xff] }
 0x808   :  { %v1196_v7 = vmul.f32 %v1192_v24, %v1156_v62 }
 0x809   :  { %v1178_v27 = vadd.f32 %v1174_v25, %v1161_v48 }
 0x80a   :  { %v1199_v31 = vpack.c.bf16 %v1196_v7, %v1195_v26  ;;  %1397 = vmatpush.bf16.msrb.mxu1 %v2405_v22 }
 0x80b   :  { %v1182_v50 = vmul.f32 0.7978846, %v1178_v27  ;;  %v2515_v33 = vpop.eup %2514 }
 0x80c   :  { %2306 = vmatmul.msk.bf16.vlgmr.msra.gmra.mxu0 %vm1234_vm0, %v1199_v31  ;;  %v1189_v18 = vadd.f32 1.0, %v2515_v33 }
 0x80d   :  { %2516 = vtanh.f32 %v1182_v50 }
 0x80e   :  { %v1193_v36 = vmul.f32 0.5, %v1189_v18 }
 0x810   :  { %v1197_v44 = vmul.f32 %v1193_v36, %v1159_v4 }
 0x813   :  { %v2517_v34 = vpop.eup %2516 }
 0x814   :  { %v1190_v28 = vadd.f32 1.0, %v2517_v34 }
 0x816   :  { %v1194_v42 = vmul.f32 0.5, %v1190_v28 }
 0x818   :  { %v1198_v46 = vmul.f32 %v1194_v42, %v1161_v48 }
 0x81a   :  { %v1200_v49 = vpack.c.bf16 %v1198_v46, %v1197_v44 }
 0x81c   :  { %2307 = vmatmul.msk.bf16.gmra.mxu0 %vm1234_vm0, %v1200_v49 }
 0x889   :  { %v1250_v55 = vpop.f32.mrf.mxu0 }
 0x88a   :  { %v1251_v37 = vadd.f32 %v1250_v55, %v1209_v54 }
 0x88c   :  { %v1260_v45 = vadd.f32 %v1251_v37, %v3069_v39 }
 0x88e   :  { %v1264_v47 = vsel %vm370_vm5, %v1260_v45, 0.0 }
 0x88f   :  { %1265 = vadd.xlane.f32.xlu0 %v1264_v47 }
 0x891   :  { %v1252_v3 = vpop.f32.mrf.mxu0 }
 0x892   :  { %v1253_v56 = vadd.f32 %v1252_v3, %v1209_v54  ;;  %v1352_v3 = vperm.slane %v3103_v51, 6 }
 0x894   :  { %v1261_v40 = vadd.f32 %v1253_v56, %v3071_v38 }
 0x896   :  { %v1267_v32 = vsel %vm370_vm5, %v1261_v40, 0.0 }
 0x897   :  { %1268 = vadd.xlane.f32.xlu1 %v1267_v32 }
 0x899   :  { %v1255_v59 = vpop.f32.mrf.mxu0 }
 0x89a   :  { %v1256_v35 = vadd.f32 %v1255_v59, %v1209_v54 }
 0x89c   :  { %v1262_v43 = vadd.f32 %v1256_v35, %v3078_v57 }
 0x89e   :  { %v1270_v60 = vsel %vm370_vm5, %v1262_v43, 0.0 }
 0x89f   :  { %1271 = vadd.xlane.f32.xlu2 %v1270_v60  ;;  %v1357_v60 = vperm.slane %v3103_v51, 7 }
 0x8a1   :  { %v1257_v9 = vpop.f32.mrf.mxu0 }
 0x8a2   :  { %v1258_v14 = vadd.f32 %v1257_v9, %v1209_v54 }
 0x8a4   :  { %v1263_v39 = vadd.f32 %v1258_v14, %v3080_v58 }
 0x8a6   :  { %v1273_v62 = vsel %vm370_vm5, %v1263_v39, 0.0 }
 0x8a7   :  { %1274 = vadd.xlane.f32.xlu0 %v1273_v62 }
 0x902   :  { %v1266_v63 = vpop.xlane.xlu0 %1265 }
 0x903   :  { %v1276_v38 = vmul.f32 %v1266_v63, %v2805_v16 }
 0x905   :  { %v1280_v29 = vsub.f32 %v1260_v45, %v1276_v38 }
 0x907   :  { %v1284_v0 = vmul.f32 %v1280_v29, %v1280_v29 }
 0x909   :  { %v1288_v1 = vsel %vm370_vm5, %v1284_v0, 0.0 }
 0x90a   :  { %v1269_v61 = vpop.xlane.xlu1 %1268  ;;  %1289 = vadd.xlane.f32.xlu1 %v1288_v1 }
 0x90b   :  { %v1277_v57 = vmul.f32 %v1269_v61, %v2805_v16 }
 0x90d   :  { %v3117_v2 = vsub.f32 %v1261_v40, %v1277_v57 }
 0x90f   :  { %v1285_v4 = vmul.f32 %v3117_v2, %v3117_v2 }
 0x911   :  { %v1291_v58 = vsel %vm370_vm5, %v1285_v4, 0.0 }
 0x912   :  { %v1272_v5 = vpop.xlane.xlu2 %1271  ;;  %1292 = vadd.xlane.f32.xlu2 %v1291_v58 }
 0x913   :  { %v1278_v8 = vmul.f32 %v1272_v5, %v2805_v16 }
 0x915   :  { %v3123_v52 = vsub.f32 %v1262_v43, %v1278_v8 }
 0x917   :  { %v1286_v10 = vmul.f32 %v3123_v52, %v3123_v52 }
 0x919   :  { %v1294_v11 = vsel %vm370_vm5, %v1286_v10, 0.0 }
 0x91a   :  { %1295 = vadd.xlane.f32.xlu0 %v1294_v11  ;;  %v1275_v12 = vpop.xlane.xlu0 %1274 }
 0x91b   :  { %v1279_v13 = vmul.f32 %v1275_v12, %v2805_v16 }
 0x91d   :  { %v3129_v15 = vsub.f32 %v1263_v39, %v1279_v13 }
 0x91f   :  { %v1287_v48 = vmul.f32 %v3129_v15, %v3129_v15 }
 0x921   :  { %v1297_v17 = vsel %vm370_vm5, %v1287_v48, 0.0 }
 0x922   :  { %1298 = vadd.xlane.f32.xlu1 %v1297_v17 }
 0x97d   :  { %v1290_v19 = vpop.xlane.xlu1 %1289 }
 0x97e   :  { %v1300_v6 = vmul.f32 %v1290_v19, %v2805_v16 }
 0x980   :  { %v1304_v21 = vadd.f32 1e-12, %v1300_v6 }
 0x982   :  { %2518 = vrsqrt.f32 %v1304_v21  ;;  %vm1314_vm2 = vweird.f32 %v1304_v21 }
 0x985   :  { %v1293_v24 = vpop.xlane.xlu2 %1292 }
 0x986   :  { %v1301_v25 = vmul.f32 %v1293_v24, %v2805_v16 }
 0x988   :  { %v2519_v26 = vpop.eup %2518  ;;  %v1305_v7 = vadd.f32 1e-12, %v1301_v25 }
 0x989   :  { %v1309_v27 = vmul.f32 %v2519_v26, %v1304_v21  ;;  %vm1315_vm1 = vweird.f32 %v2519_v26 }
 0x98a   :  { %2520 = vrsqrt.f32 %v1305_v7  ;;  %vm1316_vm3 = vmor %vm1314_vm2, %vm1315_vm1  ;;  %vm1324_vm6 = vweird.f32 %v1305_v7 }
 0x98b   :  { %v1310_v31 = vmul.f32 %v2519_v26, %v1309_v27 }
 0x98d   :  { %v1311_v50 = vmul.f32 0.5, %v1310_v31  ;;  %v1296_v33 = vpop.xlane.xlu0 %1295 }
 0x98e   :  { %v1302_v18 = vmul.f32 %v1296_v33, %v2805_v16 }
 0x98f   :  { %v1312_v34 = vsub.f32 1.5, %v1311_v50 }
 0x990   :  { %v2521_v28 = vpop.eup %2520  ;;  %v1306_v36 = vadd.f32 1e-12, %v1302_v18 }
 0x991   :  { %v1313_v42 = vmul.f32 %v2519_v26, %v1312_v34  ;;  %v1319_v44 = vmul.f32 %v2521_v28, %v1305_v7  ;;  %vm1325_vm4 = vweird.f32 %v2521_v28 }
 0x992   :  { %2522 = vrsqrt.f32 %v1306_v36  ;;  %vm1326_vm13 = vmor %vm1324_vm6, %vm1325_vm4  ;;  %vm1334_vm8 = vweird.f32 %v1306_v36 }
 0x993   :  { %v1320_v46 = vmul.f32 %v2521_v28, %v1319_v44  ;;  %v1317_v49 = vsel %vm1316_vm3, %v2519_v26, %v1313_v42 }
 0x994   :  { %v1348_v56 = vmul.f32 %v1317_v49, %v1280_v29 }
 0x995   :  { %v1321_v54 = vmul.f32 0.5, %v1320_v46  ;;  %v1299_v55 = vpop.xlane.xlu1 %1298 }
 0x996   :  { %v1303_v37 = vmul.f32 %v1299_v55, %v2805_v16  ;;  %v1353_v9 = vmul.f32 %v1352_v3, %v1348_v56 }
 0x997   :  { %v1322_v45 = vsub.f32 1.5, %v1321_v54 }
 0x998   :  { %v2523_v47 = vpop.eup %2522  ;;  %v1307_v40 = vadd.f32 1e-12, %v1303_v37  ;;  %v3147_v0 = vadd.f32 %v1357_v60, %v1353_v9 }
 0x999   :  { %v1323_v32 = vmul.f32 %v2521_v28, %v1322_v45  ;;  %v1329_v59 = vmul.f32 %v2523_v47, %v1306_v36  ;;  %vm1335_vm7 = vweird.f32 %v2523_v47 }
 0x99a   :  { %2524 = vrsqrt.f32 %v1307_v40  ;;  %vm1336_vm9 = vmor %vm1334_vm8, %vm1335_vm7  ;;  %vm1344_vm11 = vweird.f32 %v1307_v40 }
 0x99b   :  { %v1327_v35 = vsel %vm1326_vm13, %v2521_v28, %v1323_v32  ;;  %v1330_v43 = vmul.f32 %v2523_v47, %v1329_v59 }
 0x99c   :  { %v1349_v14 = vmul.f32 %v1327_v35, %v3117_v2 }
 0x99d   :  { %v1331_v39 = vmul.f32 0.5, %v1330_v43 }
 0x99e   :  { %v1354_v62 = vmul.f32 %v1352_v3, %v1349_v14 }
 0x99f   :  { %v1332_v63 = vsub.f32 1.5, %v1331_v39 }
 0x9a0   :  { %v2525_v38 = vpop.eup %2524  ;;  %v3149_v29 = vadd.f32 %v1357_v60, %v1354_v62 }
 0x9a1   :  { %v1333_v1 = vmul.f32 %v2523_v47, %v1332_v63  ;;  %v1339_v61 = vmul.f32 %v2525_v38, %v1307_v40  ;;  %vm1345_vm10 = vweird.f32 %v2525_v38 }
 0x9a2   :  { %v1364_v57 = vpack.c.bf16 %v3149_v29, %v3147_v0  ;;  %vm1346_vm12 = vmor %vm1344_vm11, %vm1345_vm10 }
 0x9a3   :  { %v1340_v4 = vmul.f32 %v2525_v38, %v1339_v61  ;;  %v1337_v51 = vsel %vm1336_vm9, %v2523_v47, %v1333_v1 }
 0x9a4   :  { %2321 = vmatmul.msk.bf16.vlgmr.msrb.gmra.mxu1 %vm370_vm5, %v1364_v57  ;;  %v1350_v5 = vmul.f32 %v1337_v51, %v3123_v52  ;;  %v3166_v52 = vld [vmem:[%s3394_s3 + $0x8] sm:$0xff] }
 0x9a5   :  { %v1341_v2 = vmul.f32 0.5, %v1340_v4  ;;  %v1371_v6 = vperm.slane %v3166_v52, 0 }
 0x9a6   :  { %v1355_v12 = vmul.f32 %v1352_v3, %v1350_v5 }
 0x9a7   :  { %v1342_v58 = vsub.f32 1.5, %v1341_v2 }
 0x9a8   :  { %v3156_v48 = vadd.f32 %v1357_v60, %v1355_v12 }
 0x9a9   :  { %v1343_v8 = vmul.f32 %v2525_v38, %v1342_v58 }
 0x9ab   :  { %v1347_v10 = vsel %vm1346_vm12, %v2525_v38, %v1343_v8 }
 0x9ac   :  { %v1351_v11 = vmul.f32 %v1347_v10, %v3129_v15 }
 0x9ae   :  { %v1356_v13 = vmul.f32 %v1352_v3, %v1351_v11 }
 0x9b0   :  { %v3158_v17 = vadd.f32 %v1357_v60, %v1356_v13 }
 0x9b2   :  { %v1365_v19 = vpack.c.bf16 %v3158_v17, %v3156_v48 }
 0x9b4   :  { %2322 = vmatmul.msk.bf16.gmra.mxu1 %vm370_vm5, %v1365_v19 }
 0xa21   :  { %v1399_v20 = vpop.f32.mrf.mxu1 }
 0xa22   :  { %v1400_v21 = vadd.f32 %v1399_v20, %v1371_v6 }
 0xa29   :  { %v1401_v15 = vpop.f32.mrf.mxu1 }
 0xa2a   :  { %v1402_v22 = vadd.f32 %v1401_v15, %v1371_v6 }
 0xa2c   :  { %v3169_v24 = vpack.c.bf16 %v1402_v22, %v1400_v21 }
 0xa2e   :  { %1418 = vrot.lane.b32.xlu0 %v3169_v24, %s2618_s14 }
 0xa31   :  { %v1404_v25 = vpop.f32.mrf.mxu1 }
 0xa32   :  { %v1405_v7 = vadd.f32 %v1404_v25, %v1371_v6 }
 0xa36   :  { %1588 = vrot.lane.b32.xlu0 %v3169_v24, %s2619_s15 }
 0xa39   :  { %v1406_v26 = vpop.f32.mrf.mxu1 }
 0xa3a   :  { %v1407_v27 = vadd.f32 %v1406_v26, %v1371_v6 }
 0xa3c   :  { %v3175_v31 = vpack.c.bf16 %v1407_v27, %v1405_v7 }
 0xa3e   :  { %1590 = vrot.lane.b32.xlu1 %v3175_v31, %s2619_s15  ;;  %1420 = vrot.lane.b32.xlu2 %v3175_v31, %s2618_s14 }
 0xa46   :  { %1586 = vrot.lane.b32.xlu1 %v3175_v31, %s2620_s16  ;;  %1584 = vrot.lane.b32.xlu2 %v3169_v24, %s2620_s16 }
 0xa98   :  { %v1421_v50 = vpop.permute.xlu2 %1420 }
 0xa99   :  { %v1432_v33 = vsel %vm617_vm15, %v1421_v50, 0 }
 0xa9a   :  { %1440 = vmatpush.bf16.xpose.msra.mxu3 %v1432_v33 }
 0xaa0   :  { %v1419_v18 = vpop.permute.xlu0 %1418  ;;  %v1585_v46 = vpop.permute.xlu2 %1584 }
 0xaa1   :  { %v1429_v34 = vsel %vm617_vm15, %v1419_v18, 0 }
 0xaa2   :  { %1441 = vmatpush.bf16.xpose.msra.mxu3 %v1429_v34 }
 0xaa8   :  { %v1589_v42 = vpop.permute.xlu0 %1588 }
 0xaa9   :  { %2327 = vmatmul.msk.bf16.vlgmr.msra.gmra.mxu3 %vm617_vm15, %v3169_v24  ;;  %v1599_v44 = vsel %vm617_vm15, %v1589_v42, 0 }
 0xab0   :  { %v1591_v28 = vpop.permute.xlu1 %1590 }
 0xab1   :  { %v1602_v36 = vsel %vm617_vm15, %v1591_v28, 0 }
 0xab2   :  { %1610 = vmatpush.bf16.xpose.msrb.mxu0 %v1602_v36 }
 0xab8   :  { %v1587_v49 = vpop.permute.xlu1 %1586 }
 0xab9   :  { %2328 = vmatmul.msk.bf16.gmra.mxu3 %vm617_vm15, %v3175_v31 }
 0xaba   :  { %1611 = vmatpush.bf16.xpose.msrb.mxu0 %v1599_v44 }
 0xac1   :  { %2331 = vmatmul.msk.bf16.vlgmr.msrb.gmra.mxu0 %vm617_vm15, %v1585_v46 }
 0xad1   :  { %2332 = vmatmul.msk.bf16.gmra.mxu0 %vm617_vm15, %v1587_v49 }
 0xb2c   :  { %v1443_v54 = vpop.f32.mrf.mxu3 }
 0xb2d   :  { %v1444_v55 = vadd.f32 %v1443_v54, %v2912_v23 }
 0xb2f   :  { %v1453_v37 = vsel %vm370_vm5, %v1444_v55, -inf }
 0xb30   :  { %1454 = vmax.xlane.f32.xlu0 %v1453_v37 }
 0xb34   :  { %v1445_v45 = vpop.f32.mrf.mxu3 }
 0xb35   :  { %v1446_v47 = vadd.f32 %v1445_v45, %v2919_v30 }
 0xb37   :  { %v1456_v3 = vsel %vm370_vm5, %v1446_v47, -inf }
 0xb38   :  { %1457 = vmax.xlane.f32.xlu2 %v1456_v3 }
 0xb3c   :  { %v1448_v56 = vpop.f32.mrf.mxu3 }
 0xb3d   :  { %v1449_v40 = vadd.f32 %v1448_v56, %v2927_v41 }
 0xb3e   :  { %v1613_v32 = vpop.f32.mrf.mxu0 }
 0xb3f   :  { %v1614_v59 = vadd.f32 %v1613_v32, %v2912_v23  ;;  %v1459_v35 = vsel %vm370_vm5, %v1449_v40, -inf }
 0xb40   :  { %1460 = vmax.xlane.f32.xlu2 %v1459_v35 }
 0xb41   :  { %v1623_v43 = vsel %vm370_vm5, %v1614_v59, -inf }
 0xb42   :  { %1624 = vmax.xlane.f32.xlu1 %v1623_v43 }
 0xb44   :  { %v1450_v60 = vpop.f32.mrf.mxu3 }
 0xb45   :  { %v3204_v9 = vadd.f32 %v1450_v60, %v2938_v53 }
 0xb46   :  { %v1615_v14 = vpop.f32.mrf.mxu0 }
 0xb47   :  { %v1616_v39 = vadd.f32 %v1615_v14, %v2919_v30  ;;  %v1462_v63 = vsel %vm370_vm5, %v3204_v9, -inf }
 0xb49   :  { %v1626_v62 = vsel %vm370_vm5, %v1616_v39, -inf }
 0xb4a   :  { %1627 = vmax.xlane.f32.xlu0 %v1626_v62  ;;  %1463 = vmax.xlane.f32.xlu1 %v1462_v63 }
 0xb4e   :  { %v1618_v23 = vpop.f32.mrf.mxu0 }
 0xb4f   :  { %v1619_v38 = vadd.f32 %v1618_v23, %v2927_v41 }
 0xb51   :  { %v1629_v1 = vsel %vm370_vm5, %v1619_v38, -inf }
 0xb52   :  { %1630 = vmax.xlane.f32.xlu0 %v1629_v1 }
 0xb56   :  { %v1620_v61 = vpop.f32.mrf.mxu0 }
 0xb57   :  { %v1621_v57 = vadd.f32 %v1620_v61, %v2938_v53 }
 0xb59   :  { %v1632_v4 = vsel %vm370_vm5, %v1621_v57, -inf }
 0xb5a   :  { %1633 = vmax.xlane.f32.xlu2 %v1632_v4 }
 0xba3   :  { %v1455_v30 = vpop.xlane.xlu0 %1454 }
 0xba4   :  { %v1465_v51 = vsub.f32 %v1444_v55, %v1455_v30 }
 0xba6   :  { %v1469_v2 = vmul.f32 1.442695, %v1465_v51 }
 0xba8   :  { %2526 = vpow2.f32 %v1469_v2 }
 0xbab   :  { %v1458_v58 = vpop.xlane.xlu2 %1457 }
 0xbac   :  { %v1466_v5 = vsub.f32 %v1446_v47, %v1458_v58 }
 0xbae   :  { %v3214_v8 = vpop.eup %2526  ;;  %v1471_v10 = vmul.f32 1.442695, %v1466_v5 }
 0xbaf   :  { %v1477_v41 = vsel %vm370_vm5, %v3214_v8, 0.0 }
 0xbb0   :  { %2528 = vpow2.f32 %v1471_v10  ;;  %1478 = vadd.xlane.f32.xlu1 %v1477_v41 }
 0xbb3   :  { %v1461_v33 = vpop.xlane.xlu2 %1460 }
 0xbb4   :  { %v1467_v18 = vsub.f32 %v1449_v40, %v1461_v33 }
 0xbb5   :  { %v1625_v11 = vpop.xlane.xlu1 %1624 }
 0xbb6   :  { %v3218_v12 = vpop.eup %2528  ;;  %v1635_v53 = vsub.f32 %v1614_v59, %v1625_v11  ;;  %v1473_v28 = vmul.f32 1.442695, %v1467_v18 }
 0xbb7   :  { %v1480_v13 = vsel %vm370_vm5, %v3218_v12, 0.0 }
 0xbb8   :  { %v1639_v19 = vmul.f32 1.442695, %v1635_v53  ;;  %1481 = vadd.xlane.f32.xlu0 %v1480_v13 }
 0xbba   :  { %2530 = vpow2.f32 %v1639_v19 }
 0xbbd   :  { %v1628_v20 = vpop.xlane.xlu0 %1627  ;;  %v1464_v44 = vpop.xlane.xlu1 %1463 }
 0xbbe   :  { %v1636_v6 = vsub.f32 %v1616_v39, %v1628_v20  ;;  %v1468_v49 = vsub.f32 %v3204_v9, %v1464_v44 }
 0xbc0   :  { %v3222_v15 = vpop.eup %2530  ;;  %v1641_v21 = vmul.f32 1.442695, %v1636_v6 }
 0xbc1   :  { %v1647_v22 = vsel %vm370_vm5, %v3222_v15, 0.0 }
 0xbc2   :  { %1648 = vadd.xlane.f32.xlu2 %v1647_v22  ;;  %2532 = vpow2.f32 %v1641_v21 }
 0xbc5   :  { %v1631_v7 = vpop.xlane.xlu0 %1630 }
 0xbc6   :  { %v1637_v27 = vsub.f32 %v1619_v38, %v1631_v7 }
 0xbc8   :  { %v3226_v25 = vpop.eup %2532  ;;  %v1643_v50 = vmul.f32 1.442695, %v1637_v27 }
 0xbc9   :  { %v1650_v26 = vsel %vm370_vm5, %v3226_v25, 0.0 }
 0xbca   :  { %1651 = vadd.xlane.f32.xlu1 %v1650_v26  ;;  %2534 = vpow2.f32 %v1643_v50 }
 0xbcb   :  { %2536 = vpow2.f32 %v1473_v28 }
 0xbcc   :  { %1553 = vrot.lane.b32.xlu0 %v3175_v31, %s2622_s1 }
 0xbcd   :  { %v1634_v42 = vpop.xlane.xlu2 %1633 }
 0xbce   :  { %v1638_v46 = vsub.f32 %v1621_v57, %v1634_v42 }
 0xbd0   :  { %v3236_v34 = vpop.eup %2534  ;;  %v1645_v54 = vmul.f32 1.442695, %v1638_v46 }
 0xbd1   :  { %v1653_v36 = vsel %vm370_vm5, %v3236_v34, 0.0  ;;  %v3241_v55 = vpop.eup %2536 }
 0xbd2   :  { %2538 = vpow2.f32 %v1645_v54  ;;  %v1483_v37 = vsel %vm370_vm5, %v3241_v55, 0.0 }
 0xbd8   :  { %v3245_v45 = vpop.eup %2538 }
 0xbd9   :  { %v1656_v3 = vsel %vm370_vm5, %v3245_v45, 0.0 }
 0xbda   :  { %1551 = vrot.lane.b32.xlu2 %v3169_v24, %s2622_s1 }
 0xbe3   :  { %1723 = vrot.lane.b32.xlu1 %v3175_v31, %s2623_s19  ;;  %v1475_v31 = vmul.f32 1.442695, %v1468_v49 }
 0xbe5   :  { %2540 = vpow2.f32 %v1475_v31 }
 0xbeb   :  { %v3247_v47 = vpop.eup %2540 }
 0xbec   :  { %v1486_v56 = vsel %vm370_vm5, %v3247_v47, 0.0 }
 0xbf6   :  { %1654 = vadd.xlane.f32.xlu0 %v1653_v36 }
 0xc03   :  { %1484 = vadd.xlane.f32.xlu2 %v1483_v37 }
 0xc0b   :  { %1657 = vadd.xlane.f32.xlu2 %v1656_v3 }
 0xc0d   :  { %1487 = vadd.xlane.f32.xlu1 %v1486_v56 }
 0xc23   :  { %v1479_v40 = vpop.xlane.xlu1 %1478 }
 0xc24   :  { %2542 = vrcp.f32 %v1479_v40  ;;  %v1500_v61 = vand.u32 2147483648, %v1479_v40  ;;  %vm1494_vm3 = vweird.f32 %v1479_v40 }
 0xc26   :  { %1721 = vrot.lane.b32.xlu1 %v3169_v24, %s2623_s19  ;;  %v1498_v24 = vand.u32 2147483647, %v1479_v40  ;;  %v1501_v58 = vor.u32 1.1754944e-38, %v1500_v61 }
 0xc28   :  { %vm1499_vm7 = vcmp.eq.f32.partialorder %v1498_v24, 8.507059e+37 }
 0xc2a   :  { %v2543_v32 = vpop.eup %2542 }
 0xc2b   :  { %v1482_v59 = vpop.xlane.xlu0 %1481  ;;  %v1490_v35 = vmul.f32 %v2543_v32, %v1479_v40  ;;  %vm1495_vm1 = vweird.f32 %v2543_v32 }
 0xc2c   :  { %2544 = vrcp.f32 %v1482_v59  ;;  %v1514_v23 = vand.u32 2147483648, %v1482_v59  ;;  %v1512_v1 = vand.u32 2147483647, %v1482_v59  ;;  %vm1508_vm2 = vweird.f32 %v1482_v59  ;;  %vm1496_vm6 = vmor %vm1494_vm3, %vm1495_vm1 }
 0xc2d   :  { %v1491_v43 = vsub.f32 1.0, %v1490_v35 }
 0xc2e   :  { %v1515_v30 = vor.u32 1.1754944e-38, %v1514_v23  ;;  %vm1513_vm13 = vcmp.eq.f32.partialorder %v1512_v1, 8.507059e+37 }
 0xc2f   :  { %v1492_v14 = vmul.f32 %v2543_v32, %v1491_v43 }
 0xc31   :  { %v1493_v38 = vadd.f32 %v2543_v32, %v1492_v14 }
 0xc32   :  { %v2545_v60 = vpop.eup %2544 }
 0xc33   :  { %v1504_v9 = vmul.f32 %v2545_v60, %v1482_v59  ;;  %vm1509_vm14 = vweird.f32 %v2545_v60  ;;  %v1497_v2 = vsel %vm1496_vm6, %v2543_v32, %v1493_v38 }
 0xc34   :  { %vm1510_vm4 = vmor %vm1508_vm2, %vm1509_vm14  ;;  %v1502_v53 = vsel %vm1499_vm7, %v1501_v58, %v1497_v2 }
 0xc35   :  { %v1505_v39 = vsub.f32 1.0, %v1504_v9  ;;  %v1649_v62 = vpop.xlane.xlu2 %1648  ;;  %v1545_v20 = vmul.f32 %v3214_v8, %v1502_v53 }
 0xc36   :  { %2546 = vrcp.f32 %v1649_v62  ;;  %v1670_v50 = vand.u32 2147483648, %v1649_v62  ;;  %vm1664_vm9 = vweird.f32 %v1649_v62  ;;  %v1668_v33 = vand.u32 2147483647, %v1649_v62 }
 0xc37   :  { %v1506_v63 = vmul.f32 %v2545_v60, %v1505_v39 }
 0xc38   :  { %v1671_v42 = vor.u32 1.1754944e-38, %v1670_v50  ;;  %vm1669_vm12 = vcmp.eq.f32.partialorder %v1668_v33, 8.507059e+37 }
 0xc39   :  { %v1507_v57 = vadd.f32 %v2545_v60, %v1506_v63 }
 0xc3b   :  { %v1511_v4 = vsel %vm1510_vm4, %v2545_v60, %v1507_v57 }
 0xc3c   :  { %v2547_v51 = vpop.eup %2546  ;;  %v1516_v5 = vsel %vm1513_vm13, %v1515_v30, %v1511_v4 }
 0xc3d   :  { %v1660_v10 = vmul.f32 %v2547_v51, %v1649_v62  ;;  %v1652_v41 = vpop.xlane.xlu1 %1651  ;;  %v1546_v19 = vmul.f32 %v3218_v12, %v1516_v5  ;;  %v1552_v21 = vpop.permute.xlu2 %1551  ;;  %vm1665_vm8 = vweird.f32 %v2547_v51 }
 0xc3e   :  { %v1554_v11 = vpop.permute.xlu0 %1553  ;;  %2548 = vrcp.f32 %v1652_v41  ;;  %vm1666_vm10 = vmor %vm1664_vm9, %vm1665_vm8  ;;  %v1684_v28 = vand.u32 2147483648, %v1652_v41  ;;  %v1682_v8 = vand.u32 2147483647, %v1652_v41  ;;  %vm1678_vm14 = vweird.f32 %v1652_v41 }
 0xc3f   :  { %v1661_v13 = vsub.f32 1.0, %v1660_v10  ;;  %1569 = vmatpush.bf16.msrb.mxu2 %v1554_v11  ;;  %v1549_v22 = vpack.c.bf16 %v1546_v19, %v1545_v20 }
 0xc40   :  { %v1685_v49 = vor.u32 1.1754944e-38, %v1684_v28  ;;  %vm1683_vm2 = vcmp.eq.f32.partialorder %v1682_v8, 8.507059e+37 }
 0xc41   :  { %v1662_v6 = vmul.f32 %v2547_v51, %v1661_v13 }
 0xc43   :  { %1570 = vmatpush.bf16.msrb.mxu2 %v1552_v21  ;;  %v1663_v7 = vadd.f32 %v2547_v51, %v1662_v6 }
 0xc44   :  { %v2549_v26 = vpop.eup %2548 }
 0xc45   :  { %v1674_v27 = vmul.f32 %v2549_v26, %v1652_v41  ;;  %v1667_v36 = vsel %vm1666_vm10, %v2547_v51, %v1663_v7  ;;  %vm1679_vm11 = vweird.f32 %v2549_v26 }
 0xc46   :  { %2329 = vmatmul.msk.bf16.vlgmr.msrb.gmra.mxu2 %vm370_vm5, %v1549_v22  ;;  %v1672_v46 = vsel %vm1669_vm12, %v1671_v42, %v1667_v36  ;;  %vm1680_vm1 = vmor %vm1678_vm14, %vm1679_vm11 }
 0xc47   :  { %v1675_v18 = vsub.f32 1.0, %v1674_v27  ;;  %v1715_v37 = vmul.f32 %v3222_v15, %v1672_v46 }
 0xc49   :  { %v1676_v12 = vmul.f32 %v2549_v26, %v1675_v18 }
 0xc4b   :  { %v1677_v44 = vadd.f32 %v2549_v26, %v1676_v12 }
 0xc4d   :  { %v1681_v54 = vsel %vm1680_vm1, %v2549_v26, %v1677_v44 }
 0xc4e   :  { %v1686_v31 = vsel %vm1683_vm2, %v1685_v49, %v1681_v54 }
 0xc4f   :  { %v1716_v3 = vmul.f32 %v3226_v25, %v1686_v31  ;;  %v2407_v31 = vld [vmem:[%s3396_s5 + $0x10] sm:$0xff] }
 0xc50   :  { %1804 = vmatpush.bf16.msra.mxu2 %v2407_v31 }
 0xc51   :  { %v1719_v56 = vpack.c.bf16 %v1716_v3, %v1715_v37  ;;  %v2408_v37 = vld [vmem:[%s3396_s5 + $0x18] sm:$0xff] }
 0xc52   :  { %1773 = vmatpush.bf16.msrb.mxu3 %v2408_v37  ;;  %v2409_v37 = vld [vmem:[%s3397_s6 + $0x10] sm:$0xff] }
 0xc55   :  { %v1724_v40 = vpop.permute.xlu1 %1723 }
 0xc56   :  { %1739 = vmatpush.bf16.msra.mxu1 %v1724_v40 }
 0xc69   :  { %v1655_v39 = vpop.xlane.xlu0 %1654 }
 0xc6a   :  { %v1698_v18 = vand.u32 2147483648, %v1655_v39  ;;  %vm1692_vm2 = vweird.f32 %v1655_v39 }
 0xc6c   :  { %v1699_v8 = vor.u32 1.1754944e-38, %v1698_v18 }
 0xc76   :  { %v1485_v32 = vpop.xlane.xlu2 %1484 }
 0xc77   :  { %2550 = vrcp.f32 %v1485_v32  ;;  %v1528_v25 = vand.u32 2147483648, %v1485_v32  ;;  %vm1522_vm4 = vweird.f32 %v1485_v32  ;;  %v1526_v23 = vand.u32 2147483647, %v1485_v32 }
 0xc79   :  { %v1529_v30 = vor.u32 1.1754944e-38, %v1528_v25  ;;  %vm1527_vm7 = vcmp.eq.f32.partialorder %v1526_v23, 8.507059e+37 }
 0xc7d   :  { %v2551_v59 = vpop.eup %2550 }
 0xc7e   :  { %v1518_v35 = vmul.f32 %v2551_v59, %v1485_v32  ;;  %v1658_v14 = vpop.xlane.xlu2 %1657  ;;  %vm1523_vm3 = vweird.f32 %v2551_v59 }
 0xc7f   :  { %vm1524_vm6 = vmor %vm1522_vm4, %vm1523_vm3  ;;  %v1712_v50 = vand.u32 2147483648, %v1658_v14  ;;  %vm1706_vm14 = vweird.f32 %v1658_v14 }
 0xc80   :  { %v1519_v43 = vsub.f32 1.0, %v1518_v35  ;;  %v1488_v60 = vpop.xlane.xlu1 %1487 }
 0xc81   :  { %2552 = vrcp.f32 %v1488_v60  ;;  %v1542_v1 = vand.u32 2147483648, %v1488_v60  ;;  %v1540_v57 = vand.u32 2147483647, %v1488_v60  ;;  %vm1536_vm8 = vweird.f32 %v1488_v60 }
 0xc82   :  { %v1520_v9 = vmul.f32 %v2551_v59, %v1519_v43  ;;  %2554 = vrcp.f32 %v1658_v14  ;;  %v1713_v36 = vor.u32 1.1754944e-38, %v1712_v50 }
 0xc83   :  { %2556 = vrcp.f32 %v1655_v39  ;;  %v1543_v58 = vor.u32 1.1754944e-38, %v1542_v1  ;;  %vm1541_vm10 = vcmp.eq.f32.partialorder %v1540_v57, 8.507059e+37 }
 0xc84   :  { %v1521_v63 = vadd.f32 %v2551_v59, %v1520_v9 }
 0xc86   :  { %v1525_v24 = vsel %vm1524_vm6, %v2551_v59, %v1521_v63 }
 0xc87   :  { %v2553_v62 = vpop.eup %2552  ;;  %v1530_v5 = vsel %vm1527_vm7, %v1529_v30, %v1525_v24 }
 0xc88   :  { %v1532_v15 = vmul.f32 %v2553_v62, %v1488_v60  ;;  %vm1537_vm13 = vweird.f32 %v2553_v62  ;;  %v2555_v4 = vpop.eup %2554  ;;  %v1547_v13 = vmul.f32 %v3241_v55, %v1530_v5  ;;  %v1710_v55 = vand.u32 2147483647, %v1658_v14 }
 0xc89   :  { %v2557_v2 = vpop.eup %2556  ;;  %vm1538_vm9 = vmor %vm1536_vm8, %vm1537_vm13  ;;  %v1702_v10 = vmul.f32 %v2555_v4, %v1658_v14  ;;  %vm1707_vm11 = vweird.f32 %v2555_v4 }
 0xc8a   :  { %v1533_v38 = vsub.f32 1.0, %v1532_v15  ;;  %v1688_v53 = vmul.f32 %v2557_v2, %v1655_v39  ;;  %vm1693_vm12 = vweird.f32 %v2557_v2  ;;  %vm1708_vm1 = vmor %vm1706_vm14, %vm1707_vm11  ;;  %vm1711_vm4 = vcmp.eq.f32.partialorder %v1710_v55, 8.507059e+37 }
 0xc8b   :  { %v1703_v20 = vsub.f32 1.0, %v1702_v10  ;;  %vm1694_vm3 = vmor %vm1692_vm2, %vm1693_vm12 }
 0xc8c   :  { %v1534_v61 = vmul.f32 %v2553_v62, %v1533_v38  ;;  %v1689_v21 = vsub.f32 1.0, %v1688_v53 }
 0xc8d   :  { %v1704_v22 = vmul.f32 %v2555_v4, %v1703_v20 }
 0xc8e   :  { %v1535_v51 = vadd.f32 %v2553_v62, %v1534_v61  ;;  %v1690_v7 = vmul.f32 %v2557_v2, %v1689_v21 }
 0xc8f   :  { %v1705_v27 = vadd.f32 %v2555_v4, %v1704_v22 }
 0xc90   :  { %v1539_v41 = vsel %vm1538_vm9, %v2553_v62, %v1535_v51  ;;  %v1691_v33 = vadd.f32 %v2557_v2, %v1690_v7  ;;  %v1816_v62 = vperm.slane %v3166_v52, 1 }
 0xc91   :  { %v1544_v11 = vsel %vm1541_vm10, %v1543_v58, %v1539_v41  ;;  %v1709_v28 = vsel %vm1708_vm1, %v2555_v4, %v1705_v27 }
 0xc92   :  { %v1548_v19 = vmul.f32 %v3247_v47, %v1544_v11  ;;  %v1696_v47 = vand.u32 2147483647, %v1655_v39  ;;  %v1695_v12 = vsel %vm1694_vm3, %v2557_v2, %v1691_v33  ;;  %v1714_v42 = vsel %vm1711_vm4, %v1713_v36, %v1709_v28 }
 0xc93   :  { %v1718_v46 = vmul.f32 %v3245_v45, %v1714_v42 }
 0xc94   :  { %v1550_v6 = vpack.c.bf16 %v1548_v19, %v1547_v13  ;;  %vm1697_vm6 = vcmp.eq.f32.partialorder %v1696_v47, 8.507059e+37 }
 0xc95   :  { %v1700_v44 = vsel %vm1697_vm6, %v1699_v8, %v1695_v12 }
 0xc96   :  { %2330 = vmatmul.msk.bf16.gmra.mxu2 %vm370_vm5, %v1550_v6  ;;  %v1717_v49 = vmul.f32 %v3236_v34, %v1700_v44 }
 0xc98   :  { %v1722_v26 = vpop.permute.xlu1 %1721  ;;  %v1720_v54 = vpack.c.bf16 %v1718_v46, %v1717_v49  ;;  %v2410_v46 = vld [vmem:[%s3397_s6 + $0x18] sm:$0xff] }
 0xc99   :  { %1740 = vmatpush.bf16.msra.mxu1 %v1722_v26  ;;  %1955 = vmatpush.bf16.msra.mxu0 %v2410_v46 }
 0xc9c   :  { %2333 = vmatmul.msk.bf16.vlgmr.msra.gmra.mxu1 %vm370_vm5, %v1719_v56 }
 0xc9d   :  { %1956 = vmatpush.bf16.msra.mxu0 %v2409_v37 }
 0xcac   :  { %2334 = vmatmul.msk.bf16.gmra.mxu1 %vm370_vm5, %v1720_v54 }
 0xcc9   :  { %v1572_v3 = vpop.f32.mrf.mxu2 }
 0xcd1   :  { %v1574_v56 = vpop.f32.mrf.mxu2 }
 0xcd2   :  { %v1582_v40 = vpack.c.bf16 %v1574_v56, %v1572_v3 }
 0xcd4   :  { %2345 = vmatmul.msk.bf16.vlgmr.msra.gmra.mxu2 %vm617_vm15, %v1582_v40 }
 0xd19   :  { %v1577_v45 = vpop.f32.mrf.mxu2  ;;  %v1742_v34 = vpop.f32.mrf.mxu1 }
 0xd21   :  { %v1579_v32 = vpop.f32.mrf.mxu2  ;;  %v1744_v59 = vpop.f32.mrf.mxu1 }
 0xd22   :  { %v1583_v35 = vpack.c.bf16 %v1579_v32, %v1577_v45  ;;  %v1752_v43 = vpack.c.bf16 %v1744_v59, %v1742_v34 }
 0xd24   :  { %2339 = vmatmul.msk.bf16.vlgmr.msrb.gmra.mxu3 %vm617_vm15, %v1752_v43  ;;  %2346 = vmatmul.msk.bf16.gmra.mxu2 %vm617_vm15, %v1583_v35 }
 0xd29   :  { %v1747_v60 = vpop.f32.mrf.mxu1 }
 0xd31   :  { %v1749_v9 = vpop.f32.mrf.mxu1 }
 0xd32   :  { %v1753_v14 = vpack.c.bf16 %v1749_v9, %v1747_v60 }
 0xd34   :  { %2340 = vmatmul.msk.bf16.gmra.mxu3 %vm617_vm15, %v1753_v14 }
 0xd57   :  { %v1806_v39 = vpop.f32.mrf.mxu2 }
 0xd5f   :  { %v1808_v38 = vpop.f32.mrf.mxu2 }
 0xda7   :  { %v1775_v63 = vpop.f32.mrf.mxu3  ;;  %v1811_v30 = vpop.f32.mrf.mxu2 }
 0xda8   :  { %v1807_v15 = vadd.f32 %v1806_v39, %v1775_v63 }
 0xdaa   :  { %v1817_v25 = vadd.f32 %v1816_v62, %v1807_v15 }
 0xdac   :  { %v1821_v23 = vadd.f32 %v1817_v25, %v3147_v0 }
 0xdae   :  { %v1825_v1 = vsel %vm370_vm5, %v1821_v23, 0.0 }
 0xdaf   :  { %v1777_v61 = vpop.f32.mrf.mxu3  ;;  %1826 = vadd.xlane.f32.xlu1 %v1825_v1  ;;  %v1813_v41 = vpop.f32.mrf.mxu2 }
 0xdb0   :  { %v1809_v57 = vadd.f32 %v1808_v38, %v1777_v61 }
 0xdb2   :  { %v1818_v24 = vadd.f32 %v1816_v62, %v1809_v57  ;;  %v1913_v57 = vperm.slane %v3166_v52, 2 }
 0xdb4   :  { %v1822_v4 = vadd.f32 %v1818_v24, %v3149_v29 }
 0xdb6   :  { %v1828_v51 = vsel %vm370_vm5, %v1822_v4, 0.0 }
 0xdb7   :  { %1829 = vadd.xlane.f32.xlu0 %v1828_v51  ;;  %v1780_v2 = vpop.f32.mrf.mxu3 }
 0xdb8   :  { %v1812_v58 = vadd.f32 %v1811_v30, %v1780_v2 }
 0xdba   :  { %v1819_v5 = vadd.f32 %v1816_v62, %v1812_v58 }
 0xdbc   :  { %v1823_v10 = vadd.f32 %v1819_v5, %v3156_v48  ;;  %v1918_v5 = vperm.slane %v3166_v52, 3 }
 0xdbe   :  { %v1831_v0 = vsel %vm370_vm5, %v1823_v10, 0.0 }
 0xdbf   :  { %1832 = vadd.xlane.f32.xlu0 %v1831_v0  ;;  %v1782_v11 = vpop.f32.mrf.mxu3 }
 0xdc0   :  { %v1814_v53 = vadd.f32 %v1813_v41, %v1782_v11 }
 0xdc2   :  { %v1820_v13 = vadd.f32 %v1816_v62, %v1814_v53 }
 0xdc4   :  { %v1824_v19 = vadd.f32 %v1820_v13, %v3158_v17 }
 0xdc6   :  { %v1834_v29 = vsel %vm370_vm5, %v1824_v19, 0.0 }
 0xdc7   :  { %1835 = vadd.xlane.f32.xlu2 %v1834_v29 }
 0xe22   :  { %v1827_v20 = vpop.xlane.xlu1 %1826 }
 0xe23   :  { %v1837_v6 = vmul.f32 %v1827_v20, %v2805_v16 }
 0xe25   :  { %v1841_v21 = vsub.f32 %v1821_v23, %v1837_v6 }
 0xe27   :  { %v1845_v22 = vmul.f32 %v1841_v21, %v1841_v21 }
 0xe29   :  { %v1849_v26 = vsel %vm370_vm5, %v1845_v22, 0.0 }
 0xe2a   :  { %1850 = vadd.xlane.f32.xlu0 %v1849_v26  ;;  %v1830_v48 = vpop.xlane.xlu0 %1829 }
 0xe2b   :  { %v1838_v7 = vmul.f32 %v1830_v48, %v2805_v16 }
 0xe2d   :  { %v3289_v27 = vsub.f32 %v1822_v4, %v1838_v7 }
 0xe2f   :  { %v1846_v50 = vmul.f32 %v3289_v27, %v3289_v27 }
 0xe31   :  { %v1852_v17 = vsel %vm370_vm5, %v1846_v50, 0.0 }
 0xe32   :  { %1853 = vadd.xlane.f32.xlu2 %v1852_v17  ;;  %v1833_v33 = vpop.xlane.xlu0 %1832 }
 0xe33   :  { %v1839_v55 = vmul.f32 %v1833_v33, %v2805_v16 }
 0xe35   :  { %v3295_v18 = vsub.f32 %v1823_v10, %v1839_v55 }
 0xe37   :  { %v1847_v47 = vmul.f32 %v3295_v18, %v3295_v18 }
 0xe39   :  { %v1855_v28 = vsel %vm370_vm5, %v1847_v47, 0.0 }
 0xe3a   :  { %v1836_v36 = vpop.xlane.xlu2 %1835  ;;  %1856 = vadd.xlane.f32.xlu0 %v1855_v28 }
 0xe3b   :  { %v1840_v12 = vmul.f32 %v1836_v36, %v2805_v16 }
 0xe3d   :  { %v3301_v8 = vsub.f32 %v1824_v19, %v1840_v12 }
 0xe3f   :  { %v1848_v42 = vmul.f32 %v3301_v8, %v3301_v8 }
 0xe41   :  { %v1858_v44 = vsel %vm370_vm5, %v1848_v42, 0.0  ;;  %v2412_v42 = vld [vmem:[%s3398_s7 + $0x28] sm:$0xff] }
 0xe42   :  { %1859 = vadd.xlane.f32.xlu2 %v1858_v44  ;;  %v1930_v44 = vperm.slane %v3166_v52, 4 }
 0xe9d   :  { %v1851_v49 = vpop.xlane.xlu0 %1850 }
 0xe9e   :  { %v1861_v54 = vmul.f32 %v1851_v49, %v2805_v16  ;;  %v2411_v49 = vld [vmem:[%s3398_s7 + $0x20] sm:$0xff] }
 0xea0   :  { %v1865_v31 = vadd.f32 1e-12, %v1861_v54 }
 0xea2   :  { %2558 = vrsqrt.f32 %v1865_v31  ;;  %vm1875_vm13 = vweird.f32 %v1865_v31 }
 0xea5   :  { %v1854_v3 = vpop.xlane.xlu2 %1853 }
 0xea6   :  { %v1862_v56 = vmul.f32 %v1854_v3, %v2805_v16 }
 0xea8   :  { %v2559_v40 = vpop.eup %2558  ;;  %v1866_v45 = vadd.f32 1e-12, %v1862_v56 }
 0xea9   :  { %v1870_v34 = vmul.f32 %v2559_v40, %v1865_v31  ;;  %vm1876_vm15 = vweird.f32 %v2559_v40 }
 0xeaa   :  { %2560 = vrsqrt.f32 %v1866_v45  ;;  %vm1877_vm7 = vmor %vm1875_vm13, %vm1876_vm15  ;;  %vm1885_vm9 = vweird.f32 %v1866_v45 }
 0xeab   :  { %v1871_v32 = vmul.f32 %v2559_v40, %v1870_v34 }
 0xead   :  { %v1872_v59 = vmul.f32 0.5, %v1871_v32  ;;  %v1857_v35 = vpop.xlane.xlu0 %1856 }
 0xeae   :  { %v1863_v43 = vmul.f32 %v1857_v35, %v2805_v16 }
 0xeaf   :  { %v1873_v60 = vsub.f32 1.5, %v1872_v59 }
 0xeb0   :  { %v2561_v9 = vpop.eup %2560  ;;  %v1867_v14 = vadd.f32 1e-12, %v1863_v43 }
 0xeb1   :  { %v1874_v39 = vmul.f32 %v2559_v40, %v1873_v60  ;;  %v1880_v62 = vmul.f32 %v2561_v9, %v1866_v45  ;;  %vm1886_vm8 = vweird.f32 %v2561_v9 }
 0xeb2   :  { %2562 = vrsqrt.f32 %v1867_v14  ;;  %vm1887_vm10 = vmor %vm1885_vm9, %vm1886_vm8  ;;  %vm1895_vm12 = vweird.f32 %v1867_v14 }
 0xeb3   :  { %v1881_v63 = vmul.f32 %v2561_v9, %v1880_v62  ;;  %v1878_v15 = vsel %vm1877_vm7, %v2559_v40, %v1874_v39 }
 0xeb4   :  { %v1909_v24 = vmul.f32 %v1878_v15, %v1841_v21 }
 0xeb5   :  { %v1882_v25 = vmul.f32 0.5, %v1881_v63  ;;  %v1860_v23 = vpop.xlane.xlu2 %1859 }
 0xeb6   :  { %v1864_v38 = vmul.f32 %v1860_v23, %v2805_v16  ;;  %v1914_v10 = vmul.f32 %v1913_v57, %v1909_v24 }
 0xeb7   :  { %v1883_v1 = vsub.f32 1.5, %v1882_v25 }
 0xeb8   :  { %v2563_v61 = vpop.eup %2562  ;;  %v1868_v4 = vadd.f32 1e-12, %v1864_v38  ;;  %v3319_v19 = vadd.f32 %v1918_v5, %v1914_v10 }
 0xeb9   :  { %v1884_v30 = vmul.f32 %v2561_v9, %v1883_v1  ;;  %v1890_v51 = vmul.f32 %v2563_v61, %v1867_v14  ;;  %vm1896_vm11 = vweird.f32 %v2563_v61 }
 0xeba   :  { %2564 = vrsqrt.f32 %v1868_v4  ;;  %vm1897_vm14 = vmor %vm1895_vm12, %vm1896_vm11  ;;  %vm1905_vm2 = vweird.f32 %v1868_v4 }
 0xebb   :  { %v1888_v2 = vsel %vm1887_vm10, %v2561_v9, %v1884_v30  ;;  %v1891_v58 = vmul.f32 %v2563_v61, %v1890_v51 }
 0xebc   :  { %v1910_v0 = vmul.f32 %v1888_v2, %v3289_v27 }
 0xebd   :  { %v1892_v41 = vmul.f32 0.5, %v1891_v58 }
 0xebe   :  { %v1915_v11 = vmul.f32 %v1913_v57, %v1910_v0 }
 0xebf   :  { %v1893_v53 = vsub.f32 1.5, %v1892_v41 }
 0xec0   :  { %v2565_v13 = vpop.eup %2564  ;;  %v3321_v29 = vadd.f32 %v1918_v5, %v1915_v11 }
 0xec1   :  { %v1894_v20 = vmul.f32 %v2563_v61, %v1893_v53  ;;  %v1900_v6 = vmul.f32 %v2565_v13, %v1868_v4  ;;  %vm1906_vm1 = vweird.f32 %v2565_v13 }
 0xec2   :  { %v1923_v21 = vpack.c.bf16 %v3321_v29, %v3319_v19  ;;  %vm1907_vm3 = vmor %vm1905_vm2, %vm1906_vm1 }
 0xec3   :  { %v1901_v22 = vmul.f32 %v2565_v13, %v1900_v6  ;;  %v1898_v26 = vsel %vm1897_vm14, %v2563_v61, %v1894_v20 }
 0xec4   :  { %2359 = vmatmul.msk.bf16.vlgmr.msra.gmra.mxu0 %vm370_vm5, %v1923_v21  ;;  %v1911_v27 = vmul.f32 %v1898_v26, %v3295_v18  ;;  %v2414_v18 = vld [vmem:[%s3398_s7 + $0x38] sm:$0xff] }
 0xec5   :  { %v1902_v48 = vmul.f32 0.5, %v1901_v22  ;;  %2050 = vmatpush.bf16.msrb.mxu1 %v2414_v18 }
 0xec6   :  { %v1916_v55 = vmul.f32 %v1913_v57, %v1911_v27  ;;  %v2015_v27 = vperm.slane %v3166_v52, 5 }
 0xec7   :  { %v1903_v7 = vsub.f32 1.5, %v1902_v48 }
 0xec8   :  { %v3328_v28 = vadd.f32 %v1918_v5, %v1916_v55 }
 0xec9   :  { %v1904_v50 = vmul.f32 %v2565_v13, %v1903_v7 }
 0xecb   :  { %v1908_v17 = vsel %vm1907_vm3, %v2565_v13, %v1904_v50 }
 0xecc   :  { %v1912_v33 = vmul.f32 %v1908_v17, %v3301_v8  ;;  %v2413_v8 = vld [vmem:[%s3398_s7 + $0x30] sm:$0xff] }
 0xecd   :  { %2051 = vmatpush.bf16.msrb.mxu1 %v2413_v8 }
 0xece   :  { %v1917_v47 = vmul.f32 %v1913_v57, %v1912_v33 }
 0xed0   :  { %v3330_v36 = vadd.f32 %v1918_v5, %v1917_v47 }
 0xed1   :  { %2052 = vmatpush.bf16.msrb.mxu1 %v2412_v42 }
 0xed2   :  { %v1924_v12 = vpack.c.bf16 %v3330_v36, %v3328_v28 }
 0xed4   :  { %2360 = vmatmul.msk.bf16.gmra.mxu0 %vm370_vm5, %v1924_v12 }
 0xed5   :  { %2053 = vmatpush.bf16.msrb.mxu1 %v2411_v49 }
 0xf41   :  { %v1958_v46 = vpop.f32.mrf.mxu0 }
 0xf42   :  { %v1959_v54 = vadd.f32 %v1958_v46, %v1930_v44 }
 0xf44   :  { %v1968_v31 = vmul.f32 %v1959_v54, %v1959_v54 }
 0xf46   :  { %v1972_v37 = vmul.f32 %v1968_v31, %v1959_v54 }
 0xf48   :  { %v1976_v3 = vmul.f32 0.044715, %v1972_v37 }
 0xf49   :  { %v1960_v56 = vpop.f32.mrf.mxu0 }
 0xf4a   :  { %v1980_v40 = vadd.f32 %v1976_v3, %v1959_v54  ;;  %v1961_v45 = vadd.f32 %v1960_v56, %v1930_v44 }
 0xf4c   :  { %v1984_v34 = vmul.f32 0.7978846, %v1980_v40  ;;  %v1969_v32 = vmul.f32 %v1961_v45, %v1961_v45 }
 0xf4e   :  { %v1973_v59 = vmul.f32 %v1969_v32, %v1961_v45  ;;  %2566 = vtanh.f32 %v1984_v34 }
 0xf50   :  { %v1977_v35 = vmul.f32 0.044715, %v1973_v59 }
 0xf51   :  { %v1963_v43 = vpop.f32.mrf.mxu0 }
 0xf52   :  { %v1981_v60 = vadd.f32 %v1977_v35, %v1961_v45  ;;  %v1964_v9 = vadd.f32 %v1963_v43, %v1930_v44 }
 0xf54   :  { %v1985_v14 = vmul.f32 0.7978846, %v1981_v60  ;;  %v1970_v39 = vmul.f32 %v1964_v9, %v1964_v9  ;;  %v2567_v62 = vpop.eup %2566 }
 0xf55   :  { %v1992_v25 = vadd.f32 1.0, %v2567_v62 }
 0xf56   :  { %2568 = vtanh.f32 %v1985_v14  ;;  %v1974_v63 = vmul.f32 %v1970_v39, %v1964_v9 }
 0xf57   :  { %v1996_v4 = vmul.f32 0.5, %v1992_v25 }
 0xf58   :  { %v1978_v15 = vmul.f32 0.044715, %v1974_v63 }
 0xf59   :  { %v1965_v23 = vpop.f32.mrf.mxu0  ;;  %v2000_v5 = vmul.f32 %v1996_v4, %v1959_v54 }
 0xf5a   :  { %v1982_v38 = vadd.f32 %v1978_v15, %v1964_v9  ;;  %v1966_v1 = vadd.f32 %v1965_v23, %v1930_v44 }
 0xf5c   :  { %v2569_v61 = vpop.eup %2568  ;;  %v1986_v57 = vmul.f32 0.7978846, %v1982_v38  ;;  %v1971_v24 = vmul.f32 %v1966_v1, %v1966_v1 }
 0xf5d   :  { %v1993_v30 = vadd.f32 1.0, %v2569_v61 }
 0xf5e   :  { %v1975_v51 = vmul.f32 %v1971_v24, %v1966_v1  ;;  %2570 = vtanh.f32 %v1986_v57 }
 0xf5f   :  { %v1997_v2 = vmul.f32 0.5, %v1993_v30 }
 0xf60   :  { %v1979_v58 = vmul.f32 0.044715, %v1975_v51 }
 0xf61   :  { %v2001_v10 = vmul.f32 %v1997_v2, %v1961_v45 }
 0xf62   :  { %v1983_v0 = vadd.f32 %v1979_v58, %v1966_v1 }
 0xf63   :  { %v2004_v41 = vpack.c.bf16 %v2001_v10, %v2000_v5 }
 0xf64   :  { %v1987_v11 = vmul.f32 0.7978846, %v1983_v0  ;;  %v2571_v53 = vpop.eup %2570 }
 0xf65   :  { %2385 = vmatmul.msk.bf16.vlgmr.msrb.gmra.mxu1 %vm1234_vm0, %v2004_v41  ;;  %v1994_v13 = vadd.f32 1.0, %v2571_v53  ;;  %v2583_v53 = vld [vmem:[%s3394_s3 + $0x8] sm:$0xff]  ;;  %s2624_s3 = smov [#allocation2]  }
 0xf66   :  { %2572 = vtanh.f32 %v1987_v11  ;;  %s2175_s10 = sshll.u32 %s2624_s3, 4  ;;  %s2176_s10 = int_to_ptr.vmem [resolvable:$true] %s2175_s10 }
 0xf67   :  { %v1998_v21 = vmul.f32 0.5, %v1994_v13  ;;  %v2157_v13 = vperm.slane %v2583_v53, 6 }
 0xf69   :  { %v2002_v26 = vmul.f32 %v1998_v21, %v1964_v9  ;;  %v2162_v21 = vperm.slane %v2583_v53, 7 }
 0xf6c   :  { %v2573_v20 = vpop.eup %2572 }
 0xf6d   :  { %v1995_v6 = vadd.f32 1.0, %v2573_v20 }
 0xf6f   :  { %v1999_v22 = vmul.f32 0.5, %v1995_v6 }
 0xf71   :  { %v2003_v48 = vmul.f32 %v1999_v22, %v1966_v1 }
 0xf73   :  { %v2005_v7 = vpack.c.bf16 %v2003_v48, %v2002_v26 }
 0xf75   :  { %2386 = vmatmul.msk.bf16.gmra.mxu1 %vm1234_vm0, %v2005_v7 }
 0xfe2   :  { %v2055_v50 = vpop.f32.mrf.mxu1 }
 0xfe3   :  { %v2056_v17 = vadd.f32 %v2055_v50, %v2015_v27 }
 0xfe5   :  { %v2065_v33 = vadd.f32 %v2056_v17, %v3319_v19 }
 0xfe7   :  { %v2069_v55 = vsel %vm370_vm5, %v2065_v33, 0.0 }
 0xfe8   :  { %2070 = vadd.xlane.f32.xlu1 %v2069_v55 }
 0xfea   :  { %v2057_v47 = vpop.f32.mrf.mxu1 }
 0xfeb   :  { %v2058_v12 = vadd.f32 %v2057_v47, %v2015_v27 }
 0xfed   :  { %v2066_v18 = vadd.f32 %v2058_v12, %v3321_v29 }
 0xfef   :  { %v2072_v8 = vsel %vm370_vm5, %v2066_v18, 0.0 }
 0xff0   :  { %2073 = vadd.xlane.f32.xlu0 %v2072_v8 }
 0xff2   :  { %v2060_v42 = vpop.f32.mrf.mxu1 }
 0xff3   :  { %v2061_v44 = vadd.f32 %v2060_v42, %v2015_v27 }
 0xff5   :  { %v2067_v46 = vadd.f32 %v2061_v44, %v3328_v28 }
 0xff7   :  { %v2075_v52 = vsel %vm370_vm5, %v2067_v46, 0.0 }
 0xff8   :  { %2076 = vadd.xlane.f32.xlu2 %v2075_v52 }
 0xffa   :  { %v2062_v49 = vpop.f32.mrf.mxu1 }
 0xffb   :  { %v2063_v54 = vadd.f32 %v2062_v49, %v2015_v27 }
 0xffd   :  { %v2068_v19 = vadd.f32 %v2063_v54, %v3330_v36 }
 0xfff   :  { %v2078_v31 = vsel %vm370_vm5, %v2068_v19, 0.0 }
0x1000   :  { %2079 = vadd.xlane.f32.xlu1 %v2078_v31 }
0x105b   :  { %v2071_v37 = vpop.xlane.xlu1 %2070 }
0x105c   :  { %v2081_v29 = vmul.f32 %v2071_v37, %v2805_v16 }
0x105e   :  { %v2085_v3 = vsub.f32 %v2065_v33, %v2081_v29 }
0x1060   :  { %v2089_v56 = vmul.f32 %v2085_v3, %v2085_v3 }
0x1062   :  { %v2093_v40 = vsel %vm370_vm5, %v2089_v56, 0.0 }
0x1063   :  { %2094 = vadd.xlane.f32.xlu0 %v2093_v40  ;;  %v2074_v45 = vpop.xlane.xlu0 %2073 }
0x1064   :  { %v2082_v28 = vmul.f32 %v2074_v45, %v2805_v16 }
0x1066   :  { %v2086_v34 = vsub.f32 %v2066_v18, %v2082_v28 }
0x1068   :  { %v2090_v32 = vmul.f32 %v2086_v34, %v2086_v34 }
0x106a   :  { %v2096_v59 = vsel %vm370_vm5, %v2090_v32, 0.0 }
0x106b   :  { %v2077_v35 = vpop.xlane.xlu2 %2076  ;;  %2097 = vadd.xlane.f32.xlu2 %v2096_v59 }
0x106c   :  { %v2083_v36 = vmul.f32 %v2077_v35, %v2805_v16 }
0x106e   :  { %v3364_v43 = vsub.f32 %v2067_v46, %v2083_v36 }
0x1070   :  { %v2091_v60 = vmul.f32 %v3364_v43, %v3364_v43 }
0x1072   :  { %v2099_v9 = vsel %vm370_vm5, %v2091_v60, 0.0 }
0x1073   :  { %v2080_v14 = vpop.xlane.xlu1 %2079  ;;  %2100 = vadd.xlane.f32.xlu1 %v2099_v9 }
0x1074   :  { %v2084_v39 = vmul.f32 %v2080_v14, %v2805_v16 }
0x1076   :  { %v3370_v62 = vsub.f32 %v2068_v19, %v2084_v39 }
0x1078   :  { %v2092_v63 = vmul.f32 %v3370_v62, %v3370_v62 }
0x107a   :  { %v2102_v15 = vsel %vm370_vm5, %v2092_v63, 0.0 }
0x107b   :  { %2103 = vadd.xlane.f32.xlu0 %v2102_v15 }
0x10d6   :  { %v2095_v25 = vpop.xlane.xlu0 %2094 }
0x10d7   :  { %v2105_v23 = vmul.f32 %v2095_v25, %v2805_v16 }
0x10d9   :  { %v2109_v38 = vadd.f32 1e-12, %v2105_v23 }
0x10db   :  { %2574 = vrsqrt.f32 %v2109_v38  ;;  %vm2119_vm4 = vweird.f32 %v2109_v38 }
0x10de   :  { %v2098_v1 = vpop.xlane.xlu2 %2097 }
0x10df   :  { %v2106_v61 = vmul.f32 %v2098_v1, %v2805_v16 }
0x10e1   :  { %v2575_v57 = vpop.eup %2574  ;;  %v2110_v24 = vadd.f32 1e-12, %v2106_v61 }
0x10e2   :  { %v2114_v4 = vmul.f32 %v2575_v57, %v2109_v38  ;;  %vm2120_vm0 = vweird.f32 %v2575_v57 }
0x10e3   :  { %2576 = vrsqrt.f32 %v2110_v24  ;;  %vm2121_vm6 = vmor %vm2119_vm4, %vm2120_vm0  ;;  %vm2129_vm13 = vweird.f32 %v2110_v24 }
0x10e4   :  { %v2115_v30 = vmul.f32 %v2575_v57, %v2114_v4 }
0x10e6   :  { %v2116_v51 = vmul.f32 0.5, %v2115_v30  ;;  %v2101_v2 = vpop.xlane.xlu1 %2100 }
0x10e7   :  { %v2107_v58 = vmul.f32 %v2101_v2, %v2805_v16 }
0x10e8   :  { %v2117_v5 = vsub.f32 1.5, %v2116_v51 }
0x10e9   :  { %v2577_v10 = vpop.eup %2576  ;;  %v2111_v0 = vadd.f32 1e-12, %v2107_v58 }
0x10ea   :  { %v2118_v41 = vmul.f32 %v2575_v57, %v2117_v5  ;;  %v2124_v11 = vmul.f32 %v2577_v10, %v2110_v24  ;;  %vm2130_vm15 = vweird.f32 %v2577_v10 }
0x10eb   :  { %2578 = vrsqrt.f32 %v2111_v0  ;;  %vm2131_vm7 = vmor %vm2129_vm13, %vm2130_vm15  ;;  %vm2139_vm9 = vweird.f32 %v2111_v0 }
0x10ec   :  { %v2122_v20 = vsel %vm2121_vm6, %v2575_v57, %v2118_v41  ;;  %v2125_v6 = vmul.f32 %v2577_v10, %v2124_v11 }
0x10ed   :  { %v2153_v22 = vmul.f32 %v2122_v20, %v2085_v3 }
0x10ee   :  { %v2126_v26 = vmul.f32 0.5, %v2125_v6  ;;  %v2104_v48 = vpop.xlane.xlu0 %2103 }
0x10ef   :  { %v2158_v7 = vmul.f32 %v2157_v13, %v2153_v22  ;;  %v2108_v27 = vmul.f32 %v2104_v48, %v2805_v16 }
0x10f0   :  { %v2127_v50 = vsub.f32 1.5, %v2126_v26 }
0x10f1   :  { %v2579_v17 = vpop.eup %2578  ;;  %v2163_v33 = vadd.f32 %v2162_v21, %v2158_v7  ;;  %v2112_v55 = vadd.f32 1e-12, %v2108_v27 }
0x10f2   :  { %v2128_v47 = vmul.f32 %v2577_v10, %v2127_v50  ;;  %v2134_v12 = vmul.f32 %v2579_v17, %v2111_v0  ;;  %vm2140_vm8 = vweird.f32 %v2579_v17 }
0x10f3   :  { %2167 = vst.msk [vmem:[#allocation2] sm:$0xff] %vm370_vm5, %v2163_v33  ;;  %2580 = vrsqrt.f32 %v2112_v55  ;;  %vm2141_vm10 = vmor %vm2139_vm9, %vm2140_vm8  ;;  %vm2149_vm12 = vweird.f32 %v2112_v55 }
0x10f4   :  { %v2132_v18 = vsel %vm2131_vm7, %v2577_v10, %v2128_v47  ;;  %v2135_v8 = vmul.f32 %v2579_v17, %v2134_v12 }
0x10f5   :  { %v2154_v42 = vmul.f32 %v2132_v18, %v2086_v34 }
0x10f6   :  { %v2136_v44 = vmul.f32 0.5, %v2135_v8 }
0x10f7   :  { %v2159_v46 = vmul.f32 %v2157_v13, %v2154_v42 }
0x10f8   :  { %v2137_v52 = vsub.f32 1.5, %v2136_v44 }
0x10f9   :  { %v2581_v16 = vpop.eup %2580  ;;  %v2164_v49 = vadd.f32 %v2162_v21, %v2159_v46 }
0x10fa   :  { %v2138_v54 = vmul.f32 %v2579_v17, %v2137_v52  ;;  %v2144_v19 = vmul.f32 %v2581_v16, %v2112_v55  ;;  %vm2150_vm11 = vweird.f32 %v2581_v16 }
0x10fb   :  { %2168 = vst.msk [vmem:[#allocation2 + $0x8] sm:$0xff] %vm370_vm5, %v2164_v49  ;;  %vm2151_vm14 = vmor %vm2149_vm12, %vm2150_vm11 }
0x10fc   :  { %v2142_v31 = vsel %vm2141_vm10, %v2579_v17, %v2138_v54  ;;  %v2145_v37 = vmul.f32 %v2581_v16, %v2144_v19 }
0x10fd   :  { %v2155_v29 = vmul.f32 %v2142_v31, %v3364_v43 }
0x10fe   :  { %v2146_v3 = vmul.f32 0.5, %v2145_v37 }
0x10ff   :  { %v2160_v56 = vmul.f32 %v2157_v13, %v2155_v29 }
0x1100   :  { %v2147_v40 = vsub.f32 1.5, %v2146_v3 }
0x1101   :  { %v2165_v45 = vadd.f32 %v2162_v21, %v2160_v56 }
0x1102   :  { %v2148_v28 = vmul.f32 %v2581_v16, %v2147_v40 }
0x1103   :  { %2169 = vst.msk [vmem:[#allocation2 + $0x10] sm:$0xff] %vm370_vm5, %v2165_v45 }
0x1104   :  { %v2152_v34 = vsel %vm2151_vm14, %v2581_v16, %v2148_v28 }
0x1105   :  { %v2156_v32 = vmul.f32 %v2152_v34, %v3370_v62 }
0x1107   :  { %v2161_v59 = vmul.f32 %v2157_v13, %v2156_v32 }
0x1109   :  { %v2166_v35 = vadd.f32 %v2162_v21, %v2161_v59 }
0x110b   :  { %2170 = vst.msk [vmem:[#allocation2 + $0x18] sm:$0xff] %vm370_vm5, %v2166_v35 }
0x110c   :  { %2183 = dma.vmem_to_hbm [thread:$0]  %s2176_s10, 512, %s2178_s0, [#allocation3], %s2625_s13, %s2625_s13, %s2626_s17  }
0x110d   :  { %2608 = dma.done.wait [#allocation3], 512  }
0x110e   :  { %2609 = vsyncadd [#allocation3], 4294966784 }
0x110f   :  { %2188 = vsyncpa [#allocation3], 1 }

</bundles_post_ra>
